<compile_context>
chip_gen: v6e
topology: v6e:2x2x1
jax: 0.10.0
libtpu: 0.0.40
codegen_flags: <defaults>
</compile_context>

<pallas_src>
import functools

import jax
import jax.numpy as jnp
from jax.experimental import pallas as pl
from jax.experimental.pallas import tpu as pltpu


HIDDEN_SIZE = 128
INPUT_SIZE = 28
NUM_CLASSES = 10
NUM_LAYERS = 2          # hard-wired as two explicit stacked cells in the kernel
CLASS_PAD = 128         # lane-dense output width (>= NUM_CLASSES)
BATCH_PAD = 8           # f32 sublane tile


def _sigmoid(x):
    # sigmoid(x) == 0.5 * tanh(0.5 * x) + 0.5  -> a single EUP pass per gate
    # (vs exp + reciprocal); the extra mul/add co-issue on idle VPU slots.
    return 0.5 * jnp.tanh(0.5 * x) + 0.5


def _gates_to_hc(gates, c, H):
    """PyTorch nn.LSTM gate order [i, f, g, o]; all elementwise math in f32."""
    i = _sigmoid(gates[:, 0 * H:1 * H])
    f = _sigmoid(gates[:, 1 * H:2 * H])
    g = jnp.tanh(gates[:, 2 * H:3 * H])
    o = _sigmoid(gates[:, 3 * H:4 * H])
    c_new = f * c + i * g
    h_new = o * jnp.tanh(c_new)
    return h_new, c_new


def lstm_classifier_kernel(
    x_ref,       # (T*Bp, D_in)    bf16, row layout t*Bp + b (time-major, padded)
    wih0_ref,    # (D_in, 4H)      bf16
    b0_ref,      # (1, 4H)         f32  (= b_ih_l0 + b_hh_l0)
    wf_ref,      # (2H, 8H)        bf16 fused block RHS [[Whh0, Wih1],[0, Whh1]]
    b1_ref,      # (1, 4H)         f32  (= b_ih_l1 + b_hh_l1)
    wfc_ref,     # (H, CLASS_PAD)  f32  (zero-padded columns)
    bfc_ref,     # (1, CLASS_PAD)  f32  (-1e30 in padded columns)
    out_ref,     # (Bp, CLASS_PAD) f32  log-probs (padded rows/cols are junk)
    *,
    seq_len,
    batch_pad,
):
    T, Bp = seq_len, batch_pad
    H = wf_ref.shape[0] // 2
    G = 4 * H

    # ---- weights loaded ONCE (hoisted out of the unrolled recurrence).
    wih0 = wih0_ref[...]
    wf = wf_ref[...]

    # ---- hoisted layer-0 input projection: one big matmul OFF the sequential
    # ---- critical path; bias b0 folded in here (once).
    gin0 = (
        jnp.dot(x_ref[...], wih0, preferred_element_type=jnp.float32)
        + b0_ref[...]
    )  # (T*Bp, 4H) f32

    # hoisted layer-1 bias broadcast (done once, not per timestep).
    b1_b = jnp.broadcast_to(b1_ref[...], (Bp, G))

    c0 = jnp.zeros((Bp, H), jnp.float32)
    c1 = jnp.zeros((Bp, H), jnp.float32)
    h1 = jnp.zeros((Bp, H), jnp.float32)

    # Prologue: layer-0 at t=0 (initial h0 is zero -> no recurrent term).
    h0, c0 = _gates_to_hc(gin0[0:Bp, :], c0, H)

    # Wavefront recurrence, fully unrolled (T is static).  Wave t issues ONE
    # fused dot with LHS=[h0(t), h1(t-1)]:
    #   cols [0, 4H)  = h0(t) @ Whh0                      -> layer-0 step t+1
    #   cols [4H, 8H) = h0(t) @ Wih1 + h1(t-1) @ Whh1     -> layer-1 step t
    for t in range(T):
        hx = jnp.concatenate(
            [h0.astype(jnp.bfloat16), h1.astype(jnp.bfloat16)], axis=1)  # (Bp, 2H)
        fused = jnp.dot(hx, wf, preferred_element_type=jnp.float32)      # (Bp, 8H)

        # layer 1 at time t.
        h1, c1 = _gates_to_hc(fused[:, G:] + b1_b, c1, H)

        # layer 0 at time t+1 (static slice, sublane-tile aligned since Bp=8).
        if t + 1 < T:
            g0 = gin0[(t + 1) * Bp:(t + 2) * Bp, :] + fused[:, :G]
            h0, c0 = _gates_to_hc(g0, c0, H)

    # fc on the last-timestep hidden state of the top layer (f32, lane-dense).
    logits = jnp.dot(h1, wfc_ref[...],
                     preferred_element_type=jnp.float32) + bfc_ref[...]

    # LogSoftmax(dim=1); padded lanes carry -1e30 logits -> exp() == 0, so
    # they do not perturb the max or the log-sum-exp.
    m = jnp.max(logits, axis=1, keepdims=True)
    shifted = logits - m
    lse = jnp.log(jnp.sum(jnp.exp(shifted), axis=1, keepdims=True))
    out_ref[...] = shifted - lse


def lstm_classifier(x, params):
    """x: (B, 1, T, D_in) float32 (PyTorch NCHW-like).  Returns (B, C) log-probs."""
    x = jnp.squeeze(x, axis=1)            # (B, T, D)   == x.squeeze(1)
    B, T, D = x.shape
    Bp = max(BATCH_PAD, ((B + BATCH_PAD - 1) // BATCH_PAD) * BATCH_PAD)

    # time-major, batch padded to the 8-row sublane tile; row layout t*Bp + b.
    x_tm = jnp.transpose(x, (1, 0, 2))                      # (T, B, D)
    x_tm = jnp.pad(x_tm, ((0, 0), (0, Bp - B), (0, 0)))     # (T, Bp, D)
    x_flat = x_tm.reshape(T * Bp, D).astype(jnp.bfloat16)

    (wih0, whh0, b0, wih1, whh1, b1, wfc, bfc) = params
    H = HIDDEN_SIZE

    # bf16 MXU operands; fused wavefront RHS packed once: [[Whh0, Wih1],[0, Whh1]].
    wih0_b = wih0.astype(jnp.bfloat16)
    wf_top = jnp.concatenate([whh0, wih1], axis=1)                       # (H, 8H)
    wf_bot = jnp.concatenate(
        [jnp.zeros((H, 4 * H), jnp.float32), whh1], axis=1)              # (H, 8H)
    wf_b = jnp.concatenate([wf_top, wf_bot], axis=0).astype(jnp.bfloat16)  # (2H, 8H)

    # lane-dense FC: zero-pad weight columns; -1e30 bias on padded classes.
    wfc_p = jnp.zeros((H, CLASS_PAD), jnp.float32)
    wfc_p = wfc_p.at[:, :NUM_CLASSES].set(wfc)
    bfc_p = jnp.full((1, CLASS_PAD), -1e30, jnp.float32)
    bfc_p = bfc_p.at[:, :NUM_CLASSES].set(bfc)

    vmem = pl.BlockSpec(memory_space=pltpu.MemorySpace.VMEM)
    kernel = functools.partial(lstm_classifier_kernel, seq_len=T, batch_pad=Bp)

    out_p = pl.pallas_call(
        kernel,
        out_shape=jax.ShapeDtypeStruct((Bp, CLASS_PAD), jnp.float32),
        in_specs=[vmem] * 7,
        out_specs=vmem,
    )(x_flat, wih0_b, b0, wf_b, b1, wfc_p, bfc_p)
    return out_p[:B, :NUM_CLASSES]


def lstm_classifier_ref(x, params):
    """Pure-JAX f32 reference matching nn.LSTM(num_layers=2) + Linear + LogSoftmax."""
    x = jnp.squeeze(x, axis=1)            # (B, T, D)
    (wih0, whh0, b0, wih1, whh1, b1, wfc, bfc) = params
    B, T, _ = x.shape
    H = HIDDEN_SIZE

    def cell(x_t, h, c, w_ih, w_hh, b):
        gates = x_t @ w_ih + h @ w_hh + b
        i = jax.nn.sigmoid(gates[:, 0 * H:1 * H])
        f = jax.nn.sigmoid(gates[:, 1 * H:2 * H])
        g = jnp.tanh(gates[:, 2 * H:3 * H])
        o = jax.nn.sigmoid(gates[:, 3 * H:4 * H])
        c = f * c + i * g
        h = o * jnp.tanh(c)
        return h, c

    h0 = c0 = h1 = c1 = jnp.zeros((B, H), jnp.float32)
    for t in range(T):
        h0, c0 = cell(x[:, t, :], h0, c0, wih0, whh0, b0)
        h1, c1 = cell(h0, h1, c1, wih1, whh1, b1)
    logits = h1 @ wfc + bfc
    return jax.nn.log_softmax(logits, axis=1)


def init_params(key):
    """Deterministic init matching nn.LSTM / nn.Linear shapes.

    PyTorch stores weight_ih_l0 as (4H, D_in) etc.; we create them
    pre-transposed for the kernel: (D_in, 4H), (H, 4H); biases combined
    (b_ih + b_hh) as (1, 4H).
    """
    H, D, C = HIDDEN_SIZE, INPUT_SIZE, NUM_CLASSES
    k = jax.random.split(key, 10)
    bound = 1.0 / jnp.sqrt(H)
    u = lambda kk, shape: jax.random.uniform(kk, shape, jnp.float32, -bound, bound)

    wih0 = u(k[0], (D, 4 * H))
    whh0 = u(k[1], (H, 4 * H))
    b0 = u(k[2], (1, 4 * H)) + u(k[3], (1, 4 * H))   # b_ih_l0 + b_hh_l0
    wih1 = u(k[4], (H, 4 * H))
    whh1 = u(k[5], (H, 4 * H))
    b1 = u(k[6], (1, 4 * H)) + u(k[7], (1, 4 * H))   # b_ih_l1 + b_hh_l1
    wfc = u(k[8], (H, C))
    bfc = u(k[9], (1, C))
    return (wih0, whh0, b0, wih1, whh1, b1, wfc, bfc)


if __name__ == "__main__":
    key = jax.random.PRNGKey(0)
    k_x, k_p = jax.random.split(key)

    B, T = 2, 8
    x = jax.random.normal(k_x, (B, 1, T, INPUT_SIZE), jnp.float32)  # (B,1,T,D_in)
    params = init_params(k_p)

    out = jax.block_until_ready(lstm_classifier(x, params))

    assert out.shape == (B, NUM_CLASSES)
    # log-softmax rows should sum to ~1 in prob space
    assert jnp.allclose(jnp.sum(jnp.exp(out), axis=1), 1.0, atol=1e-3)
    # numerical check against a pure-JAX f32 reference (bf16 MXU tolerance)
    ref = lstm_classifier_ref(x, params)
    assert jnp.allclose(out, ref, atol=5e-2), float(jnp.max(jnp.abs(out - ref)))

    print("KERNEL_OK")
</pallas_src>

<mosaic_0001>
module attributes {stable_mosaic.version = 11 : i64} {
  func.func @lstm_classifier_kernel(%arg0: memref<64x28xbf16, #tpu.memory_space<vmem>>, %arg1: memref<28x512xbf16, #tpu.memory_space<vmem>>, %arg2: memref<1x512xf32, #tpu.memory_space<vmem>>, %arg3: memref<256x1024xbf16, #tpu.memory_space<vmem>>, %arg4: memref<1x512xf32, #tpu.memory_space<vmem>>, %arg5: memref<128x128xf32, #tpu.memory_space<vmem>>, %arg6: memref<1x128xf32, #tpu.memory_space<vmem>>, %arg7: memref<8x128xf32, #tpu.memory_space<vmem>>) attributes {dimension_semantics = [], scalar_prefetch = 0 : i64, scratch_operands = 0 : i64, tpu.core_type = #tpu.core_type<tc>} {
    %c0 = arith.constant 0 : index
    %c0_0 = arith.constant 0 : index
    %0 = vector.load %arg1[%c0, %c0_0] : memref<28x512xbf16, #tpu.memory_space<vmem>>, vector<28x512xbf16>
    %c0_1 = arith.constant 0 : index
    %c0_2 = arith.constant 0 : index
    %1 = vector.load %arg3[%c0_1, %c0_2] : memref<256x1024xbf16, #tpu.memory_space<vmem>>, vector<256x1024xbf16>
    %c0_3 = arith.constant 0 : index
    %c0_4 = arith.constant 0 : index
    %2 = vector.load %arg0[%c0_3, %c0_4] : memref<64x28xbf16, #tpu.memory_space<vmem>>, vector<64x28xbf16>
    %cst = arith.constant dense<0.000000e+00> : vector<64x512xf32>
    %3 = tpu.matmul %2, %0, %cst {dimension_numbers = #tpu.dot_dimension_numbers<[1], [0], [0], [1], [0, 0, 1, 1], [], []>} : vector<64x28xbf16>, vector<28x512xbf16>, vector<64x512xf32> -> vector<64x512xf32>
    %c0_5 = arith.constant 0 : index
    %c0_6 = arith.constant 0 : index
    %4 = vector.load %arg2[%c0_5, %c0_6] : memref<1x512xf32, #tpu.memory_space<vmem>>, vector<1x512xf32>
    %5 = vector.broadcast %4 : vector<1x512xf32> to vector<64x512xf32>
    %6 = arith.addf %3, %5 : vector<64x512xf32>
    %c0_7 = arith.constant 0 : index
    %c0_8 = arith.constant 0 : index
    %7 = vector.load %arg4[%c0_7, %c0_8] : memref<1x512xf32, #tpu.memory_space<vmem>>, vector<1x512xf32>
    %8 = vector.shape_cast %7 : vector<1x512xf32> to vector<1x512xf32>
    %9 = vector.broadcast %8 : vector<1x512xf32> to vector<8x512xf32>
    %cst_9 = arith.constant 0.000000e+00 : f32
    %10 = vector.broadcast %cst_9 : f32 to vector<8x128xf32>
    %cst_10 = arith.constant 0.000000e+00 : f32
    %11 = vector.broadcast %cst_10 : f32 to vector<8x128xf32>
    %cst_11 = arith.constant 0.000000e+00 : f32
    %12 = vector.broadcast %cst_11 : f32 to vector<8x128xf32>
    %13 = vector.extract_strided_slice %6 {offsets = [0, 0], sizes = [8, 512], strides = [1, 1]} : vector<64x512xf32> to vector<8x512xf32>
    %14 = vector.extract_strided_slice %13 {offsets = [0, 0], sizes = [8, 128], strides = [1, 1]} : vector<8x512xf32> to vector<8x128xf32>
    %cst_12 = arith.constant 5.000000e-01 : f32
    %15 = vector.broadcast %cst_12 : f32 to vector<8x128xf32>
    %16 = arith.mulf %15, %14 : vector<8x128xf32>
    %17 = math.tanh %16 : vector<8x128xf32>
    %cst_13 = arith.constant 5.000000e-01 : f32
    %18 = vector.broadcast %cst_13 : f32 to vector<8x128xf32>
    %19 = arith.mulf %18, %17 : vector<8x128xf32>
    %cst_14 = arith.constant 5.000000e-01 : f32
    %20 = vector.broadcast %cst_14 : f32 to vector<8x128xf32>
    %21 = arith.addf %19, %20 : vector<8x128xf32>
    %22 = vector.extract_strided_slice %13 {offsets = [0, 128], sizes = [8, 128], strides = [1, 1]} : vector<8x512xf32> to vector<8x128xf32>
    %cst_15 = arith.constant 5.000000e-01 : f32
    %23 = vector.broadcast %cst_15 : f32 to vector<8x128xf32>
    %24 = arith.mulf %23, %22 : vector<8x128xf32>
    %25 = math.tanh %24 : vector<8x128xf32>
    %cst_16 = arith.constant 5.000000e-01 : f32
    %26 = vector.broadcast %cst_16 : f32 to vector<8x128xf32>
    %27 = arith.mulf %26, %25 : vector<8x128xf32>
    %cst_17 = arith.constant 5.000000e-01 : f32
    %28 = vector.broadcast %cst_17 : f32 to vector<8x128xf32>
    %29 = arith.addf %27, %28 : vector<8x128xf32>
    %30 = vector.extract_strided_slice %13 {offsets = [0, 256], sizes = [8, 128], strides = [1, 1]} : vector<8x512xf32> to vector<8x128xf32>
    %31 = math.tanh %30 : vector<8x128xf32>
    %32 = vector.extract_strided_slice %13 {offsets = [0, 384], sizes = [8, 128], strides = [1, 1]} : vector<8x512xf32> to vector<8x128xf32>
    %cst_18 = arith.constant 5.000000e-01 : f32
    %33 = vector.broadcast %cst_18 : f32 to vector<8x128xf32>
    %34 = arith.mulf %33, %32 : vector<8x128xf32>
    %35 = math.tanh %34 : vector<8x128xf32>
    %cst_19 = arith.constant 5.000000e-01 : f32
    %36 = vector.broadcast %cst_19 : f32 to vector<8x128xf32>
    %37 = arith.mulf %36, %35 : vector<8x128xf32>
    %cst_20 = arith.constant 5.000000e-01 : f32
    %38 = vector.broadcast %cst_20 : f32 to vector<8x128xf32>
    %39 = arith.addf %37, %38 : vector<8x128xf32>
    %40 = arith.mulf %29, %10 : vector<8x128xf32>
    %41 = arith.mulf %21, %31 : vector<8x128xf32>
    %42 = arith.addf %40, %41 : vector<8x128xf32>
    %43 = math.tanh %42 : vector<8x128xf32>
    %44 = arith.mulf %39, %43 : vector<8x128xf32>
    %45 = arith.truncf %44 : vector<8x128xf32> to vector<8x128xbf16>
    %46 = arith.truncf %12 : vector<8x128xf32> to vector<8x128xbf16>
    %47 = tpu.concatenate %45, %46 in 1 : vector<8x128xbf16>, vector<8x128xbf16> -> vector<8x256xbf16>
    %cst_21 = arith.constant dense<0.000000e+00> : vector<8x1024xf32>
    %48 = tpu.matmul %47, %1, %cst_21 {dimension_numbers = #tpu.dot_dimension_numbers<[1], [0], [0], [1], [0, 0, 1, 1], [], []>} : vector<8x256xbf16>, vector<256x1024xbf16>, vector<8x1024xf32> -> vector<8x1024xf32>
    %49 = vector.extract_strided_slice %48 {offsets = [0, 512], sizes = [8, 512], strides = [1, 1]} : vector<8x1024xf32> to vector<8x512xf32>
    %50 = arith.addf %49, %9 : vector<8x512xf32>
    %51 = vector.extract_strided_slice %50 {offsets = [0, 0], sizes = [8, 128], strides = [1, 1]} : vector<8x512xf32> to vector<8x128xf32>
    %cst_22 = arith.constant 5.000000e-01 : f32
    %52 = vector.broadcast %cst_22 : f32 to vector<8x128xf32>
    %53 = arith.mulf %52, %51 : vector<8x128xf32>
    %54 = math.tanh %53 : vector<8x128xf32>
    %cst_23 = arith.constant 5.000000e-01 : f32
    %55 = vector.broadcast %cst_23 : f32 to vector<8x128xf32>
    %56 = arith.mulf %55, %54 : vector<8x128xf32>
    %cst_24 = arith.constant 5.000000e-01 : f32
    %57 = vector.broadcast %cst_24 : f32 to vector<8x128xf32>
    %58 = arith.addf %56, %57 : vector<8x128xf32>
    %59 = vector.extract_strided_slice %50 {offsets = [0, 128], sizes = [8, 128], strides = [1, 1]} : vector<8x512xf32> to vector<8x128xf32>
    %cst_25 = arith.constant 5.000000e-01 : f32
    %60 = vector.broadcast %cst_25 : f32 to vector<8x128xf32>
    %61 = arith.mulf %60, %59 : vector<8x128xf32>
    %62 = math.tanh %61 : vector<8x128xf32>
    %cst_26 = arith.constant 5.000000e-01 : f32
    %63 = vector.broadcast %cst_26 : f32 to vector<8x128xf32>
    %64 = arith.mulf %63, %62 : vector<8x128xf32>
    %cst_27 = arith.constant 5.000000e-01 : f32
    %65 = vector.broadcast %cst_27 : f32 to vector<8x128xf32>
    %66 = arith.addf %64, %65 : vector<8x128xf32>
    %67 = vector.extract_strided_slice %50 {offsets = [0, 256], sizes = [8, 128], strides = [1, 1]} : vector<8x512xf32> to vector<8x128xf32>
    %68 = math.tanh %67 : vector<8x128xf32>
    %69 = vector.extract_strided_slice %50 {offsets = [0, 384], sizes = [8, 128], strides = [1, 1]} : vector<8x512xf32> to vector<8x128xf32>
    %cst_28 = arith.constant 5.000000e-01 : f32
    %70 = vector.broadcast %cst_28 : f32 to vector<8x128xf32>
    %71 = arith.mulf %70, %69 : vector<8x128xf32>
    %72 = math.tanh %71 : vector<8x128xf32>
    %cst_29 = arith.constant 5.000000e-01 : f32
    %73 = vector.broadcast %cst_29 : f32 to vector<8x128xf32>
    %74 = arith.mulf %73, %72 : vector<8x128xf32>
    %cst_30 = arith.constant 5.000000e-01 : f32
    %75 = vector.broadcast %cst_30 : f32 to vector<8x128xf32>
    %76 = arith.addf %74, %75 : vector<8x128xf32>
    %77 = arith.mulf %66, %11 : vector<8x128xf32>
    %78 = arith.mulf %58, %68 : vector<8x128xf32>
    %79 = arith.addf %77, %78 : vector<8x128xf32>
    %80 = math.tanh %79 : vector<8x128xf32>
    %81 = arith.mulf %76, %80 : vector<8x128xf32>
    %82 = vector.extract_strided_slice %6 {offsets = [8, 0], sizes = [8, 512], strides = [1, 1]} : vector<64x512xf32> to vector<8x512xf32>
    %83 = vector.extract_strided_slice %48 {offsets = [0, 0], sizes = [8, 512], strides = [1, 1]} : vector<8x1024xf32> to vector<8x512xf32>
    %84 = arith.addf %82, %83 : vector<8x512xf32>
    %85 = vector.extract_strided_slice %84 {offsets = [0, 0], sizes = [8, 128], strides = [1, 1]} : vector<8x512xf32> to vector<8x128xf32>
    %cst_31 = arith.constant 5.000000e-01 : f32
    %86 = vector.broadcast %cst_31 : f32 to vector<8x128xf32>
    %87 = arith.mulf %86, %85 : vector<8x128xf32>
    %88 = math.tanh %87 : vector<8x128xf32>
    %cst_32 = arith.constant 5.000000e-01 : f32
    %89 = vector.broadcast %cst_32 : f32 to vector<8x128xf32>
    %90 = arith.mulf %89, %88 : vector<8x128xf32>
    %cst_33 = arith.constant 5.000000e-01 : f32
    %91 = vector.broadcast %cst_33 : f32 to vector<8x128xf32>
    %92 = arith.addf %90, %91 : vector<8x128xf32>
    %93 = vector.extract_strided_slice %84 {offsets = [0, 128], sizes = [8, 128], strides = [1, 1]} : vector<8x512xf32> to vector<8x128xf32>
    %cst_34 = arith.constant 5.000000e-01 : f32
    %94 = vector.broadcast %cst_34 : f32 to vector<8x128xf32>
    %95 = arith.mulf %94, %93 : vector<8x128xf32>
    %96 = math.tanh %95 : vector<8x128xf32>
    %cst_35 = arith.constant 5.000000e-01 : f32
    %97 = vector.broadcast %cst_35 : f32 to vector<8x128xf32>
    %98 = arith.mulf %97, %96 : vector<8x128xf32>
    %cst_36 = arith.constant 5.000000e-01 : f32
    %99 = vector.broadcast %cst_36 : f32 to vector<8x128xf32>
    %100 = arith.addf %98, %99 : vector<8x128xf32>
    %101 = vector.extract_strided_slice %84 {offsets = [0, 256], sizes = [8, 128], strides = [1, 1]} : vector<8x512xf32> to vector<8x128xf32>
    %102 = math.tanh %101 : vector<8x128xf32>
    %103 = vector.extract_strided_slice %84 {offsets = [0, 384], sizes = [8, 128], strides = [1, 1]} : vector<8x512xf32> to vector<8x128xf32>
    %cst_37 = arith.constant 5.000000e-01 : f32
    %104 = vector.broadcast %cst_37 : f32 to vector<8x128xf32>
    %105 = arith.mulf %104, %103 : vector<8x128xf32>
    %106 = math.tanh %105 : vector<8x128xf32>
    %cst_38 = arith.constant 5.000000e-01 : f32
    %107 = vector.broadcast %cst_38 : f32 to vector<8x128xf32>
    %108 = arith.mulf %107, %106 : vector<8x128xf32>
    %cst_39 = arith.constant 5.000000e-01 : f32
    %109 = vector.broadcast %cst_39 : f32 to vector<8x128xf32>
    %110 = arith.addf %108, %109 : vector<8x128xf32>
    %111 = arith.mulf %100, %42 : vector<8x128xf32>
    %112 = arith.mulf %92, %102 : vector<8x128xf32>
    %113 = arith.addf %111, %112 : vector<8x128xf32>
    %114 = math.tanh %113 : vector<8x128xf32>
    %115 = arith.mulf %110, %114 : vector<8x128xf32>
    %116 = arith.truncf %115 : vector<8x128xf32> to vector<8x128xbf16>
    %117 = arith.truncf %81 : vector<8x128xf32> to vector<8x128xbf16>
    %118 = tpu.concatenate %116, %117 in 1 : vector<8x128xbf16>, vector<8x128xbf16> -> vector<8x256xbf16>
    %cst_40 = arith.constant dense<0.000000e+00> : vector<8x1024xf32>
    %119 = tpu.matmul %118, %1, %cst_40 {dimension_numbers = #tpu.dot_dimension_numbers<[1], [0], [0], [1], [0, 0, 1, 1], [], []>} : vector<8x256xbf16>, vector<256x1024xbf16>, vector<8x1024xf32> -> vector<8x1024xf32>
    %120 = vector.extract_strided_slice %119 {offsets = [0, 512], sizes = [8, 512], strides = [1, 1]} : vector<8x1024xf32> to vector<8x512xf32>
    %121 = arith.addf %120, %9 : vector<8x512xf32>
    %122 = vector.extract_strided_slice %121 {offsets = [0, 0], sizes = [8, 128], strides = [1, 1]} : vector<8x512xf32> to vector<8x128xf32>
    %cst_41 = arith.constant 5.000000e-01 : f32
    %123 = vector.broadcast %cst_41 : f32 to vector<8x128xf32>
    %124 = arith.mulf %123, %122 : vector<8x128xf32>
    %125 = math.tanh %124 : vector<8x128xf32>
    %cst_42 = arith.constant 5.000000e-01 : f32
    %126 = vector.broadcast %cst_42 : f32 to vector<8x128xf32>
    %127 = arith.mulf %126, %125 : vector<8x128xf32>
    %cst_43 = arith.constant 5.000000e-01 : f32
    %128 = vector.broadcast %cst_43 : f32 to vector<8x128xf32>
    %129 = arith.addf %127, %128 : vector<8x128xf32>
    %130 = vector.extract_strided_slice %121 {offsets = [0, 128], sizes = [8, 128], strides = [1, 1]} : vector<8x512xf32> to vector<8x128xf32>
    %cst_44 = arith.constant 5.000000e-01 : f32
    %131 = vector.broadcast %cst_44 : f32 to vector<8x128xf32>
    %132 = arith.mulf %131, %130 : vector<8x128xf32>
    %133 = math.tanh %132 : vector<8x128xf32>
    %cst_45 = arith.constant 5.000000e-01 : f32
    %134 = vector.broadcast %cst_45 : f32 to vector<8x128xf32>
    %135 = arith.mulf %134, %133 : vector<8x128xf32>
    %cst_46 = arith.constant 5.000000e-01 : f32
    %136 = vector.broadcast %cst_46 : f32 to vector<8x128xf32>
    %137 = arith.addf %135, %136 : vector<8x128xf32>
    %138 = vector.extract_strided_slice %121 {offsets = [0, 256], sizes = [8, 128], strides = [1, 1]} : vector<8x512xf32> to vector<8x128xf32>
    %139 = math.tanh %138 : vector<8x128xf32>
    %140 = vector.extract_strided_slice %121 {offsets = [0, 384], sizes = [8, 128], strides = [1, 1]} : vector<8x512xf32> to vector<8x128xf32>
    %cst_47 = arith.constant 5.000000e-01 : f32
    %141 = vector.broadcast %cst_47 : f32 to vector<8x128xf32>
    %142 = arith.mulf %141, %140 : vector<8x128xf32>
    %143 = math.tanh %142 : vector<8x128xf32>
    %cst_48 = arith.constant 5.000000e-01 : f32
    %144 = vector.broadcast %cst_48 : f32 to vector<8x128xf32>
    %145 = arith.mulf %144, %143 : vector<8x128xf32>
    %cst_49 = arith.constant 5.000000e-01 : f32
    %146 = vector.broadcast %cst_49 : f32 to vector<8x128xf32>
    %147 = arith.addf %145, %146 : vector<8x128xf32>
    %148 = arith.mulf %137, %79 : vector<8x128xf32>
    %149 = arith.mulf %129, %139 : vector<8x128xf32>
    %150 = arith.addf %148, %149 : vector<8x128xf32>
    %151 = math.tanh %150 : vector<8x128xf32>
    %152 = arith.mulf %147, %151 : vector<8x128xf32>
    %153 = vector.extract_strided_slice %6 {offsets = [16, 0], sizes = [8, 512], strides = [1, 1]} : vector<64x512xf32> to vector<8x512xf32>
    %154 = vector.extract_strided_slice %119 {offsets = [0, 0], sizes = [8, 512], strides = [1, 1]} : vector<8x1024xf32> to vector<8x512xf32>
    %155 = arith.addf %153, %154 : vector<8x512xf32>
    %156 = vector.extract_strided_slice %155 {offsets = [0, 0], sizes = [8, 128], strides = [1, 1]} : vector<8x512xf32> to vector<8x128xf32>
    %cst_50 = arith.constant 5.000000e-01 : f32
    %157 = vector.broadcast %cst_50 : f32 to vector<8x128xf32>
    %158 = arith.mulf %157, %156 : vector<8x128xf32>
    %159 = math.tanh %158 : vector<8x128xf32>
    %cst_51 = arith.constant 5.000000e-01 : f32
    %160 = vector.broadcast %cst_51 : f32 to vector<8x128xf32>
    %161 = arith.mulf %160, %159 : vector<8x128xf32>
    %cst_52 = arith.constant 5.000000e-01 : f32
    %162 = vector.broadcast %cst_52 : f32 to vector<8x128xf32>
    %163 = arith.addf %161, %162 : vector<8x128xf32>
    %164 = vector.extract_strided_slice %155 {offsets = [0, 128], sizes = [8, 128], strides = [1, 1]} : vector<8x512xf32> to vector<8x128xf32>
    %cst_53 = arith.constant 5.000000e-01 : f32
    %165 = vector.broadcast %cst_53 : f32 to vector<8x128xf32>
    %166 = arith.mulf %165, %164 : vector<8x128xf32>
    %167 = math.tanh %166 : vector<8x128xf32>
    %cst_54 = arith.constant 5.000000e-01 : f32
    %168 = vector.broadcast %cst_54 : f32 to vector<8x128xf32>
    %169 = arith.mulf %168, %167 : vector<8x128xf32>
    %cst_55 = arith.constant 5.000000e-01 : f32
    %170 = vector.broadcast %cst_55 : f32 to vector<8x128xf32>
    %171 = arith.addf %169, %170 : vector<8x128xf32>
    %172 = vector.extract_strided_slice %155 {offsets = [0, 256], sizes = [8, 128], strides = [1, 1]} : vector<8x512xf32> to vector<8x128xf32>
    %173 = math.tanh %172 : vector<8x128xf32>
    %174 = vector.extract_strided_slice %155 {offsets = [0, 384], sizes = [8, 128], strides = [1, 1]} : vector<8x512xf32> to vector<8x128xf32>
    %cst_56 = arith.constant 5.000000e-01 : f32
    %175 = vector.broadcast %cst_56 : f32 to vector<8x128xf32>
    %176 = arith.mulf %175, %174 : vector<8x128xf32>
    %177 = math.tanh %176 : vector<8x128xf32>
    %cst_57 = arith.constant 5.000000e-01 : f32
    %178 = vector.broadcast %cst_57 : f32 to vector<8x128xf32>
    %179 = arith.mulf %178, %177 : vector<8x128xf32>
    %cst_58 = arith.constant 5.000000e-01 : f32
    %180 = vector.broadcast %cst_58 : f32 to vector<8x128xf32>
    %181 = arith.addf %179, %180 : vector<8x128xf32>
    %182 = arith.mulf %171, %113 : vector<8x128xf32>
    %183 = arith.mulf %163, %173 : vector<8x128xf32>
    %184 = arith.addf %182, %183 : vector<8x128xf32>
    %185 = math.tanh %184 : vector<8x128xf32>
    %186 = arith.mulf %181, %185 : vector<8x128xf32>
    %187 = arith.truncf %186 : vector<8x128xf32> to vector<8x128xbf16>
    %188 = arith.truncf %152 : vector<8x128xf32> to vector<8x128xbf16>
    %189 = tpu.concatenate %187, %188 in 1 : vector<8x128xbf16>, vector<8x128xbf16> -> vector<8x256xbf16>
    %cst_59 = arith.constant dense<0.000000e+00> : vector<8x1024xf32>
    %190 = tpu.matmul %189, %1, %cst_59 {dimension_numbers = #tpu.dot_dimension_numbers<[1], [0], [0], [1], [0, 0, 1, 1], [], []>} : vector<8x256xbf16>, vector<256x1024xbf16>, vector<8x1024xf32> -> vector<8x1024xf32>
    %191 = vector.extract_strided_slice %190 {offsets = [0, 512], sizes = [8, 512], strides = [1, 1]} : vector<8x1024xf32> to vector<8x512xf32>
    %192 = arith.addf %191, %9 : vector<8x512xf32>
    %193 = vector.extract_strided_slice %192 {offsets = [0, 0], sizes = [8, 128], strides = [1, 1]} : vector<8x512xf32> to vector<8x128xf32>
    %cst_60 = arith.constant 5.000000e-01 : f32
    %194 = vector.broadcast %cst_60 : f32 to vector<8x128xf32>
    %195 = arith.mulf %194, %193 : vector<8x128xf32>
    %196 = math.tanh %195 : vector<8x128xf32>
    %cst_61 = arith.constant 5.000000e-01 : f32
    %197 = vector.broadcast %cst_61 : f32 to vector<8x128xf32>
    %198 = arith.mulf %197, %196 : vector<8x128xf32>
    %cst_62 = arith.constant 5.000000e-01 : f32
    %199 = vector.broadcast %cst_62 : f32 to vector<8x128xf32>
    %200 = arith.addf %198, %199 : vector<8x128xf32>
    %201 = vector.extract_strided_slice %192 {offsets = [0, 128], sizes = [8, 128], strides = [1, 1]} : vector<8x512xf32> to vector<8x128xf32>
    %cst_63 = arith.constant 5.000000e-01 : f32
    %202 = vector.broadcast %cst_63 : f32 to vector<8x128xf32>
    %203 = arith.mulf %202, %201 : vector<8x128xf32>
    %204 = math.tanh %203 : vector<8x128xf32>
    %cst_64 = arith.constant 5.000000e-01 : f32
    %205 = vector.broadcast %cst_64 : f32 to vector<8x128xf32>
    %206 = arith.mulf %205, %204 : vector<8x128xf32>
    %cst_65 = arith.constant 5.000000e-01 : f32
    %207 = vector.broadcast %cst_65 : f32 to vector<8x128xf32>
    %208 = arith.addf %206, %207 : vector<8x128xf32>
    %209 = vector.extract_strided_slice %192 {offsets = [0, 256], sizes = [8, 128], strides = [1, 1]} : vector<8x512xf32> to vector<8x128xf32>
    %210 = math.tanh %209 : vector<8x128xf32>
    %211 = vector.extract_strided_slice %192 {offsets = [0, 384], sizes = [8, 128], strides = [1, 1]} : vector<8x512xf32> to vector<8x128xf32>
    %cst_66 = arith.constant 5.000000e-01 : f32
    %212 = vector.broadcast %cst_66 : f32 to vector<8x128xf32>
    %213 = arith.mulf %212, %211 : vector<8x128xf32>
    %214 = math.tanh %213 : vector<8x128xf32>
    %cst_67 = arith.constant 5.000000e-01 : f32
    %215 = vector.broadcast %cst_67 : f32 to vector<8x128xf32>
    %216 = arith.mulf %215, %214 : vector<8x128xf32>
    %cst_68 = arith.constant 5.000000e-01 : f32
    %217 = vector.broadcast %cst_68 : f32 to vector<8x128xf32>
    %218 = arith.addf %216, %217 : vector<8x128xf32>
    %219 = arith.mulf %208, %150 : vector<8x128xf32>
    %220 = arith.mulf %200, %210 : vector<8x128xf32>
    %221 = arith.addf %219, %220 : vector<8x128xf32>
    %222 = math.tanh %221 : vector<8x128xf32>
    %223 = arith.mulf %218, %222 : vector<8x128xf32>
    %224 = vector.extract_strided_slice %6 {offsets = [24, 0], sizes = [8, 512], strides = [1, 1]} : vector<64x512xf32> to vector<8x512xf32>
    %225 = vector.extract_strided_slice %190 {offsets = [0, 0], sizes = [8, 512], strides = [1, 1]} : vector<8x1024xf32> to vector<8x512xf32>
    %226 = arith.addf %224, %225 : vector<8x512xf32>
    %227 = vector.extract_strided_slice %226 {offsets = [0, 0], sizes = [8, 128], strides = [1, 1]} : vector<8x512xf32> to vector<8x128xf32>
    %cst_69 = arith.constant 5.000000e-01 : f32
    %228 = vector.broadcast %cst_69 : f32 to vector<8x128xf32>
    %229 = arith.mulf %228, %227 : vector<8x128xf32>
    %230 = math.tanh %229 : vector<8x128xf32>
    %cst_70 = arith.constant 5.000000e-01 : f32
    %231 = vector.broadcast %cst_70 : f32 to vector<8x128xf32>
    %232 = arith.mulf %231, %230 : vector<8x128xf32>
    %cst_71 = arith.constant 5.000000e-01 : f32
    %233 = vector.broadcast %cst_71 : f32 to vector<8x128xf32>
    %234 = arith.addf %232, %233 : vector<8x128xf32>
    %235 = vector.extract_strided_slice %226 {offsets = [0, 128], sizes = [8, 128], strides = [1, 1]} : vector<8x512xf32> to vector<8x128xf32>
    %cst_72 = arith.constant 5.000000e-01 : f32
    %236 = vector.broadcast %cst_72 : f32 to vector<8x128xf32>
    %237 = arith.mulf %236, %235 : vector<8x128xf32>
    %238 = math.tanh %237 : vector<8x128xf32>
    %cst_73 = arith.constant 5.000000e-01 : f32
    %239 = vector.broadcast %cst_73 : f32 to vector<8x128xf32>
    %240 = arith.mulf %239, %238 : vector<8x128xf32>
    %cst_74 = arith.constant 5.000000e-01 : f32
    %241 = vector.broadcast %cst_74 : f32 to vector<8x128xf32>
    %242 = arith.addf %240, %241 : vector<8x128xf32>
    %243 = vector.extract_strided_slice %226 {offsets = [0, 256], sizes = [8, 128], strides = [1, 1]} : vector<8x512xf32> to vector<8x128xf32>
    %244 = math.tanh %243 : vector<8x128xf32>
    %245 = vector.extract_strided_slice %226 {offsets = [0, 384], sizes = [8, 128], strides = [1, 1]} : vector<8x512xf32> to vector<8x128xf32>
    %cst_75 = arith.constant 5.000000e-01 : f32
    %246 = vector.broadcast %cst_75 : f32 to vector<8x128xf32>
    %247 = arith.mulf %246, %245 : vector<8x128xf32>
    %248 = math.tanh %247 : vector<8x128xf32>
    %cst_76 = arith.constant 5.000000e-01 : f32
    %249 = vector.broadcast %cst_76 : f32 to vector<8x128xf32>
    %250 = arith.mulf %249, %248 : vector<8x128xf32>
    %cst_77 = arith.constant 5.000000e-01 : f32
    %251 = vector.broadcast %cst_77 : f32 to vector<8x128xf32>
    %252 = arith.addf %250, %251 : vector<8x128xf32>
    %253 = arith.mulf %242, %184 : vector<8x128xf32>
    %254 = arith.mulf %234, %244 : vector<8x128xf32>
    %255 = arith.addf %253, %254 : vector<8x128xf32>
    %256 = math.tanh %255 : vector<8x128xf32>
    %257 = arith.mulf %252, %256 : vector<8x128xf32>
    %258 = arith.truncf %257 : vector<8x128xf32> to vector<8x128xbf16>
    %259 = arith.truncf %223 : vector<8x128xf32> to vector<8x128xbf16>
    %260 = tpu.concatenate %258, %259 in 1 : vector<8x128xbf16>, vector<8x128xbf16> -> vector<8x256xbf16>
    %cst_78 = arith.constant dense<0.000000e+00> : vector<8x1024xf32>
    %261 = tpu.matmul %260, %1, %cst_78 {dimension_numbers = #tpu.dot_dimension_numbers<[1], [0], [0], [1], [0, 0, 1, 1], [], []>} : vector<8x256xbf16>, vector<256x1024xbf16>, vector<8x1024xf32> -> vector<8x1024xf32>
    %262 = vector.extract_strided_slice %261 {offsets = [0, 512], sizes = [8, 512], strides = [1, 1]} : vector<8x1024xf32> to vector<8x512xf32>
    %263 = arith.addf %262, %9 : vector<8x512xf32>
    %264 = vector.extract_strided_slice %263 {offsets = [0, 0], sizes = [8, 128], strides = [1, 1]} : vector<8x512xf32> to vector<8x128xf32>
    %cst_79 = arith.constant 5.000000e-01 : f32
    %265 = vector.broadcast %cst_79 : f32 to vector<8x128xf32>
    %266 = arith.mulf %265, %264 : vector<8x128xf32>
    %267 = math.tanh %266 : vector<8x128xf32>
    %cst_80 = arith.constant 5.000000e-01 : f32
    %268 = vector.broadcast %cst_80 : f32 to vector<8x128xf32>
    %269 = arith.mulf %268, %267 : vector<8x128xf32>
    %cst_81 = arith.constant 5.000000e-01 : f32
    %270 = vector.broadcast %cst_81 : f32 to vector<8x128xf32>
    %271 = arith.addf %269, %270 : vector<8x128xf32>
    %272 = vector.extract_strided_slice %263 {offsets = [0, 128], sizes = [8, 128], strides = [1, 1]} : vector<8x512xf32> to vector<8x128xf32>
    %cst_82 = arith.constant 5.000000e-01 : f32
    %273 = vector.broadcast %cst_82 : f32 to vector<8x128xf32>
    %274 = arith.mulf %273, %272 : vector<8x128xf32>
    %275 = math.tanh %274 : vector<8x128xf32>
    %cst_83 = arith.constant 5.000000e-01 : f32
    %276 = vector.broadcast %cst_83 : f32 to vector<8x128xf32>
    %277 = arith.mulf %276, %275 : vector<8x128xf32>
    %cst_84 = arith.constant 5.000000e-01 : f32
    %278 = vector.broadcast %cst_84 : f32 to vector<8x128xf32>
    %279 = arith.addf %277, %278 : vector<8x128xf32>
    %280 = vector.extract_strided_slice %263 {offsets = [0, 256], sizes = [8, 128], strides = [1, 1]} : vector<8x512xf32> to vector<8x128xf32>
    %281 = math.tanh %280 : vector<8x128xf32>
    %282 = vector.extract_strided_slice %263 {offsets = [0, 384], sizes = [8, 128], strides = [1, 1]} : vector<8x512xf32> to vector<8x128xf32>
    %cst_85 = arith.constant 5.000000e-01 : f32
    %283 = vector.broadcast %cst_85 : f32 to vector<8x128xf32>
    %284 = arith.mulf %283, %282 : vector<8x128xf32>
    %285 = math.tanh %284 : vector<8x128xf32>
    %cst_86 = arith.constant 5.000000e-01 : f32
    %286 = vector.broadcast %cst_86 : f32 to vector<8x128xf32>
    %287 = arith.mulf %286, %285 : vector<8x128xf32>
    %cst_87 = arith.constant 5.000000e-01 : f32
    %288 = vector.broadcast %cst_87 : f32 to vector<8x128xf32>
    %289 = arith.addf %287, %288 : vector<8x128xf32>
    %290 = arith.mulf %279, %221 : vector<8x128xf32>
    %291 = arith.mulf %271, %281 : vector<8x128xf32>
    %292 = arith.addf %290, %291 : vector<8x128xf32>
    %293 = math.tanh %292 : vector<8x128xf32>
    %294 = arith.mulf %289, %293 : vector<8x128xf32>
    %295 = vector.extract_strided_slice %6 {offsets = [32, 0], sizes = [8, 512], strides = [1, 1]} : vector<64x512xf32> to vector<8x512xf32>
    %296 = vector.extract_strided_slice %261 {offsets = [0, 0], sizes = [8, 512], strides = [1, 1]} : vector<8x1024xf32> to vector<8x512xf32>
    %297 = arith.addf %295, %296 : vector<8x512xf32>
    %298 = vector.extract_strided_slice %297 {offsets = [0, 0], sizes = [8, 128], strides = [1, 1]} : vector<8x512xf32> to vector<8x128xf32>
    %cst_88 = arith.constant 5.000000e-01 : f32
    %299 = vector.broadcast %cst_88 : f32 to vector<8x128xf32>
    %300 = arith.mulf %299, %298 : vector<8x128xf32>
    %301 = math.tanh %300 : vector<8x128xf32>
    %cst_89 = arith.constant 5.000000e-01 : f32
    %302 = vector.broadcast %cst_89 : f32 to vector<8x128xf32>
    %303 = arith.mulf %302, %301 : vector<8x128xf32>
    %cst_90 = arith.constant 5.000000e-01 : f32
    %304 = vector.broadcast %cst_90 : f32 to vector<8x128xf32>
    %305 = arith.addf %303, %304 : vector<8x128xf32>
    %306 = vector.extract_strided_slice %297 {offsets = [0, 128], sizes = [8, 128], strides = [1, 1]} : vector<8x512xf32> to vector<8x128xf32>
    %cst_91 = arith.constant 5.000000e-01 : f32
    %307 = vector.broadcast %cst_91 : f32 to vector<8x128xf32>
    %308 = arith.mulf %307, %306 : vector<8x128xf32>
    %309 = math.tanh %308 : vector<8x128xf32>
    %cst_92 = arith.constant 5.000000e-01 : f32
    %310 = vector.broadcast %cst_92 : f32 to vector<8x128xf32>
    %311 = arith.mulf %310, %309 : vector<8x128xf32>
    %cst_93 = arith.constant 5.000000e-01 : f32
    %312 = vector.broadcast %cst_93 : f32 to vector<8x128xf32>
    %313 = arith.addf %311, %312 : vector<8x128xf32>
    %314 = vector.extract_strided_slice %297 {offsets = [0, 256], sizes = [8, 128], strides = [1, 1]} : vector<8x512xf32> to vector<8x128xf32>
    %315 = math.tanh %314 : vector<8x128xf32>
    %316 = vector.extract_strided_slice %297 {offsets = [0, 384], sizes = [8, 128], strides = [1, 1]} : vector<8x512xf32> to vector<8x128xf32>
    %cst_94 = arith.constant 5.000000e-01 : f32
    %317 = vector.broadcast %cst_94 : f32 to vector<8x128xf32>
    %318 = arith.mulf %317, %316 : vector<8x128xf32>
    %319 = math.tanh %318 : vector<8x128xf32>
    %cst_95 = arith.constant 5.000000e-01 : f32
    %320 = vector.broadcast %cst_95 : f32 to vector<8x128xf32>
    %321 = arith.mulf %320, %319 : vector<8x128xf32>
    %cst_96 = arith.constant 5.000000e-01 : f32
    %322 = vector.broadcast %cst_96 : f32 to vector<8x128xf32>
    %323 = arith.addf %321, %322 : vector<8x128xf32>
    %324 = arith.mulf %313, %255 : vector<8x128xf32>
    %325 = arith.mulf %305, %315 : vector<8x128xf32>
    %326 = arith.addf %324, %325 : vector<8x128xf32>
    %327 = math.tanh %326 : vector<8x128xf32>
    %328 = arith.mulf %323, %327 : vector<8x128xf32>
    %329 = arith.truncf %328 : vector<8x128xf32> to vector<8x128xbf16>
    %330 = arith.truncf %294 : vector<8x128xf32> to vector<8x128xbf16>
    %331 = tpu.concatenate %329, %330 in 1 : vector<8x128xbf16>, vector<8x128xbf16> -> vector<8x256xbf16>
    %cst_97 = arith.constant dense<0.000000e+00> : vector<8x1024xf32>
    %332 = tpu.matmul %331, %1, %cst_97 {dimension_numbers = #tpu.dot_dimension_numbers<[1], [0], [0], [1], [0, 0, 1, 1], [], []>} : vector<8x256xbf16>, vector<256x1024xbf16>, vector<8x1024xf32> -> vector<8x1024xf32>
    %333 = vector.extract_strided_slice %332 {offsets = [0, 512], sizes = [8, 512], strides = [1, 1]} : vector<8x1024xf32> to vector<8x512xf32>
    %334 = arith.addf %333, %9 : vector<8x512xf32>
    %335 = vector.extract_strided_slice %334 {offsets = [0, 0], sizes = [8, 128], strides = [1, 1]} : vector<8x512xf32> to vector<8x128xf32>
    %cst_98 = arith.constant 5.000000e-01 : f32
    %336 = vector.broadcast %cst_98 : f32 to vector<8x128xf32>
    %337 = arith.mulf %336, %335 : vector<8x128xf32>
    %338 = math.tanh %337 : vector<8x128xf32>
    %cst_99 = arith.constant 5.000000e-01 : f32
    %339 = vector.broadcast %cst_99 : f32 to vector<8x128xf32>
    %340 = arith.mulf %339, %338 : vector<8x128xf32>
    %cst_100 = arith.constant 5.000000e-01 : f32
    %341 = vector.broadcast %cst_100 : f32 to vector<8x128xf32>
    %342 = arith.addf %340, %341 : vector<8x128xf32>
    %343 = vector.extract_strided_slice %334 {offsets = [0, 128], sizes = [8, 128], strides = [1, 1]} : vector<8x512xf32> to vector<8x128xf32>
    %cst_101 = arith.constant 5.000000e-01 : f32
    %344 = vector.broadcast %cst_101 : f32 to vector<8x128xf32>
    %345 = arith.mulf %344, %343 : vector<8x128xf32>
    %346 = math.tanh %345 : vector<8x128xf32>
    %cst_102 = arith.constant 5.000000e-01 : f32
    %347 = vector.broadcast %cst_102 : f32 to vector<8x128xf32>
    %348 = arith.mulf %347, %346 : vector<8x128xf32>
    %cst_103 = arith.constant 5.000000e-01 : f32
    %349 = vector.broadcast %cst_103 : f32 to vector<8x128xf32>
    %350 = arith.addf %348, %349 : vector<8x128xf32>
    %351 = vector.extract_strided_slice %334 {offsets = [0, 256], sizes = [8, 128], strides = [1, 1]} : vector<8x512xf32> to vector<8x128xf32>
    %352 = math.tanh %351 : vector<8x128xf32>
    %353 = vector.extract_strided_slice %334 {offsets = [0, 384], sizes = [8, 128], strides = [1, 1]} : vector<8x512xf32> to vector<8x128xf32>
    %cst_104 = arith.constant 5.000000e-01 : f32
    %354 = vector.broadcast %cst_104 : f32 to vector<8x128xf32>
    %355 = arith.mulf %354, %353 : vector<8x128xf32>
    %356 = math.tanh %355 : vector<8x128xf32>
    %cst_105 = arith.constant 5.000000e-01 : f32
    %357 = vector.broadcast %cst_105 : f32 to vector<8x128xf32>
    %358 = arith.mulf %357, %356 : vector<8x128xf32>
    %cst_106 = arith.constant 5.000000e-01 : f32
    %359 = vector.broadcast %cst_106 : f32 to vector<8x128xf32>
    %360 = arith.addf %358, %359 : vector<8x128xf32>
    %361 = arith.mulf %350, %292 : vector<8x128xf32>
    %362 = arith.mulf %342, %352 : vector<8x128xf32>
    %363 = arith.addf %361, %362 : vector<8x128xf32>
    %364 = math.tanh %363 : vector<8x128xf32>
    %365 = arith.mulf %360, %364 : vector<8x128xf32>
    %366 = vector.extract_strided_slice %6 {offsets = [40, 0], sizes = [8, 512], strides = [1, 1]} : vector<64x512xf32> to vector<8x512xf32>
    %367 = vector.extract_strided_slice %332 {offsets = [0, 0], sizes = [8, 512], strides = [1, 1]} : vector<8x1024xf32> to vector<8x512xf32>
    %368 = arith.addf %366, %367 : vector<8x512xf32>
    %369 = vector.extract_strided_slice %368 {offsets = [0, 0], sizes = [8, 128], strides = [1, 1]} : vector<8x512xf32> to vector<8x128xf32>
    %cst_107 = arith.constant 5.000000e-01 : f32
    %370 = vector.broadcast %cst_107 : f32 to vector<8x128xf32>
    %371 = arith.mulf %370, %369 : vector<8x128xf32>
    %372 = math.tanh %371 : vector<8x128xf32>
    %cst_108 = arith.constant 5.000000e-01 : f32
    %373 = vector.broadcast %cst_108 : f32 to vector<8x128xf32>
    %374 = arith.mulf %373, %372 : vector<8x128xf32>
    %cst_109 = arith.constant 5.000000e-01 : f32
    %375 = vector.broadcast %cst_109 : f32 to vector<8x128xf32>
    %376 = arith.addf %374, %375 : vector<8x128xf32>
    %377 = vector.extract_strided_slice %368 {offsets = [0, 128], sizes = [8, 128], strides = [1, 1]} : vector<8x512xf32> to vector<8x128xf32>
    %cst_110 = arith.constant 5.000000e-01 : f32
    %378 = vector.broadcast %cst_110 : f32 to vector<8x128xf32>
    %379 = arith.mulf %378, %377 : vector<8x128xf32>
    %380 = math.tanh %379 : vector<8x128xf32>
    %cst_111 = arith.constant 5.000000e-01 : f32
    %381 = vector.broadcast %cst_111 : f32 to vector<8x128xf32>
    %382 = arith.mulf %381, %380 : vector<8x128xf32>
    %cst_112 = arith.constant 5.000000e-01 : f32
    %383 = vector.broadcast %cst_112 : f32 to vector<8x128xf32>
    %384 = arith.addf %382, %383 : vector<8x128xf32>
    %385 = vector.extract_strided_slice %368 {offsets = [0, 256], sizes = [8, 128], strides = [1, 1]} : vector<8x512xf32> to vector<8x128xf32>
    %386 = math.tanh %385 : vector<8x128xf32>
    %387 = vector.extract_strided_slice %368 {offsets = [0, 384], sizes = [8, 128], strides = [1, 1]} : vector<8x512xf32> to vector<8x128xf32>
    %cst_113 = arith.constant 5.000000e-01 : f32
    %388 = vector.broadcast %cst_113 : f32 to vector<8x128xf32>
    %389 = arith.mulf %388, %387 : vector<8x128xf32>
    %390 = math.tanh %389 : vector<8x128xf32>
    %cst_114 = arith.constant 5.000000e-01 : f32
    %391 = vector.broadcast %cst_114 : f32 to vector<8x128xf32>
    %392 = arith.mulf %391, %390 : vector<8x128xf32>
    %cst_115 = arith.constant 5.000000e-01 : f32
    %393 = vector.broadcast %cst_115 : f32 to vector<8x128xf32>
    %394 = arith.addf %392, %393 : vector<8x128xf32>
    %395 = arith.mulf %384, %326 : vector<8x128xf32>
    %396 = arith.mulf %376, %386 : vector<8x128xf32>
    %397 = arith.addf %395, %396 : vector<8x128xf32>
    %398 = math.tanh %397 : vector<8x128xf32>
    %399 = arith.mulf %394, %398 : vector<8x128xf32>
    %400 = arith.truncf %399 : vector<8x128xf32> to vector<8x128xbf16>
    %401 = arith.truncf %365 : vector<8x128xf32> to vector<8x128xbf16>
    %402 = tpu.concatenate %400, %401 in 1 : vector<8x128xbf16>, vector<8x128xbf16> -> vector<8x256xbf16>
    %cst_116 = arith.constant dense<0.000000e+00> : vector<8x1024xf32>
    %403 = tpu.matmul %402, %1, %cst_116 {dimension_numbers = #tpu.dot_dimension_numbers<[1], [0], [0], [1], [0, 0, 1, 1], [], []>} : vector<8x256xbf16>, vector<256x1024xbf16>, vector<8x1024xf32> -> vector<8x1024xf32>
    %404 = vector.extract_strided_slice %403 {offsets = [0, 512], sizes = [8, 512], strides = [1, 1]} : vector<8x1024xf32> to vector<8x512xf32>
    %405 = arith.addf %404, %9 : vector<8x512xf32>
    %406 = vector.extract_strided_slice %405 {offsets = [0, 0], sizes = [8, 128], strides = [1, 1]} : vector<8x512xf32> to vector<8x128xf32>
    %cst_117 = arith.constant 5.000000e-01 : f32
    %407 = vector.broadcast %cst_117 : f32 to vector<8x128xf32>
    %408 = arith.mulf %407, %406 : vector<8x128xf32>
    %409 = math.tanh %408 : vector<8x128xf32>
    %cst_118 = arith.constant 5.000000e-01 : f32
    %410 = vector.broadcast %cst_118 : f32 to vector<8x128xf32>
    %411 = arith.mulf %410, %409 : vector<8x128xf32>
    %cst_119 = arith.constant 5.000000e-01 : f32
    %412 = vector.broadcast %cst_119 : f32 to vector<8x128xf32>
    %413 = arith.addf %411, %412 : vector<8x128xf32>
    %414 = vector.extract_strided_slice %405 {offsets = [0, 128], sizes = [8, 128], strides = [1, 1]} : vector<8x512xf32> to vector<8x128xf32>
    %cst_120 = arith.constant 5.000000e-01 : f32
    %415 = vector.broadcast %cst_120 : f32 to vector<8x128xf32>
    %416 = arith.mulf %415, %414 : vector<8x128xf32>
    %417 = math.tanh %416 : vector<8x128xf32>
    %cst_121 = arith.constant 5.000000e-01 : f32
    %418 = vector.broadcast %cst_121 : f32 to vector<8x128xf32>
    %419 = arith.mulf %418, %417 : vector<8x128xf32>
    %cst_122 = arith.constant 5.000000e-01 : f32
    %420 = vector.broadcast %cst_122 : f32 to vector<8x128xf32>
    %421 = arith.addf %419, %420 : vector<8x128xf32>
    %422 = vector.extract_strided_slice %405 {offsets = [0, 256], sizes = [8, 128], strides = [1, 1]} : vector<8x512xf32> to vector<8x128xf32>
    %423 = math.tanh %422 : vector<8x128xf32>
    %424 = vector.extract_strided_slice %405 {offsets = [0, 384], sizes = [8, 128], strides = [1, 1]} : vector<8x512xf32> to vector<8x128xf32>
    %cst_123 = arith.constant 5.000000e-01 : f32
    %425 = vector.broadcast %cst_123 : f32 to vector<8x128xf32>
    %426 = arith.mulf %425, %424 : vector<8x128xf32>
    %427 = math.tanh %426 : vector<8x128xf32>
    %cst_124 = arith.constant 5.000000e-01 : f32
    %428 = vector.broadcast %cst_124 : f32 to vector<8x128xf32>
    %429 = arith.mulf %428, %427 : vector<8x128xf32>
    %cst_125 = arith.constant 5.000000e-01 : f32
    %430 = vector.broadcast %cst_125 : f32 to vector<8x128xf32>
    %431 = arith.addf %429, %430 : vector<8x128xf32>
    %432 = arith.mulf %421, %363 : vector<8x128xf32>
    %433 = arith.mulf %413, %423 : vector<8x128xf32>
    %434 = arith.addf %432, %433 : vector<8x128xf32>
    %435 = math.tanh %434 : vector<8x128xf32>
    %436 = arith.mulf %431, %435 : vector<8x128xf32>
    %437 = vector.extract_strided_slice %6 {offsets = [48, 0], sizes = [8, 512], strides = [1, 1]} : vector<64x512xf32> to vector<8x512xf32>
    %438 = vector.extract_strided_slice %403 {offsets = [0, 0], sizes = [8, 512], strides = [1, 1]} : vector<8x1024xf32> to vector<8x512xf32>
    %439 = arith.addf %437, %438 : vector<8x512xf32>
    %440 = vector.extract_strided_slice %439 {offsets = [0, 0], sizes = [8, 128], strides = [1, 1]} : vector<8x512xf32> to vector<8x128xf32>
    %cst_126 = arith.constant 5.000000e-01 : f32
    %441 = vector.broadcast %cst_126 : f32 to vector<8x128xf32>
    %442 = arith.mulf %441, %440 : vector<8x128xf32>
    %443 = math.tanh %442 : vector<8x128xf32>
    %cst_127 = arith.constant 5.000000e-01 : f32
    %444 = vector.broadcast %cst_127 : f32 to vector<8x128xf32>
    %445 = arith.mulf %444, %443 : vector<8x128xf32>
    %cst_128 = arith.constant 5.000000e-01 : f32
    %446 = vector.broadcast %cst_128 : f32 to vector<8x128xf32>
    %447 = arith.addf %445, %446 : vector<8x128xf32>
    %448 = vector.extract_strided_slice %439 {offsets = [0, 128], sizes = [8, 128], strides = [1, 1]} : vector<8x512xf32> to vector<8x128xf32>
    %cst_129 = arith.constant 5.000000e-01 : f32
    %449 = vector.broadcast %cst_129 : f32 to vector<8x128xf32>
    %450 = arith.mulf %449, %448 : vector<8x128xf32>
    %451 = math.tanh %450 : vector<8x128xf32>
    %cst_130 = arith.constant 5.000000e-01 : f32
    %452 = vector.broadcast %cst_130 : f32 to vector<8x128xf32>
    %453 = arith.mulf %452, %451 : vector<8x128xf32>
    %cst_131 = arith.constant 5.000000e-01 : f32
    %454 = vector.broadcast %cst_131 : f32 to vector<8x128xf32>
    %455 = arith.addf %453, %454 : vector<8x128xf32>
    %456 = vector.extract_strided_slice %439 {offsets = [0, 256], sizes = [8, 128], strides = [1, 1]} : vector<8x512xf32> to vector<8x128xf32>
    %457 = math.tanh %456 : vector<8x128xf32>
    %458 = vector.extract_strided_slice %439 {offsets = [0, 384], sizes = [8, 128], strides = [1, 1]} : vector<8x512xf32> to vector<8x128xf32>
    %cst_132 = arith.constant 5.000000e-01 : f32
    %459 = vector.broadcast %cst_132 : f32 to vector<8x128xf32>
    %460 = arith.mulf %459, %458 : vector<8x128xf32>
    %461 = math.tanh %460 : vector<8x128xf32>
    %cst_133 = arith.constant 5.000000e-01 : f32
    %462 = vector.broadcast %cst_133 : f32 to vector<8x128xf32>
    %463 = arith.mulf %462, %461 : vector<8x128xf32>
    %cst_134 = arith.constant 5.000000e-01 : f32
    %464 = vector.broadcast %cst_134 : f32 to vector<8x128xf32>
    %465 = arith.addf %463, %464 : vector<8x128xf32>
    %466 = arith.mulf %455, %397 : vector<8x128xf32>
    %467 = arith.mulf %447, %457 : vector<8x128xf32>
    %468 = arith.addf %466, %467 : vector<8x128xf32>
    %469 = math.tanh %468 : vector<8x128xf32>
    %470 = arith.mulf %465, %469 : vector<8x128xf32>
    %471 = arith.truncf %470 : vector<8x128xf32> to vector<8x128xbf16>
    %472 = arith.truncf %436 : vector<8x128xf32> to vector<8x128xbf16>
    %473 = tpu.concatenate %471, %472 in 1 : vector<8x128xbf16>, vector<8x128xbf16> -> vector<8x256xbf16>
    %cst_135 = arith.constant dense<0.000000e+00> : vector<8x1024xf32>
    %474 = tpu.matmul %473, %1, %cst_135 {dimension_numbers = #tpu.dot_dimension_numbers<[1], [0], [0], [1], [0, 0, 1, 1], [], []>} : vector<8x256xbf16>, vector<256x1024xbf16>, vector<8x1024xf32> -> vector<8x1024xf32>
    %475 = vector.extract_strided_slice %474 {offsets = [0, 512], sizes = [8, 512], strides = [1, 1]} : vector<8x1024xf32> to vector<8x512xf32>
    %476 = arith.addf %475, %9 : vector<8x512xf32>
    %477 = vector.extract_strided_slice %476 {offsets = [0, 0], sizes = [8, 128], strides = [1, 1]} : vector<8x512xf32> to vector<8x128xf32>
    %cst_136 = arith.constant 5.000000e-01 : f32
    %478 = vector.broadcast %cst_136 : f32 to vector<8x128xf32>
    %479 = arith.mulf %478, %477 : vector<8x128xf32>
    %480 = math.tanh %479 : vector<8x128xf32>
    %cst_137 = arith.constant 5.000000e-01 : f32
    %481 = vector.broadcast %cst_137 : f32 to vector<8x128xf32>
    %482 = arith.mulf %481, %480 : vector<8x128xf32>
    %cst_138 = arith.constant 5.000000e-01 : f32
    %483 = vector.broadcast %cst_138 : f32 to vector<8x128xf32>
    %484 = arith.addf %482, %483 : vector<8x128xf32>
    %485 = vector.extract_strided_slice %476 {offsets = [0, 128], sizes = [8, 128], strides = [1, 1]} : vector<8x512xf32> to vector<8x128xf32>
    %cst_139 = arith.constant 5.000000e-01 : f32
    %486 = vector.broadcast %cst_139 : f32 to vector<8x128xf32>
    %487 = arith.mulf %486, %485 : vector<8x128xf32>
    %488 = math.tanh %487 : vector<8x128xf32>
    %cst_140 = arith.constant 5.000000e-01 : f32
    %489 = vector.broadcast %cst_140 : f32 to vector<8x128xf32>
    %490 = arith.mulf %489, %488 : vector<8x128xf32>
    %cst_141 = arith.constant 5.000000e-01 : f32
    %491 = vector.broadcast %cst_141 : f32 to vector<8x128xf32>
    %492 = arith.addf %490, %491 : vector<8x128xf32>
    %493 = vector.extract_strided_slice %476 {offsets = [0, 256], sizes = [8, 128], strides = [1, 1]} : vector<8x512xf32> to vector<8x128xf32>
    %494 = math.tanh %493 : vector<8x128xf32>
    %495 = vector.extract_strided_slice %476 {offsets = [0, 384], sizes = [8, 128], strides = [1, 1]} : vector<8x512xf32> to vector<8x128xf32>
    %cst_142 = arith.constant 5.000000e-01 : f32
    %496 = vector.broadcast %cst_142 : f32 to vector<8x128xf32>
    %497 = arith.mulf %496, %495 : vector<8x128xf32>
    %498 = math.tanh %497 : vector<8x128xf32>
    %cst_143 = arith.constant 5.000000e-01 : f32
    %499 = vector.broadcast %cst_143 : f32 to vector<8x128xf32>
    %500 = arith.mulf %499, %498 : vector<8x128xf32>
    %cst_144 = arith.constant 5.000000e-01 : f32
    %501 = vector.broadcast %cst_144 : f32 to vector<8x128xf32>
    %502 = arith.addf %500, %501 : vector<8x128xf32>
    %503 = arith.mulf %492, %434 : vector<8x128xf32>
    %504 = arith.mulf %484, %494 : vector<8x128xf32>
    %505 = arith.addf %503, %504 : vector<8x128xf32>
    %506 = math.tanh %505 : vector<8x128xf32>
    %507 = arith.mulf %502, %506 : vector<8x128xf32>
    %508 = vector.extract_strided_slice %6 {offsets = [56, 0], sizes = [8, 512], strides = [1, 1]} : vector<64x512xf32> to vector<8x512xf32>
    %509 = vector.extract_strided_slice %474 {offsets = [0, 0], sizes = [8, 512], strides = [1, 1]} : vector<8x1024xf32> to vector<8x512xf32>
    %510 = arith.addf %508, %509 : vector<8x512xf32>
    %511 = vector.extract_strided_slice %510 {offsets = [0, 0], sizes = [8, 128], strides = [1, 1]} : vector<8x512xf32> to vector<8x128xf32>
    %cst_145 = arith.constant 5.000000e-01 : f32
    %512 = vector.broadcast %cst_145 : f32 to vector<8x128xf32>
    %513 = arith.mulf %512, %511 : vector<8x128xf32>
    %514 = math.tanh %513 : vector<8x128xf32>
    %cst_146 = arith.constant 5.000000e-01 : f32
    %515 = vector.broadcast %cst_146 : f32 to vector<8x128xf32>
    %516 = arith.mulf %515, %514 : vector<8x128xf32>
    %cst_147 = arith.constant 5.000000e-01 : f32
    %517 = vector.broadcast %cst_147 : f32 to vector<8x128xf32>
    %518 = arith.addf %516, %517 : vector<8x128xf32>
    %519 = vector.extract_strided_slice %510 {offsets = [0, 128], sizes = [8, 128], strides = [1, 1]} : vector<8x512xf32> to vector<8x128xf32>
    %cst_148 = arith.constant 5.000000e-01 : f32
    %520 = vector.broadcast %cst_148 : f32 to vector<8x128xf32>
    %521 = arith.mulf %520, %519 : vector<8x128xf32>
    %522 = math.tanh %521 : vector<8x128xf32>
    %cst_149 = arith.constant 5.000000e-01 : f32
    %523 = vector.broadcast %cst_149 : f32 to vector<8x128xf32>
    %524 = arith.mulf %523, %522 : vector<8x128xf32>
    %cst_150 = arith.constant 5.000000e-01 : f32
    %525 = vector.broadcast %cst_150 : f32 to vector<8x128xf32>
    %526 = arith.addf %524, %525 : vector<8x128xf32>
    %527 = vector.extract_strided_slice %510 {offsets = [0, 256], sizes = [8, 128], strides = [1, 1]} : vector<8x512xf32> to vector<8x128xf32>
    %528 = math.tanh %527 : vector<8x128xf32>
    %529 = vector.extract_strided_slice %510 {offsets = [0, 384], sizes = [8, 128], strides = [1, 1]} : vector<8x512xf32> to vector<8x128xf32>
    %cst_151 = arith.constant 5.000000e-01 : f32
    %530 = vector.broadcast %cst_151 : f32 to vector<8x128xf32>
    %531 = arith.mulf %530, %529 : vector<8x128xf32>
    %532 = math.tanh %531 : vector<8x128xf32>
    %cst_152 = arith.constant 5.000000e-01 : f32
    %533 = vector.broadcast %cst_152 : f32 to vector<8x128xf32>
    %534 = arith.mulf %533, %532 : vector<8x128xf32>
    %cst_153 = arith.constant 5.000000e-01 : f32
    %535 = vector.broadcast %cst_153 : f32 to vector<8x128xf32>
    %536 = arith.addf %534, %535 : vector<8x128xf32>
    %537 = arith.mulf %526, %468 : vector<8x128xf32>
    %538 = arith.mulf %518, %528 : vector<8x128xf32>
    %539 = arith.addf %537, %538 : vector<8x128xf32>
    %540 = math.tanh %539 : vector<8x128xf32>
    %541 = arith.mulf %536, %540 : vector<8x128xf32>
    %542 = arith.truncf %541 : vector<8x128xf32> to vector<8x128xbf16>
    %543 = arith.truncf %507 : vector<8x128xf32> to vector<8x128xbf16>
    %544 = tpu.concatenate %542, %543 in 1 : vector<8x128xbf16>, vector<8x128xbf16> -> vector<8x256xbf16>
    %cst_154 = arith.constant dense<0.000000e+00> : vector<8x1024xf32>
    %545 = tpu.matmul %544, %1, %cst_154 {dimension_numbers = #tpu.dot_dimension_numbers<[1], [0], [0], [1], [0, 0, 1, 1], [], []>} : vector<8x256xbf16>, vector<256x1024xbf16>, vector<8x1024xf32> -> vector<8x1024xf32>
    %546 = vector.extract_strided_slice %545 {offsets = [0, 512], sizes = [8, 512], strides = [1, 1]} : vector<8x1024xf32> to vector<8x512xf32>
    %547 = arith.addf %546, %9 : vector<8x512xf32>
    %548 = vector.extract_strided_slice %547 {offsets = [0, 0], sizes = [8, 128], strides = [1, 1]} : vector<8x512xf32> to vector<8x128xf32>
    %cst_155 = arith.constant 5.000000e-01 : f32
    %549 = vector.broadcast %cst_155 : f32 to vector<8x128xf32>
    %550 = arith.mulf %549, %548 : vector<8x128xf32>
    %551 = math.tanh %550 : vector<8x128xf32>
    %cst_156 = arith.constant 5.000000e-01 : f32
    %552 = vector.broadcast %cst_156 : f32 to vector<8x128xf32>
    %553 = arith.mulf %552, %551 : vector<8x128xf32>
    %cst_157 = arith.constant 5.000000e-01 : f32
    %554 = vector.broadcast %cst_157 : f32 to vector<8x128xf32>
    %555 = arith.addf %553, %554 : vector<8x128xf32>
    %556 = vector.extract_strided_slice %547 {offsets = [0, 128], sizes = [8, 128], strides = [1, 1]} : vector<8x512xf32> to vector<8x128xf32>
    %cst_158 = arith.constant 5.000000e-01 : f32
    %557 = vector.broadcast %cst_158 : f32 to vector<8x128xf32>
    %558 = arith.mulf %557, %556 : vector<8x128xf32>
    %559 = math.tanh %558 : vector<8x128xf32>
    %cst_159 = arith.constant 5.000000e-01 : f32
    %560 = vector.broadcast %cst_159 : f32 to vector<8x128xf32>
    %561 = arith.mulf %560, %559 : vector<8x128xf32>
    %cst_160 = arith.constant 5.000000e-01 : f32
    %562 = vector.broadcast %cst_160 : f32 to vector<8x128xf32>
    %563 = arith.addf %561, %562 : vector<8x128xf32>
    %564 = vector.extract_strided_slice %547 {offsets = [0, 256], sizes = [8, 128], strides = [1, 1]} : vector<8x512xf32> to vector<8x128xf32>
    %565 = math.tanh %564 : vector<8x128xf32>
    %566 = vector.extract_strided_slice %547 {offsets = [0, 384], sizes = [8, 128], strides = [1, 1]} : vector<8x512xf32> to vector<8x128xf32>
    %cst_161 = arith.constant 5.000000e-01 : f32
    %567 = vector.broadcast %cst_161 : f32 to vector<8x128xf32>
    %568 = arith.mulf %567, %566 : vector<8x128xf32>
    %569 = math.tanh %568 : vector<8x128xf32>
    %cst_162 = arith.constant 5.000000e-01 : f32
    %570 = vector.broadcast %cst_162 : f32 to vector<8x128xf32>
    %571 = arith.mulf %570, %569 : vector<8x128xf32>
    %cst_163 = arith.constant 5.000000e-01 : f32
    %572 = vector.broadcast %cst_163 : f32 to vector<8x128xf32>
    %573 = arith.addf %571, %572 : vector<8x128xf32>
    %574 = arith.mulf %563, %505 : vector<8x128xf32>
    %575 = arith.mulf %555, %565 : vector<8x128xf32>
    %576 = arith.addf %574, %575 : vector<8x128xf32>
    %577 = math.tanh %576 : vector<8x128xf32>
    %578 = arith.mulf %573, %577 : vector<8x128xf32>
    %c0_164 = arith.constant 0 : index
    %c0_165 = arith.constant 0 : index
    %579 = vector.load %arg5[%c0_164, %c0_165] : memref<128x128xf32, #tpu.memory_space<vmem>>, vector<128x128xf32>
    %cst_166 = arith.constant dense<0.000000e+00> : vector<8x128xf32>
    %580 = tpu.matmul %578, %579, %cst_166 {dimension_numbers = #tpu.dot_dimension_numbers<[1], [0], [0], [1], [0, 0, 1, 1], [], []>} : vector<8x128xf32>, vector<128x128xf32>, vector<8x128xf32> -> vector<8x128xf32>
    %c0_167 = arith.constant 0 : index
    %c0_168 = arith.constant 0 : index
    %581 = vector.load %arg6[%c0_167, %c0_168] : memref<1x128xf32, #tpu.memory_space<vmem>>, vector<1x128xf32>
    %582 = vector.broadcast %581 : vector<1x128xf32> to vector<8x128xf32>
    %583 = arith.addf %580, %582 : vector<8x128xf32>
    %cst_169 = arith.constant dense<0xFF800000> : vector<8xf32>
    %584 = vector.multi_reduction <maximumf>, %583, %cst_169 [1] : vector<8x128xf32> to vector<8xf32>
    %585 = vector.shape_cast %584 : vector<8xf32> to vector<8x1xf32>
    %586 = vector.broadcast %585 : vector<8x1xf32> to vector<8x128xf32>
    %587 = arith.subf %583, %586 : vector<8x128xf32>
    %588 = math.exp %587 : vector<8x128xf32>
    %cst_170 = arith.constant dense<0.000000e+00> : vector<8xf32>
    %589 = vector.multi_reduction <add>, %588, %cst_170 [1] : vector<8x128xf32> to vector<8xf32>
    %590 = vector.shape_cast %589 : vector<8xf32> to vector<8x1xf32>
    %591 = math.log %590 : vector<8x1xf32>
    %592 = vector.broadcast %591 : vector<8x1xf32> to vector<8x128xf32>
    %593 = arith.subf %587, %592 : vector<8x128xf32>
    %c0_171 = arith.constant 0 : index
    %c0_172 = arith.constant 0 : index
    %594 = vector.load %arg7[%c0_171, %c0_172] : memref<8x128xf32, #tpu.memory_space<vmem>>, vector<8x128xf32>
    tpu.vector_store %arg7[%c0_171, %c0_172], %593 {strides = array<i32>} : memref<8x128xf32, #tpu.memory_space<vmem>>, vector<8x128xf32>,
    return
  }
}

</mosaic_0001>

<bundles_post_ra>
// kernel: tpu_custom_call.1
= control target key start
LH: loop header
LB: loop body
LE: loop exit
PB: predicated region body
PF: predicated region fallthrough
CT: control target
= control target key end

     0   :  { %12 = vsyncpa [#allocation3], 0  ;;  %s4917_s0 = inlined_call_operand.vmem [shape: bf16[64,28], index: 0, kind: input, shape index: {}]   ;;  %s4918_s1 = inlined_call_operand.hbm [shape: bf16[28,512], index: 1, kind: input, shape index: {}]   ;;  %s4919_s2 = inlined_call_operand.vmem [shape: f32[1,512], index: 2, kind: input, shape index: {}]   ;;  %s4920_s3 = inlined_call_operand.hbm [shape: bf16[256,1024], index: 3, kind: input, shape index: {}]   ;;  %s4921_s4 = inlined_call_operand.vmem [shape: f32[1,512], index: 4, kind: input, shape index: {}]   ;;  %s4922_s5 = inlined_call_operand.hbm [shape: f32[128,128], index: 5, kind: input, shape index: {}]   ;;  %s4923_s6 = inlined_call_operand.vmem [shape: f32[1,128], index: 6, kind: input, shape index: {}]   ;;  %s4924_s7 = inlined_call_operand.hbm [shape: f32[8,128], index: 7, kind: output, shape index: {}]  }
   0x1   :  { %13 = vsyncpa [#allocation6], 0 }
   0x2   :  { %14 = vsyncpa [#allocation4], 0  ;;  %s3320_s24 = smov [#allocation5]  }
   0x3   :  { %s36_s25 = sshll.u32 %s3320_s24, 4  ;;  %s37_s25 = int_to_ptr.vmem [resolvable:$true] %s36_s25 }
   0x4   :  { %s3242_s26 = scalar_lea.vmem %s37_s25, 16384  ;;  %p3247_p1 = scmp.lt.s32.totalorder %s37_s25, %s37_s25 }
   0x5   :  { %p3243_p0 = scmp.ne.s32.totalorder %s37_s25, %s3242_s26  ;;  %p3248_p2 = scmp.lt.s32.totalorder %s3242_s26, %s3242_s26 }
   0x7   :  { %p3249_p3 = por %p3248_p2, %p3247_p1 }
   0x9   :  { %p3250_p4 = pnand %p3249_p3, %p3243_p0 }
   0xb   :  { %3253 = shalt.err (!%p3250_p4)
}
   0xc   :  { %s3321_s27 = smov 512   ;;  %s3322_s28 = smov 32  }
   0xd   :  { %42 = dma.hbm_to_vmem [thread:$0]  %s4920_s3, 16384, %s37_s25, [#allocation6], %s3321_s27, %s3321_s27, %s3322_s28  }
   0xe   :  { %s3323_s8 = smov [#allocation2]  }
   0xf   :  { %s22_s9 = sshll.u32 %s3323_s8, 4  ;;  %s23_s9 = int_to_ptr.vmem [resolvable:$true] %s22_s9 }
  0x10   :  { %s3262_s10 = scalar_lea.vmem %s23_s9, 1024  ;;  %p3267_p6 = scmp.lt.s32.totalorder %s23_s9, %s23_s9 }
  0x11   :  { %p3263_p5 = scmp.ne.s32.totalorder %s23_s9, %s3262_s10  ;;  %p3268_p7 = scmp.lt.s32.totalorder %s3262_s10, %s3262_s10 }
  0x13   :  { %p3269_p8 = por %p3268_p7, %p3267_p6 }
  0x15   :  { %p3270_p9 = pnand %p3269_p8, %p3263_p5 }
  0x17   :  { %3273 = shalt.err (!%p3270_p9)
}
  0x18   :  { %s3324_s11 = smov 256   ;;  %s3325_s12 = smov 16  }
  0x19   :  { %28 = dma.hbm_to_vmem [thread:$0]  %s4918_s1, 1024, %s23_s9, [#allocation3], %s3324_s11, %s3324_s11, %s3325_s12  }
  0x1a   :  { %s3326_s15 = smov [#allocation7]  }
  0x1b   :  { %s50_s16 = sshll.u32 %s3326_s15, 4  ;;  %s51_s16 = int_to_ptr.vmem [resolvable:$true] %s50_s16 }
  0x1c   :  { %s3282_s3 = scalar_lea.vmem %s51_s16, 2048  ;;  %p3287_p11 = scmp.lt.s32.totalorder %s51_s16, %s51_s16 }
  0x1d   :  { %p3283_p10 = scmp.ne.s32.totalorder %s51_s16, %s3282_s3  ;;  %p3288_p12 = scmp.lt.s32.totalorder %s3282_s3, %s3282_s3 }
  0x1f   :  { %p3289_p13 = por %p3288_p12, %p3287_p11 }
  0x21   :  { %p3290_p0 = pnand %p3289_p13, %p3283_p10 }
  0x23   :  { %3293 = shalt.err (!%p3290_p0)
}
  0x24   :  { %s3327_s17 = smov 128   ;;  %s3328_s18 = smov 8  }
  0x25   :  { %56 = dma.hbm_to_vmem [thread:$0]  %s4922_s5, 2048, %s51_s16, [#allocation6], %s3327_s17, %s3327_s17, %s3328_s18  }
  0x26   :  { %3314 = dma.done.wait [#allocation3], 1024  }
  0x27   :  { %3315 = vsyncadd [#allocation3], 4294966272 }
  0x28   :  { %3316 = dma.done.wait [#allocation6], 18432  }
  0x29   :  { %3317 = vsyncadd [#allocation6], 4294948864  ;;  %v4935_v0 = vmov 0   ;;  %vm304_vm0 = vcmask 1045504   ;;  %v3060_v6 = vld [vmem:[#allocation2 + $0x4] ss:$16 sps:$4 sm:$0xff]  }
  0x2a   :  { %349 = vmatprep.mubr.bf16.mxu0 %v4935_v0  ;;  %422 = vmatprep.mubr.bf16.mxu1 %v4935_v0  ;;  %v3054_v1 = vld [vmem:[#allocation2 + $0x24] ss:$16 sps:$4 sm:$0x3f]   ;;  %v3056_v2 = vld [vmem:[#allocation2 + $0x20] ss:$16 sps:$4 sm:$0x3f]  }
  0x2b   :  { %2850 = vmatprep.subr.msk.bf16.mxu0 %vm304_vm0, %v3054_v1  ;;  %v3057_v3 = vld [vmem:[#allocation2 + $0x2c] ss:$16 sps:$4 sm:$0x3f]   ;;  %v3059_v4 = vld [vmem:[#allocation2 + $0x28] ss:$16 sps:$4 sm:$0x3f]  }
  0x2c   :  { %v306_v5 = vsel %vm304_vm0, %v3056_v2, 0  ;;  %2855 = vmatprep.subr.msk.bf16.mxu1 %vm304_vm0, %v3057_v3  ;;  %v312_v7 = vsel %vm304_vm0, %v3059_v4, 0  ;;  %v3062_v8 = vld [vmem:[#allocation2] ss:$16 sps:$4 sm:$0xff]   ;;  %v3063_v9 = vld [vmem:[#allocation2 + $0xc] ss:$16 sps:$4 sm:$0xff]  }
  0x2d   :  { %330 = vmatpush1.bf16.msra.mxu0 %v306_v5  ;;  %403 = vmatpush1.bf16.msra.mxu1 %v312_v7  ;;  %v3065_v10 = vld [vmem:[#allocation2 + $0x8] ss:$16 sps:$4 sm:$0xff]   ;;  %v3066_v11 = vld [vmem:[%s4917_s0] sm:$0xff]   ;;  %vm291_vm1 = vcmask 228352   ;;  %vm3331_vm2 = vmmov 0   ;;  %s3332_s30 = smov [#allocation8]  }
  0x2e   :  { %331 = vmatprep.subr.bf16.mxu0 %v3060_v6  ;;  %v133_v12 = vld [vmem:[#allocation5 + $0x1c0] sm:$0xff]  ;;  %404 = vmatprep.subr.bf16.mxu1 %v3063_v9  ;;  %v134_v14 = vld [vmem:[#allocation5 + $0x1c8] sm:$0xff]  ;;  %s2828_s8 = sshll.u32 %s3332_s30, 4  ;;  %s2829_s8 = int_to_ptr.vmem [resolvable:$true] %s2828_s8 }
  0x2f   :  { %v137_v13 = vld [vmem:[#allocation5 + $0x1e0] sm:$0xff]  ;;  %v138_v15 = vld [vmem:[#allocation5 + $0x1e8] sm:$0xff]  ;;  %p3299_p2 = scmp.lt.s32.totalorder %s2829_s8, %s2829_s8 }
  0x30   :  { %v3387_v16 = vcombine.high %v133_v12, %v137_v13  ;;  %v3389_v17 = vcombine.high %v134_v14, %v138_v15  ;;  %v3391_v18 = vcombine.low %v133_v12, %v137_v13  ;;  %v125_v19 = vld [vmem:[#allocation5 + $0x180] sm:$0xff]  ;;  %v126_v21 = vld [vmem:[#allocation5 + $0x188] sm:$0xff]  ;;  %v3393_v22 = vcombine.low %v134_v14, %v138_v15 }
  0x31   :  { %332 = vmatpush1.bf16.msra.mxu0 %v3062_v8  ;;  %v129_v20 = vld [vmem:[#allocation5 + $0x1a0] sm:$0xff]  ;;  %405 = vmatpush1.bf16.msra.mxu1 %v3065_v10  ;;  %v130_v24 = vld [vmem:[#allocation5 + $0x1a8] sm:$0xff] }
  0x32   :  { %5225 = vst [vmem:[#allocation12_spill] sm:$0xff] %v3387_v16  ;;  %5226 = vst [vmem:[#allocation13_spill] sm:$0xff] %v3389_v17  ;;  %v3395_v23 = vcombine.high %v125_v19, %v129_v20  ;;  %1144 = vmatprep.subr.bf16.mxu0 %v3387_v16  ;;  %1185 = vmatprep.subr.bf16.mxu1 %v3389_v17  ;;  %v3399_v25 = vcombine.high %v126_v21, %v130_v24  ;;  %v117_v26 = vld [vmem:[#allocation5 + $0x140] sm:$0xff]  ;;  %v118_v28 = vld [vmem:[#allocation5 + $0x148] sm:$0xff] }
  0x33   :  { %5227 = vst [vmem:[#allocation14_spill] sm:$0xff] %v3391_v18  ;;  %5228 = vst [vmem:[#allocation15_spill] sm:$0xff] %v3393_v22  ;;  %v121_v27 = vld [vmem:[#allocation5 + $0x160] sm:$0xff]  ;;  %v122_v29 = vld [vmem:[#allocation5 + $0x168] sm:$0xff]  ;;  %v3404_v30 = vcombine.low %v125_v19, %v129_v20  ;;  %v3408_v32 = vcombine.low %v126_v21, %v130_v24 }
  0x34   :  { %5229 = vst [vmem:[#allocation16_spill] sm:$0xff] %v3395_v23  ;;  %5230 = vst [vmem:[#allocation17_spill] sm:$0xff] %v3399_v25  ;;  %2851 = vmatmul.mubr.msk.bf16.vlgmr.msra.gmra.mxu0 %vm291_vm1, %v3066_v11  ;;  %2856 = vmatmul.mubr.msk.bf16.vlgmr.msra.gmra.mxu1 %vm291_vm1, %v3066_v11  ;;  %v109_v31 = vld [vmem:[#allocation5 + $0x100] sm:$0xff]  ;;  %v3410_v33 = vcombine.high %v117_v26, %v121_v27  ;;  %v110_v35 = vld [vmem:[#allocation5 + $0x108] sm:$0xff]  ;;  %v3413_v36 = vcombine.high %v118_v28, %v122_v29 }
  0x35   :  { %1145 = vmatpush1.bf16.msra.mxu0 %v3391_v18  ;;  %5231 = vst [vmem:[#allocation18_spill] sm:$0xff] %v3404_v30  ;;  %1186 = vmatpush1.bf16.msra.mxu1 %v3393_v22  ;;  %5232 = vst [vmem:[#allocation19_spill] sm:$0xff] %v3408_v32  ;;  %v113_v34 = vld [vmem:[#allocation5 + $0x120] sm:$0xff]  ;;  %v114_v37 = vld [vmem:[#allocation5 + $0x128] sm:$0xff]  ;;  %v3418_v38 = vcombine.low %v117_v26, %v121_v27  ;;  %v3422_v39 = vcombine.low %v118_v28, %v122_v29 }
  0x36   :  { %1146 = vmatprep.subr.bf16.mxu0 %v3395_v23  ;;  %5233 = vst [vmem:[#allocation20_spill] sm:$0xff] %v3410_v33  ;;  %1187 = vmatprep.subr.bf16.mxu1 %v3399_v25  ;;  %5234 = vst [vmem:[#allocation21_spill] sm:$0xff] %v3413_v36  ;;  %v3424_v40 = vcombine.high %v109_v31, %v113_v34  ;;  %v3427_v41 = vcombine.high %v110_v35, %v114_v37  ;;  %v101_v42 = vld [vmem:[#allocation5 + $0xc0] sm:$0xff]  ;;  %v102_v44 = vld [vmem:[#allocation5 + $0xc8] sm:$0xff] }
  0x37   :  { %359 = vmatprep.mubr.bf16.mxu0 %v4935_v0  ;;  %432 = vmatprep.mubr.bf16.mxu1 %v4935_v0  ;;  %5235 = vst [vmem:[#allocation22_spill] sm:$0xff] %v3418_v38  ;;  %5236 = vst [vmem:[#allocation23_spill] sm:$0xff] %v3422_v39  ;;  %v105_v43 = vld [vmem:[#allocation5 + $0xe0] sm:$0xff]  ;;  %v106_v45 = vld [vmem:[#allocation5 + $0xe8] sm:$0xff]  ;;  %v3430_v46 = vcombine.low %v109_v31, %v113_v34  ;;  %v3434_v47 = vcombine.low %v110_v35, %v114_v37 }
  0x38   :  { %5237 = vst [vmem:[#allocation24_spill] sm:$0xff] %v3424_v40  ;;  %5238 = vst [vmem:[#allocation25_spill] sm:$0xff] %v3427_v41  ;;  %v3436_v48 = vcombine.high %v101_v42, %v105_v43  ;;  %v3439_v49 = vcombine.high %v102_v44, %v106_v45  ;;  %v3442_v50 = vcombine.low %v101_v42, %v105_v43  ;;  %v93_v52 = vld [vmem:[#allocation5 + $0x80] sm:$0xff]  ;;  %v94_v54 = vld [vmem:[#allocation5 + $0x88] sm:$0xff] }
  0x39   :  { %1147 = vmatpush1.bf16.msra.mxu0 %v3404_v30  ;;  %1188 = vmatpush1.bf16.msra.mxu1 %v3408_v32  ;;  %5239 = vst [vmem:[#allocation26_spill] sm:$0xff] %v3430_v46  ;;  %5240 = vst [vmem:[#allocation27_spill] sm:$0xff] %v3434_v47  ;;  %v3446_v51 = vcombine.low %v102_v44, %v106_v45  ;;  %v97_v53 = vld [vmem:[#allocation5 + $0xa0] sm:$0xff]  ;;  %v98_v56 = vld [vmem:[#allocation5 + $0xa8] sm:$0xff] }
  0x3a   :  { %1148 = vmatprep.subr.bf16.mxu0 %v3410_v33  ;;  %1189 = vmatprep.subr.bf16.mxu1 %v3413_v36  ;;  %5241 = vst [vmem:[#allocation28_spill] sm:$0xff] %v3436_v48  ;;  %5242 = vst [vmem:[#allocation29_spill] sm:$0xff] %v3439_v49  ;;  %v3451_v55 = vcombine.high %v93_v52, %v97_v53  ;;  %v3453_v57 = vcombine.high %v94_v54, %v98_v56  ;;  %v85_v60 = vld [vmem:[#allocation5 + $0x40] sm:$0xff]  ;;  %v86_v62 = vld [vmem:[#allocation5 + $0x48] sm:$0xff] }
  0x3b   :  { %5243 = vst [vmem:[#allocation30_spill] sm:$0xff] %v3442_v50  ;;  %5244 = vst [vmem:[#allocation31_spill] sm:$0xff] %v3446_v51  ;;  %v3455_v58 = vcombine.low %v93_v52, %v97_v53  ;;  %v3457_v59 = vcombine.low %v94_v54, %v98_v56  ;;  %v89_v61 = vld [vmem:[#allocation5 + $0x60] sm:$0xff]  ;;  %v90_v1 = vld [vmem:[#allocation5 + $0x68] sm:$0xff] }
  0x3c   :  { %5245 = vst [vmem:[#allocation32_spill] sm:$0xff] %v3451_v55  ;;  %5246 = vst [vmem:[#allocation33_spill] sm:$0xff] %v3453_v57  ;;  %v3463_v63 = vcombine.high %v85_v60, %v89_v61  ;;  %v3465_v2 = vcombine.high %v86_v62, %v90_v1  ;;  %v3467_v3 = vcombine.low %v85_v60, %v89_v61  ;;  %v77_v5 = vld [vmem:[#allocation5] sm:$0xff]  ;;  %v78_v7 = vld [vmem:[#allocation5 + $0x8] sm:$0xff] }
  0x3d   :  { %1149 = vmatpush1.bf16.msra.mxu0 %v3418_v38  ;;  %1190 = vmatpush1.bf16.msra.mxu1 %v3422_v39  ;;  %5247 = vst [vmem:[#allocation34_spill] sm:$0xff] %v3455_v58  ;;  %5248 = vst [vmem:[#allocation35_spill] sm:$0xff] %v3457_v59  ;;  %v3470_v4 = vcombine.low %v86_v62, %v90_v1  ;;  %v81_v6 = vld [vmem:[#allocation5 + $0x20] sm:$0xff]  ;;  %v82_v9 = vld [vmem:[#allocation5 + $0x28] sm:$0xff] }
  0x3e   :  { %1150 = vmatprep.subr.bf16.mxu0 %v3424_v40  ;;  %1191 = vmatprep.subr.bf16.mxu1 %v3427_v41  ;;  %5249 = vst [vmem:[#allocation36_spill] sm:$0xff] %v3463_v63  ;;  %5250 = vst [vmem:[#allocation37_spill] sm:$0xff] %v3465_v2  ;;  %v3475_v8 = vcombine.high %v77_v5, %v81_v6  ;;  %v3477_v10 = vcombine.high %v78_v7, %v82_v9  ;;  %v197_v13 = vld [vmem:[#allocation5 + $0x3c0] sm:$0xff]  ;;  %v198_v15 = vld [vmem:[#allocation5 + $0x3c8] sm:$0xff] }
  0x3f   :  { %5251 = vst [vmem:[#allocation38_spill] sm:$0xff] %v3467_v3  ;;  %5252 = vst [vmem:[#allocation39_spill] sm:$0xff] %v3470_v4  ;;  %v3479_v11 = vcombine.low %v77_v5, %v81_v6  ;;  %v3481_v12 = vcombine.low %v78_v7, %v82_v9  ;;  %v201_v14 = vld [vmem:[#allocation5 + $0x3e0] sm:$0xff]  ;;  %v202_v20 = vld [vmem:[#allocation5 + $0x3e8] sm:$0xff] }
  0x40   :  { %5253 = vst [vmem:[#allocation40_spill] sm:$0xff] %v3475_v8  ;;  %5254 = vst [vmem:[#allocation41_spill] sm:$0xff] %v3477_v10  ;;  %v3487_v19 = vcombine.high %v197_v13, %v201_v14  ;;  %v3489_v21 = vcombine.high %v198_v15, %v202_v20  ;;  %v3491_v24 = vcombine.low %v197_v13, %v201_v14  ;;  %v3067_v27 = vld [vmem:[%s4917_s0 + $0x8] sm:$0xff]   ;;  %v189_v28 = vld [vmem:[#allocation5 + $0x380] sm:$0xff] }
  0x41   :  { %1151 = vmatpush1.bf16.msra.mxu0 %v3430_v46  ;;  %1192 = vmatpush1.bf16.msra.mxu1 %v3434_v47  ;;  %5255 = vst [vmem:[#allocation42_spill] sm:$0xff] %v3479_v11  ;;  %5256 = vst [vmem:[#allocation43_spill] sm:$0xff] %v3481_v12  ;;  %v3493_v26 = vcombine.low %v198_v15, %v202_v20  ;;  %v193_v29 = vld [vmem:[#allocation5 + $0x3a0] sm:$0xff]  ;;  %v190_v34 = vld [vmem:[#allocation5 + $0x388] sm:$0xff] }
  0x42   :  { %1152 = vmatprep.subr.bf16.mxu0 %v3436_v48  ;;  %1193 = vmatprep.subr.bf16.mxu1 %v3439_v49  ;;  %5257 = vst [vmem:[#allocation44_spill] sm:$0xff] %v3487_v19  ;;  %5258 = vst [vmem:[#allocation45_spill] sm:$0xff] %v3489_v21  ;;  %v3502_v31 = vcombine.high %v189_v28, %v193_v29  ;;  %v194_v35 = vld [vmem:[#allocation5 + $0x3a8] sm:$0xff]  ;;  %v3507_v42 = vcombine.low %v189_v28, %v193_v29  ;;  %v181_v44 = vld [vmem:[#allocation5 + $0x340] sm:$0xff] }
  0x43   :  { %5259 = vst [vmem:[#allocation46_spill] sm:$0xff] %v3491_v24  ;;  %5260 = vst [vmem:[#allocation47_spill] sm:$0xff] %v3493_v26  ;;  %2852 = vmatmul.mubr.msk.bf16.gmra.mxu0 %vm291_vm1, %v3067_v27  ;;  %v3505_v37 = vcombine.high %v190_v34, %v194_v35  ;;  %v3509_v43 = vcombine.low %v190_v34, %v194_v35  ;;  %2857 = vmatmul.mubr.msk.bf16.gmra.mxu1 %vm291_vm1, %v3067_v27  ;;  %v185_v45 = vld [vmem:[#allocation5 + $0x360] sm:$0xff]  ;;  %v182_v52 = vld [vmem:[#allocation5 + $0x348] sm:$0xff] }
  0x44   :  { %5261 = vst [vmem:[#allocation48_spill] sm:$0xff] %v3502_v31  ;;  %5263 = vst [vmem:[#allocation50_spill] sm:$0xff] %v3507_v42  ;;  %369 = vmatprep.mubr.bf16.mxu0 %v4935_v0  ;;  %v3517_v53 = vcombine.high %v181_v44, %v185_v45  ;;  %v186_v54 = vld [vmem:[#allocation5 + $0x368] sm:$0xff]  ;;  %442 = vmatprep.mubr.bf16.mxu1 %v4935_v0  ;;  %v3522_v60 = vcombine.low %v181_v44, %v185_v45  ;;  %v3068_v62 = vld [vmem:[%s4917_s0 + $0x10] sm:$0xff]  }
  0x45   :  { %1153 = vmatpush1.bf16.msra.mxu0 %v3442_v50  ;;  %1194 = vmatpush1.bf16.msra.mxu1 %v3446_v51  ;;  %5262 = vst [vmem:[#allocation49_spill] sm:$0xff] %v3505_v37  ;;  %5264 = vst [vmem:[#allocation51_spill] sm:$0xff] %v3509_v43  ;;  %v3520_v56 = vcombine.high %v182_v52, %v186_v54  ;;  %v3524_v61 = vcombine.low %v182_v52, %v186_v54  ;;  %v173_v1 = vld [vmem:[#allocation5 + $0x300] sm:$0xff]  ;;  %v174_v7 = vld [vmem:[#allocation5 + $0x308] sm:$0xff] }
  0x46   :  { %1154 = vmatprep.subr.bf16.mxu0 %v3451_v55  ;;  %1195 = vmatprep.subr.bf16.mxu1 %v3453_v57  ;;  %5265 = vst [vmem:[#allocation52_spill] sm:$0xff] %v3517_v53  ;;  %5267 = vst [vmem:[#allocation54_spill] sm:$0xff] %v3522_v60  ;;  %v177_v5 = vld [vmem:[#allocation5 + $0x320] sm:$0xff]  ;;  %v178_v9 = vld [vmem:[#allocation5 + $0x328] sm:$0xff] }
  0x47   :  { %5266 = vst [vmem:[#allocation53_spill] sm:$0xff] %v3520_v56  ;;  %5268 = vst [vmem:[#allocation55_spill] sm:$0xff] %v3524_v61  ;;  %v3533_v6 = vcombine.high %v173_v1, %v177_v5  ;;  %v3536_v13 = vcombine.high %v174_v7, %v178_v9  ;;  %v3538_v14 = vcombine.low %v173_v1, %v177_v5  ;;  %v165_v20 = vld [vmem:[#allocation5 + $0x2c0] sm:$0xff]  ;;  %v166_v28 = vld [vmem:[#allocation5 + $0x2c8] sm:$0xff] }
  0x48   :  { %v3540_v15 = vcombine.low %v174_v7, %v178_v9  ;;  %v169_v27 = vld [vmem:[#allocation5 + $0x2e0] sm:$0xff]  ;;  %v170_v34 = vld [vmem:[#allocation5 + $0x2e8] sm:$0xff]  ;;  %v3069_v52 = vld [vmem:[%s4917_s0 + $0x18] sm:$0xff]  }
  0x49   :  { %1155 = vmatpush1.bf16.msra.mxu0 %v3455_v58  ;;  %1196 = vmatpush1.bf16.msra.mxu1 %v3457_v59  ;;  %5269 = vst [vmem:[#allocation56_spill] sm:$0xff] %v3533_v6  ;;  %5270 = vst [vmem:[#allocation57_spill] sm:$0xff] %v3536_v13  ;;  %v3548_v29 = vcombine.high %v165_v20, %v169_v27  ;;  %v3551_v35 = vcombine.high %v166_v28, %v170_v34  ;;  %v157_v54 = vld [vmem:[#allocation5 + $0x280] sm:$0xff]  ;;  %v158_v5 = vld [vmem:[#allocation5 + $0x288] sm:$0xff] }
  0x4a   :  { %1156 = vmatprep.subr.bf16.mxu0 %v3463_v63  ;;  %1197 = vmatprep.subr.bf16.mxu1 %v3465_v2  ;;  %5271 = vst [vmem:[#allocation58_spill] sm:$0xff] %v3538_v14  ;;  %5272 = vst [vmem:[#allocation59_spill] sm:$0xff] %v3540_v15  ;;  %v3553_v44 = vcombine.low %v165_v20, %v169_v27  ;;  %v3555_v45 = vcombine.low %v166_v28, %v170_v34  ;;  %v162_v7 = vld [vmem:[#allocation5 + $0x2a8] sm:$0xff]  ;;  %v149_v28 = vld [vmem:[#allocation5 + $0x240] sm:$0xff] }
  0x4b   :  { %2853 = vmatmul.mubr.msk.bf16.gmra.mxu0 %vm291_vm1, %v3068_v62  ;;  %2858 = vmatmul.mubr.msk.bf16.gmra.mxu1 %vm291_vm1, %v3068_v62  ;;  %5273 = vst [vmem:[#allocation60_spill] sm:$0xff] %v3548_v29  ;;  %5274 = vst [vmem:[#allocation61_spill] sm:$0xff] %v3551_v35  ;;  %v161_v62 = vld [vmem:[#allocation5 + $0x2a0] sm:$0xff]  ;;  %v3567_v9 = vcombine.high %v158_v5, %v162_v7  ;;  %v3571_v27 = vcombine.low %v158_v5, %v162_v7 }
  0x4c   :  { %379 = vmatprep.mubr.bf16.mxu0 %v4935_v0  ;;  %452 = vmatprep.mubr.bf16.mxu1 %v4935_v0  ;;  %5275 = vst [vmem:[#allocation62_spill] sm:$0xff] %v3553_v44  ;;  %5276 = vst [vmem:[#allocation63_spill] sm:$0xff] %v3555_v45  ;;  %v3564_v1 = vcombine.high %v157_v54, %v161_v62  ;;  %v3569_v20 = vcombine.low %v157_v54, %v161_v62  ;;  %v153_v34 = vld [vmem:[#allocation5 + $0x260] sm:$0xff]  ;;  %v154_v54 = vld [vmem:[#allocation5 + $0x268] sm:$0xff] }
  0x4d   :  { %1157 = vmatpush1.bf16.msra.mxu0 %v3467_v3  ;;  %1198 = vmatpush1.bf16.msra.mxu1 %v3470_v4  ;;  %5278 = vst [vmem:[#allocation65_spill] sm:$0xff] %v3567_v9  ;;  %5280 = vst [vmem:[#allocation67_spill] sm:$0xff] %v3571_v27  ;;  %v141_v7 = vld [vmem:[#allocation5 + $0x200] sm:$0xff] }
  0x4e   :  { %1158 = vmatprep.subr.bf16.mxu0 %v3475_v8  ;;  %1199 = vmatprep.subr.bf16.mxu1 %v3477_v10  ;;  %5277 = vst [vmem:[#allocation64_spill] sm:$0xff] %v3564_v1  ;;  %5279 = vst [vmem:[#allocation66_spill] sm:$0xff] %v3569_v20 }
  0x51   :  { %1159 = vmatpush1.bf16.msra.mxu0 %v3479_v11  ;;  %1200 = vmatpush1.bf16.msra.mxu1 %v3481_v12 }
  0x52   :  { %1160 = vmatprep.subr.bf16.mxu0 %v3487_v19  ;;  %1201 = vmatprep.subr.bf16.mxu1 %v3489_v21 }
  0x53   :  { %2854 = vmatmul.mubr.msk.bf16.gmra.mxu0 %vm291_vm1, %v3069_v52  ;;  %2859 = vmatmul.mubr.msk.bf16.gmra.mxu1 %vm291_vm1, %v3069_v52  ;;  %v3584_v52 = vcombine.low %v149_v28, %v153_v34 }
  0x54   :  { %1176 = vmatprep.mubr.bf16.mxu0 %v4935_v0  ;;  %1217 = vmatprep.mubr.bf16.mxu1 %v4935_v0  ;;  %v146_v0 = vld [vmem:[#allocation5 + $0x228] sm:$0xff] }
  0x55   :  { %1161 = vmatpush2.bf16.msra.mxu0 %v3491_v24  ;;  %1202 = vmatpush2.bf16.msra.mxu1 %v3493_v26  ;;  %5283 = vst [vmem:[#allocation70_spill] sm:$0xff] %v3584_v52 }
  0x56   :  { %1162 = vmatprep.subr.bf16.mxu0 %v3502_v31  ;;  %1203 = vmatprep.subr.bf16.mxu1 %v3505_v37 }
  0x59   :  { %1163 = vmatpush2.bf16.msra.mxu0 %v3507_v42  ;;  %1204 = vmatpush2.bf16.msra.mxu1 %v3509_v43 }
  0x5a   :  { %1164 = vmatprep.subr.bf16.mxu0 %v3517_v53  ;;  %1205 = vmatprep.subr.bf16.mxu1 %v3520_v56 }
  0x5d   :  { %1165 = vmatpush2.bf16.msra.mxu0 %v3522_v60  ;;  %1206 = vmatpush2.bf16.msra.mxu1 %v3524_v61  ;;  %v5304_v60 = vmov 0  }
  0x5e   :  { %1166 = vmatprep.subr.bf16.mxu0 %v3533_v6  ;;  %1207 = vmatprep.subr.bf16.mxu1 %v3536_v13 }
  0x61   :  { %1167 = vmatpush2.bf16.msra.mxu0 %v3538_v14  ;;  %1208 = vmatpush2.bf16.msra.mxu1 %v3540_v15 }
  0x62   :  { %1168 = vmatprep.subr.bf16.mxu0 %v3548_v29  ;;  %1209 = vmatprep.subr.bf16.mxu1 %v3551_v35 }
  0x65   :  { %1169 = vmatpush2.bf16.msra.mxu0 %v3553_v44  ;;  %1210 = vmatpush2.bf16.msra.mxu1 %v3555_v45  ;;  %v150_v45 = vld [vmem:[#allocation5 + $0x248] sm:$0xff]  ;;  %v3579_v44 = vcombine.high %v149_v28, %v153_v34  ;;  %v135_v34 = vld [vmem:[#allocation5 + $0x1d0] sm:$0xff] }
  0x66   :  { %1170 = vmatprep.subr.bf16.mxu0 %v3564_v1  ;;  %1211 = vmatprep.subr.bf16.mxu1 %v3567_v9  ;;  %v3582_v62 = vcombine.high %v150_v45, %v154_v54  ;;  %v3586_v5 = vcombine.low %v150_v45, %v154_v54  ;;  %v139_v54 = vld [vmem:[#allocation5 + $0x1f0] sm:$0xff] }
  0x67   :  { %5281 = vst [vmem:[#allocation68_spill] sm:$0xff] %v3579_v44 }
  0x68   :  { %5282 = vst [vmem:[#allocation69_spill] sm:$0xff] %v3582_v62  ;;  %5284 = vst [vmem:[#allocation71_spill] sm:$0xff] %v3586_v5 }
  0x69   :  { %1171 = vmatpush2.bf16.msra.mxu0 %v3569_v20  ;;  %1212 = vmatpush2.bf16.msra.mxu1 %v3571_v27  ;;  %v145_v20 = vld [vmem:[#allocation5 + $0x220] sm:$0xff]  ;;  %v142_v27 = vld [vmem:[#allocation5 + $0x208] sm:$0xff] }
  0x6a   :  { %1172 = vmatprep.subr.bf16.mxu0 %v3579_v44  ;;  %1213 = vmatprep.subr.bf16.mxu1 %v3582_v62  ;;  %v3592_v9 = vcombine.high %v141_v7, %v145_v20  ;;  %v3594_v1 = vcombine.high %v142_v27, %v146_v0  ;;  %v3596_v28 = vcombine.low %v141_v7, %v145_v20  ;;  %v140_v62 = vld [vmem:[#allocation5 + $0x1f8] sm:$0xff] }
  0x6b   :  { %v3598_v45 = vcombine.low %v142_v27, %v146_v0  ;;  %v3608_v20 = vcombine.low %v135_v34, %v139_v54  ;;  %v215_v27 = vlaneseq }
  0x6c   :  { %5285 = vst [vmem:[#allocation72_spill] sm:$0xff] %v3592_v9  ;;  %5286 = vst [vmem:[#allocation73_spill] sm:$0xff] %v3594_v1 }
  0x6d   :  { %1173 = vmatpush2.bf16.msra.mxu0 %v3584_v52  ;;  %1214 = vmatpush2.bf16.msra.mxu1 %v3586_v5  ;;  %5287 = vst [vmem:[#allocation74_spill] sm:$0xff] %v3596_v28  ;;  %5288 = vst [vmem:[#allocation75_spill] sm:$0xff] %v3598_v45  ;;  %v136_v52 = vld [vmem:[#allocation5 + $0x1d8] sm:$0xff]  ;;  %v3604_v5 = vcombine.high %v135_v34, %v139_v54  ;;  %v3614_v7 = vshrl.u32 %v215_v27, 7 }
  0x6e   :  { %1174 = vmatprep.subr.bf16.mxu0 %v3592_v9  ;;  %1215 = vmatprep.subr.bf16.mxu1 %v3594_v1  ;;  %v3606_v44 = vcombine.high %v136_v52, %v140_v62  ;;  %v3611_v0 = vcombine.low %v136_v52, %v140_v62 }
  0x6f   :  { %5289 = vst [vmem:[#allocation76_spill] sm:$0xff] %v3604_v5  ;;  %5292 = vst [vmem:[#allocation79_spill] sm:$0xff] %v3614_v7  ;;  %v4968_v1 = vsub.s32 1, %v3614_v7  ;;  %v4969_v62 = vsub.s32 2, %v3614_v7  ;;  %v4980_v14 = vsub.s32 3, %v3614_v7 }
  0x70   :  { %5290 = vst [vmem:[#allocation77_spill] sm:$0xff] %v3606_v44  ;;  %5291 = vst [vmem:[#allocation78_spill] sm:$0xff] %v3611_v0 }
  0x71   :  { %1175 = vmatpush2.bf16.msra.mxu0 %v3596_v28  ;;  %1216 = vmatpush2.bf16.msra.mxu1 %v3598_v45  ;;  %v4963_v28 = vsub.s32 0, %v3614_v7  ;;  %v213_v45 = vld [vmem:[%s4919_s2] sm:$0xf]  ;;  %v127_v7 = vld [vmem:[#allocation5 + $0x190] sm:$0xff] }
  0x72   :  { %1226 = vmatprep.subr.bf16.mxu0 %v3604_v5  ;;  %1267 = vmatprep.subr.bf16.mxu1 %v3606_v44  ;;  %v3628_v52 = vrot.slane %v213_v45, %v4968_v1  ;;  %v3633_v44 = vrot.slane %v213_v45, %v4969_v62 }
  0x73   :  { %v3623_v34 = vrot.slane %v213_v45, %v4963_v28 }
  0x74   :  { %5294 = vst [vmem:[#allocation81_spill] sm:$0xff] %v3628_v52  ;;  %5295 = vst [vmem:[#allocation82_spill] sm:$0xff] %v3633_v44 }
  0x75   :  { %5293 = vst [vmem:[#allocation80_spill] sm:$0xff] %v3623_v34 }
  0xf4   :  { %v351_v54 = vpop.f32.mrf.mxu0  ;;  %v424_v29 = vpop.f32.mrf.mxu1 }
  0xf5   :  { %v352_v27 = vadd.f32 %v351_v54, %v3623_v34  ;;  %v425_v15 = vadd.f32 %v424_v29, %v3633_v44  ;;  %v3640_v54 = vrot.slane %v213_v45, %v4980_v14 }
  0xf6   :  { %v353_v5 = vpop.f32.mrf.mxu0  ;;  %v426_v1 = vpop.f32.mrf.mxu1 }
  0xf7   :  { %v485_v9 = vmul.f32 0.5, %v352_v27  ;;  %v354_v35 = vadd.f32 %v353_v5, %v3628_v52  ;;  %5296 = vst [vmem:[#allocation83_spill] sm:$0xff] %v3640_v54  ;;  %v427_v62 = vadd.f32 %v426_v1, %v3640_v54  ;;  %v128_v54 = vld [vmem:[#allocation5 + $0x198] sm:$0xff] }
  0xf9   :  { %3070 = vtanh.f32 %v485_v9  ;;  %v489_v28 = vmul.f32 0.5, %v354_v35  ;;  %v494_v34 = vmul.f32 0.5, %v427_v62  ;;  %v131_v62 = vld [vmem:[#allocation5 + $0x1b0] sm:$0xff] }
  0xfb   :  { %3072 = vtanh.f32 %v489_v28 }
  0xfc   :  { %3074 = vtanh.f32 %v425_v15 }
  0xfd   :  { %3076 = vtanh.f32 %v494_v34  ;;  %v3648_v34 = vcombine.high %v127_v7, %v131_v62 }
  0xff   :  { %5298 = vst [vmem:[#allocation85_spill] sm:$0xff] %v3648_v34 }
 0x106   :  { %v3071_v27 = vpop.eup %3070 }
 0x107   :  { %v487_v13 = vmul.f32 0.5, %v3071_v27  ;;  %v132_v27 = vld [vmem:[#allocation5 + $0x1b8] sm:$0xff] }
 0x108   :  { %v3073_v5 = vpop.eup %3072 }
 0x109   :  { %v488_v52 = vadd.f32 0.5, %v487_v13  ;;  %v491_v9 = vmul.f32 0.5, %v3073_v5  ;;  %v3075_v35 = vpop.eup %3074  ;;  %v3650_v5 = vcombine.high %v128_v54, %v132_v27 }
 0x10a   :  { %v3077_v15 = vpop.eup %3076 }
 0x10b   :  { %v492_v29 = vadd.f32 0.5, %v491_v9  ;;  %v499_v6 = vmul.f32 %v3075_v35, %v488_v52  ;;  %v496_v45 = vmul.f32 0.5, %v3077_v15  ;;  %5299 = vst [vmem:[#allocation86_spill] sm:$0xff] %v3650_v5  ;;  %v119_v52 = vld [vmem:[#allocation5 + $0x150] sm:$0xff]  ;;  %v124_v9 = vld [vmem:[#allocation5 + $0x178] sm:$0xff]  ;;  %v3656_v35 = vcombine.low %v127_v7, %v131_v62 }
 0x10c   :  { %v111_v15 = vld [vmem:[#allocation5 + $0x110] sm:$0xff] }
 0x10d   :  { %v498_v44 = vmul.f32 0.0, %v492_v29  ;;  %v497_v14 = vadd.f32 0.5, %v496_v45  ;;  %5300 = vst [vmem:[#allocation87_spill] sm:$0xff] %v3656_v35  ;;  %v115_v45 = vld [vmem:[#allocation5 + $0x130] sm:$0xff] }
 0x10e   :  { %v3676_v62 = vcombine.high %v111_v15, %v115_v45 }
 0x10f   :  { %v3643_v28 = vadd.f32 %v499_v6, %v498_v44  ;;  %v123_v6 = vld [vmem:[#allocation5 + $0x170] sm:$0xff]  ;;  %v120_v44 = vld [vmem:[#allocation5 + $0x158] sm:$0xff] }
 0x110   :  { %v3664_v29 = vcombine.high %v120_v44, %v124_v9  ;;  %v3670_v7 = vcombine.low %v119_v52, %v123_v6  ;;  %5307 = vst [vmem:[#allocation93_spill] sm:$0xff] %v3676_v62 }
 0x111   :  { %5297 = vst [vmem:[#allocation84_spill] sm:$0xff] %v3643_v28  ;;  %3078 = vtanh.f32 %v3643_v28  ;;  %v116_v28 = vld [vmem:[#allocation5 + $0x138] sm:$0xff] }
 0x112   :  { %5303 = vst [vmem:[#allocation90_spill] sm:$0xff] %v3664_v29  ;;  %5305 = vst [vmem:[#allocation91_spill] sm:$0xff] %v3670_v7 }
 0x11e   :  { %v3079_v1 = vpop.eup %3078 }
 0x11f   :  { %v502_v61 = vmul.f32 %v3079_v1, %v497_v14  ;;  %v3662_v14 = vcombine.high %v119_v52, %v123_v6  ;;  %v112_v1 = vld [vmem:[#allocation5 + $0x118] sm:$0xff]  ;;  %v3682_v52 = vcombine.low %v111_v15, %v115_v45 }
 0x120   :  { %v3684_v6 = vcombine.low %v112_v1, %v116_v28 }
 0x121   :  { %v3646_v13 = vpack.c.bf16 %v502_v61, %v502_v61  ;;  %v3658_v61 = vcombine.low %v128_v54, %v132_v27  ;;  %5302 = vst [vmem:[#allocation89_spill] sm:$0xff] %v3662_v14  ;;  %v3672_v54 = vcombine.low %v120_v44, %v124_v9  ;;  %v3678_v27 = vcombine.high %v112_v1, %v116_v28 }
 0x122   :  { %5309 = vst [vmem:[#allocation95_spill] sm:$0xff] %v3682_v52  ;;  %5310 = vst [vmem:[#allocation96_spill] sm:$0xff] %v3684_v6 }
 0x123   :  { %1177 = vmatmul.mubr.bf16.vlgmr.msra.gmra.mxu0 %v3646_v13  ;;  %1218 = vmatmul.mubr.bf16.vlgmr.msra.gmra.mxu1 %v3646_v13  ;;  %5301 = vst [vmem:[#allocation88_spill] sm:$0xff] %v3658_v61  ;;  %5306 = vst [vmem:[#allocation92_spill] sm:$0xff] %v3672_v54 }
 0x124   :  { %1227 = vmatpush1.bf16.msra.mxu0 %v3608_v20  ;;  %1268 = vmatpush1.bf16.msra.mxu1 %v3611_v0  ;;  %5308 = vst [vmem:[#allocation94_spill] sm:$0xff] %v3678_v27  ;;  %v104_v0 = vld [vmem:[#allocation5 + $0xd8] sm:$0xff] }
 0x125   :  { %1228 = vmatprep.subr.bf16.mxu0 %v3648_v34  ;;  %1269 = vmatprep.subr.bf16.mxu1 %v3650_v5  ;;  %v103_v5 = vld [vmem:[#allocation5 + $0xd0] sm:$0xff] }
 0x126   :  { %1258 = vmatprep.mubr.bf16.mxu0 %v5304_v60  ;;  %1299 = vmatprep.mubr.bf16.mxu1 %v5304_v60  ;;  %v107_v34 = vld [vmem:[#allocation5 + $0xf0] sm:$0xff]  ;;  %v108_v60 = vld [vmem:[#allocation5 + $0xf8] sm:$0xff] }
 0x127   :  { %v3688_v44 = vcombine.high %v103_v5, %v107_v34  ;;  %v3690_v9 = vcombine.high %v104_v0, %v108_v60  ;;  %v3694_v15 = vcombine.low %v103_v5, %v107_v34  ;;  %v3696_v28 = vcombine.low %v104_v0, %v108_v60 }
 0x128   :  { %1229 = vmatpush1.bf16.msra.mxu0 %v3656_v35  ;;  %1270 = vmatpush1.bf16.msra.mxu1 %v3658_v61  ;;  %v96_v61 = vld [vmem:[#allocation5 + $0x98] sm:$0xff] }
 0x129   :  { %1230 = vmatprep.subr.bf16.mxu0 %v3662_v14  ;;  %1271 = vmatprep.subr.bf16.mxu1 %v3664_v29  ;;  %5311 = vst [vmem:[#allocation97_spill] sm:$0xff] %v3688_v44  ;;  %5312 = vst [vmem:[#allocation98_spill] sm:$0xff] %v3690_v9  ;;  %v95_v29 = vld [vmem:[#allocation5 + $0x90] sm:$0xff]  ;;  %v100_v35 = vld [vmem:[#allocation5 + $0xb8] sm:$0xff] }
 0x12a   :  { %v99_v14 = vld [vmem:[#allocation5 + $0xb0] sm:$0xff]  ;;  %5313 = vst [vmem:[#allocation99_spill] sm:$0xff] %v3694_v15  ;;  %5314 = vst [vmem:[#allocation100_spill] sm:$0xff] %v3696_v28  ;;  %v3702_v1 = vcombine.high %v96_v61, %v100_v35  ;;  %v3708_v0 = vcombine.low %v96_v61, %v100_v35 }
 0x12b   :  { %v3700_v45 = vcombine.high %v95_v29, %v99_v14  ;;  %v3706_v34 = vcombine.low %v95_v29, %v99_v14 }
 0x12c   :  { %1231 = vmatpush1.bf16.msra.mxu0 %v3670_v7  ;;  %1272 = vmatpush1.bf16.msra.mxu1 %v3672_v54  ;;  %5316 = vst [vmem:[#allocation102_spill] sm:$0xff] %v3702_v1  ;;  %v88_v54 = vld [vmem:[#allocation5 + $0x58] sm:$0xff]  ;;  %5318 = vst [vmem:[#allocation104_spill] sm:$0xff] %v3708_v0 }
 0x12d   :  { %1232 = vmatprep.subr.bf16.mxu0 %v3676_v62  ;;  %1273 = vmatprep.subr.bf16.mxu1 %v3678_v27  ;;  %5315 = vst [vmem:[#allocation101_spill] sm:$0xff] %v3700_v45  ;;  %v87_v27 = vld [vmem:[#allocation5 + $0x50] sm:$0xff]  ;;  %v92_v7 = vld [vmem:[#allocation5 + $0x78] sm:$0xff]  ;;  %5317 = vst [vmem:[#allocation103_spill] sm:$0xff] %v3706_v34 }
 0x12e   :  { %v91_v62 = vld [vmem:[#allocation5 + $0x70] sm:$0xff]  ;;  %v3714_v60 = vcombine.high %v88_v54, %v92_v7  ;;  %v3720_v35 = vcombine.low %v88_v54, %v92_v7 }
 0x12f   :  { %v3712_v5 = vcombine.high %v87_v27, %v91_v62  ;;  %v3718_v14 = vcombine.low %v87_v27, %v91_v62 }
 0x130   :  { %1233 = vmatpush1.bf16.msra.mxu0 %v3682_v52  ;;  %1274 = vmatpush1.bf16.msra.mxu1 %v3684_v6  ;;  %5320 = vst [vmem:[#allocation106_spill] sm:$0xff] %v3714_v60  ;;  %v80_v6 = vld [vmem:[#allocation5 + $0x18] sm:$0xff]  ;;  %5322 = vst [vmem:[#allocation108_spill] sm:$0xff] %v3720_v35 }
 0x131   :  { %1234 = vmatprep.subr.bf16.mxu0 %v3688_v44  ;;  %1275 = vmatprep.subr.bf16.mxu1 %v3690_v9  ;;  %5319 = vst [vmem:[#allocation105_spill] sm:$0xff] %v3712_v5  ;;  %v79_v9 = vld [vmem:[#allocation5 + $0x10] sm:$0xff]  ;;  %v84_v52 = vld [vmem:[#allocation5 + $0x38] sm:$0xff]  ;;  %5321 = vst [vmem:[#allocation107_spill] sm:$0xff] %v3718_v14 }
 0x132   :  { %v83_v44 = vld [vmem:[#allocation5 + $0x30] sm:$0xff]  ;;  %v3726_v29 = vcombine.high %v80_v6, %v84_v52  ;;  %v3732_v7 = vcombine.low %v80_v6, %v84_v52 }
 0x133   :  { %v3724_v61 = vcombine.high %v79_v9, %v83_v44  ;;  %v3730_v62 = vcombine.low %v79_v9, %v83_v44 }
 0x134   :  { %1235 = vmatpush1.bf16.msra.mxu0 %v3694_v15  ;;  %1276 = vmatpush1.bf16.msra.mxu1 %v3696_v28  ;;  %5324 = vst [vmem:[#allocation110_spill] sm:$0xff] %v3726_v29  ;;  %v200_v28 = vld [vmem:[#allocation5 + $0x3d8] sm:$0xff]  ;;  %5326 = vst [vmem:[#allocation112_spill] sm:$0xff] %v3732_v7 }
 0x135   :  { %1236 = vmatprep.subr.bf16.mxu0 %v3700_v45  ;;  %1277 = vmatprep.subr.bf16.mxu1 %v3702_v1  ;;  %5323 = vst [vmem:[#allocation109_spill] sm:$0xff] %v3724_v61  ;;  %v199_v1 = vld [vmem:[#allocation5 + $0x3d0] sm:$0xff]  ;;  %v204_v15 = vld [vmem:[#allocation5 + $0x3f8] sm:$0xff]  ;;  %5325 = vst [vmem:[#allocation111_spill] sm:$0xff] %v3730_v62 }
 0x136   :  { %v203_v45 = vld [vmem:[#allocation5 + $0x3f0] sm:$0xff]  ;;  %v3738_v27 = vcombine.high %v200_v28, %v204_v15  ;;  %v3744_v52 = vcombine.low %v200_v28, %v204_v15 }
 0x137   :  { %v3736_v54 = vcombine.high %v199_v1, %v203_v45  ;;  %v3742_v44 = vcombine.low %v199_v1, %v203_v45 }
 0x138   :  { %1237 = vmatpush1.bf16.msra.mxu0 %v3706_v34  ;;  %1278 = vmatpush1.bf16.msra.mxu1 %v3708_v0  ;;  %5328 = vst [vmem:[#allocation114_spill] sm:$0xff] %v3738_v27  ;;  %v192_v0 = vld [vmem:[#allocation5 + $0x398] sm:$0xff]  ;;  %5330 = vst [vmem:[#allocation116_spill] sm:$0xff] %v3744_v52 }
 0x139   :  { %1238 = vmatprep.subr.bf16.mxu0 %v3712_v5  ;;  %1279 = vmatprep.subr.bf16.mxu1 %v3714_v60  ;;  %5327 = vst [vmem:[#allocation113_spill] sm:$0xff] %v3736_v54  ;;  %v191_v60 = vld [vmem:[#allocation5 + $0x390] sm:$0xff]  ;;  %v196_v34 = vld [vmem:[#allocation5 + $0x3b8] sm:$0xff]  ;;  %5329 = vst [vmem:[#allocation115_spill] sm:$0xff] %v3742_v44 }
 0x13a   :  { %v195_v5 = vld [vmem:[#allocation5 + $0x3b0] sm:$0xff]  ;;  %v3750_v9 = vcombine.high %v192_v0, %v196_v34  ;;  %v3756_v15 = vcombine.low %v192_v0, %v196_v34 }
 0x13b   :  { %v3748_v6 = vcombine.high %v191_v60, %v195_v5  ;;  %v3754_v45 = vcombine.low %v191_v60, %v195_v5 }
 0x13c   :  { %1239 = vmatpush1.bf16.msra.mxu0 %v3718_v14  ;;  %1280 = vmatpush1.bf16.msra.mxu1 %v3720_v35  ;;  %5332 = vst [vmem:[#allocation118_spill] sm:$0xff] %v3750_v9  ;;  %v184_v35 = vld [vmem:[#allocation5 + $0x358] sm:$0xff]  ;;  %5334 = vst [vmem:[#allocation120_spill] sm:$0xff] %v3756_v15 }
 0x13d   :  { %1240 = vmatprep.subr.bf16.mxu0 %v3724_v61  ;;  %1281 = vmatprep.subr.bf16.mxu1 %v3726_v29  ;;  %5331 = vst [vmem:[#allocation117_spill] sm:$0xff] %v3748_v6  ;;  %v183_v29 = vld [vmem:[#allocation5 + $0x350] sm:$0xff]  ;;  %v188_v14 = vld [vmem:[#allocation5 + $0x378] sm:$0xff]  ;;  %5333 = vst [vmem:[#allocation119_spill] sm:$0xff] %v3754_v45 }
 0x13e   :  { %v187_v61 = vld [vmem:[#allocation5 + $0x370] sm:$0xff]  ;;  %v3762_v1 = vcombine.high %v184_v35, %v188_v14  ;;  %v3768_v34 = vcombine.low %v184_v35, %v188_v14 }
 0x13f   :  { %v3760_v28 = vcombine.high %v183_v29, %v187_v61  ;;  %v3766_v5 = vcombine.low %v183_v29, %v187_v61 }
 0x140   :  { %1241 = vmatpush1.bf16.msra.mxu0 %v3730_v62  ;;  %1282 = vmatpush1.bf16.msra.mxu1 %v3732_v7  ;;  %5336 = vst [vmem:[#allocation122_spill] sm:$0xff] %v3762_v1  ;;  %v176_v7 = vld [vmem:[#allocation5 + $0x318] sm:$0xff]  ;;  %5338 = vst [vmem:[#allocation124_spill] sm:$0xff] %v3768_v34 }
 0x141   :  { %1242 = vmatprep.subr.bf16.mxu0 %v3736_v54  ;;  %1283 = vmatprep.subr.bf16.mxu1 %v3738_v27  ;;  %5335 = vst [vmem:[#allocation121_spill] sm:$0xff] %v3760_v28  ;;  %v175_v27 = vld [vmem:[#allocation5 + $0x310] sm:$0xff]  ;;  %v180_v62 = vld [vmem:[#allocation5 + $0x338] sm:$0xff]  ;;  %5337 = vst [vmem:[#allocation123_spill] sm:$0xff] %v3766_v5 }
 0x142   :  { %v179_v54 = vld [vmem:[#allocation5 + $0x330] sm:$0xff]  ;;  %v3774_v60 = vcombine.high %v176_v7, %v180_v62  ;;  %v3780_v14 = vcombine.low %v176_v7, %v180_v62 }
 0x143   :  { %v3772_v0 = vcombine.high %v175_v27, %v179_v54  ;;  %v3778_v61 = vcombine.low %v175_v27, %v179_v54 }
 0x144   :  { %1243 = vmatpush2.bf16.msra.mxu0 %v3742_v44  ;;  %1284 = vmatpush2.bf16.msra.mxu1 %v3744_v52  ;;  %5340 = vst [vmem:[#allocation126_spill] sm:$0xff] %v3774_v60  ;;  %v168_v52 = vld [vmem:[#allocation5 + $0x2d8] sm:$0xff]  ;;  %5342 = vst [vmem:[#allocation128_spill] sm:$0xff] %v3780_v14 }
 0x145   :  { %1244 = vmatprep.subr.bf16.mxu0 %v3748_v6  ;;  %1285 = vmatprep.subr.bf16.mxu1 %v3750_v9  ;;  %5339 = vst [vmem:[#allocation125_spill] sm:$0xff] %v3772_v0  ;;  %v167_v9 = vld [vmem:[#allocation5 + $0x2d0] sm:$0xff]  ;;  %v172_v44 = vld [vmem:[#allocation5 + $0x2f8] sm:$0xff]  ;;  %5341 = vst [vmem:[#allocation127_spill] sm:$0xff] %v3778_v61 }
 0x146   :  { %v171_v6 = vld [vmem:[#allocation5 + $0x2f0] sm:$0xff]  ;;  %v3786_v29 = vcombine.high %v168_v52, %v172_v44  ;;  %v3792_v62 = vcombine.low %v168_v52, %v172_v44 }
 0x147   :  { %v3784_v35 = vcombine.high %v167_v9, %v171_v6  ;;  %v3790_v54 = vcombine.low %v167_v9, %v171_v6 }
 0x148   :  { %1245 = vmatpush2.bf16.msra.mxu0 %v3754_v45  ;;  %1286 = vmatpush2.bf16.msra.mxu1 %v3756_v15  ;;  %5344 = vst [vmem:[#allocation130_spill] sm:$0xff] %v3786_v29  ;;  %v160_v15 = vld [vmem:[#allocation5 + $0x298] sm:$0xff]  ;;  %5346 = vst [vmem:[#allocation132_spill] sm:$0xff] %v3792_v62 }
 0x149   :  { %1246 = vmatprep.subr.bf16.mxu0 %v3760_v28  ;;  %1287 = vmatprep.subr.bf16.mxu1 %v3762_v1  ;;  %5343 = vst [vmem:[#allocation129_spill] sm:$0xff] %v3784_v35  ;;  %v159_v1 = vld [vmem:[#allocation5 + $0x290] sm:$0xff]  ;;  %v164_v45 = vld [vmem:[#allocation5 + $0x2b8] sm:$0xff]  ;;  %5345 = vst [vmem:[#allocation131_spill] sm:$0xff] %v3790_v54 }
 0x14a   :  { %v163_v28 = vld [vmem:[#allocation5 + $0x2b0] sm:$0xff]  ;;  %v3798_v27 = vcombine.high %v160_v15, %v164_v45  ;;  %v3804_v44 = vcombine.low %v160_v15, %v164_v45 }
 0x14b   :  { %v3796_v7 = vcombine.high %v159_v1, %v163_v28  ;;  %v3802_v6 = vcombine.low %v159_v1, %v163_v28 }
 0x14c   :  { %1247 = vmatpush2.bf16.msra.mxu0 %v3766_v5  ;;  %1288 = vmatpush2.bf16.msra.mxu1 %v3768_v34  ;;  %5348 = vst [vmem:[#allocation134_spill] sm:$0xff] %v3798_v27  ;;  %v152_v34 = vld [vmem:[#allocation5 + $0x258] sm:$0xff]  ;;  %5350 = vst [vmem:[#allocation136_spill] sm:$0xff] %v3804_v44 }
 0x14d   :  { %1248 = vmatprep.subr.bf16.mxu0 %v3772_v0  ;;  %1289 = vmatprep.subr.bf16.mxu1 %v3774_v60  ;;  %5347 = vst [vmem:[#allocation133_spill] sm:$0xff] %v3796_v7  ;;  %v151_v60 = vld [vmem:[#allocation5 + $0x250] sm:$0xff]  ;;  %v156_v5 = vld [vmem:[#allocation5 + $0x278] sm:$0xff]  ;;  %5349 = vst [vmem:[#allocation135_spill] sm:$0xff] %v3802_v6 }
 0x14e   :  { %v155_v0 = vld [vmem:[#allocation5 + $0x270] sm:$0xff]  ;;  %v3810_v9 = vcombine.high %v152_v34, %v156_v5  ;;  %v3816_v45 = vcombine.low %v152_v34, %v156_v5  ;;  %v5360_v5 = vld [vmem:[#allocation55_spill] sm:$0xff]  ;;  %v5361_v34 = vld [vmem:[#allocation56_spill] sm:$0xff] }
 0x14f   :  { %v3808_v52 = vcombine.high %v151_v60, %v155_v0  ;;  %v3814_v28 = vcombine.low %v151_v60, %v155_v0  ;;  %v5362_v0 = vld [vmem:[#allocation57_spill] sm:$0xff]  ;;  %v5363_v60 = vld [vmem:[#allocation58_spill] sm:$0xff] }
 0x150   :  { %1249 = vmatpush2.bf16.msra.mxu0 %v3778_v61  ;;  %1290 = vmatpush2.bf16.msra.mxu1 %v3780_v14  ;;  %5352 = vst [vmem:[#allocation138_spill] sm:$0xff] %v3810_v9  ;;  %v144_v14 = vld [vmem:[#allocation5 + $0x218] sm:$0xff]  ;;  %5354 = vst [vmem:[#allocation140_spill] sm:$0xff] %v3816_v45 }
 0x151   :  { %1250 = vmatprep.subr.bf16.mxu0 %v3784_v35  ;;  %1291 = vmatprep.subr.bf16.mxu1 %v3786_v29  ;;  %5351 = vst [vmem:[#allocation137_spill] sm:$0xff] %v3808_v52  ;;  %v143_v29 = vld [vmem:[#allocation5 + $0x210] sm:$0xff]  ;;  %v148_v61 = vld [vmem:[#allocation5 + $0x238] sm:$0xff]  ;;  %5353 = vst [vmem:[#allocation139_spill] sm:$0xff] %v3814_v28 }
 0x152   :  { %v147_v35 = vld [vmem:[#allocation5 + $0x230] sm:$0xff]  ;;  %v3822_v1 = vcombine.high %v144_v14, %v148_v61 }
 0x153   :  { %v3820_v15 = vcombine.high %v143_v29, %v147_v35 }
 0x154   :  { %1251 = vmatpush2.bf16.msra.mxu0 %v3790_v54  ;;  %1292 = vmatpush2.bf16.msra.mxu1 %v3792_v62  ;;  %5356 = vst [vmem:[#allocation142_spill] sm:$0xff] %v3822_v1 }
 0x155   :  { %1252 = vmatprep.subr.bf16.mxu0 %v3796_v7  ;;  %1293 = vmatprep.subr.bf16.mxu1 %v3798_v27  ;;  %5355 = vst [vmem:[#allocation141_spill] sm:$0xff] %v3820_v15  ;;  %v3826_v27 = vcombine.low %v143_v29, %v147_v35  ;;  %v5366_v35 = vld [vmem:[#allocation61_spill] sm:$0xff]  ;;  %v5367_v29 = vld [vmem:[#allocation62_spill] sm:$0xff] }
 0x157   :  { %5357 = vst [vmem:[#allocation143_spill] sm:$0xff] %v3826_v27 }
 0x158   :  { %1253 = vmatpush2.bf16.msra.mxu0 %v3802_v6  ;;  %1294 = vmatpush2.bf16.msra.mxu1 %v3804_v44  ;;  %v3828_v6 = vcombine.low %v144_v14, %v148_v61  ;;  %v5364_v61 = vld [vmem:[#allocation59_spill] sm:$0xff]  ;;  %v5365_v14 = vld [vmem:[#allocation60_spill] sm:$0xff] }
 0x159   :  { %1254 = vmatprep.subr.bf16.mxu0 %v3808_v52  ;;  %1295 = vmatprep.subr.bf16.mxu1 %v3810_v9 }
 0x15a   :  { %5358 = vst [vmem:[#allocation144_spill] sm:$0xff] %v3828_v6 }
 0x15c   :  { %1255 = vmatpush2.bf16.msra.mxu0 %v3814_v28  ;;  %1296 = vmatpush2.bf16.msra.mxu1 %v3816_v45 }
 0x15d   :  { %1256 = vmatprep.subr.bf16.mxu0 %v3820_v15  ;;  %1297 = vmatprep.subr.bf16.mxu1 %v3822_v1 }
 0x160   :  { %1257 = vmatpush2.bf16.msra.mxu0 %v3826_v27  ;;  %1298 = vmatpush2.bf16.msra.mxu1 %v3828_v6 }
 0x161   :  { %1354 = vmatprep.subr.bf16.mxu0 %v3387_v16  ;;  %1395 = vmatprep.subr.bf16.mxu1 %v3389_v17 }
 0x163   :  { %1259 = vmatmul.mubr.bf16.vlgmr.msra.gmra.mxu0 %v3646_v13  ;;  %1300 = vmatmul.mubr.bf16.vlgmr.msra.gmra.mxu1 %v3646_v13  ;;  %v5359_v13 = vld [vmem:[#allocation54_spill] sm:$0xff] }
 0x164   :  { %1355 = vmatpush1.bf16.msra.mxu0 %v3391_v18  ;;  %1396 = vmatpush1.bf16.msra.mxu1 %v3393_v22 }
 0x165   :  { %1356 = vmatprep.subr.bf16.mxu0 %v3395_v23  ;;  %1397 = vmatprep.subr.bf16.mxu1 %v3399_v25 }
 0x168   :  { %1357 = vmatpush1.bf16.msra.mxu0 %v3404_v30  ;;  %1398 = vmatpush1.bf16.msra.mxu1 %v3408_v32 }
 0x169   :  { %1358 = vmatprep.subr.bf16.mxu0 %v3410_v33  ;;  %1399 = vmatprep.subr.bf16.mxu1 %v3413_v36 }
 0x16c   :  { %1359 = vmatpush1.bf16.msra.mxu0 %v3418_v38  ;;  %1400 = vmatpush1.bf16.msra.mxu1 %v3422_v39 }
 0x16d   :  { %1360 = vmatprep.subr.bf16.mxu0 %v3424_v40  ;;  %1401 = vmatprep.subr.bf16.mxu1 %v3427_v41 }
 0x170   :  { %1361 = vmatpush1.bf16.msra.mxu0 %v3430_v46  ;;  %1402 = vmatpush1.bf16.msra.mxu1 %v3434_v47 }
 0x171   :  { %1362 = vmatprep.subr.bf16.mxu0 %v3436_v48  ;;  %1403 = vmatprep.subr.bf16.mxu1 %v3439_v49 }
 0x174   :  { %1363 = vmatpush1.bf16.msra.mxu0 %v3442_v50  ;;  %1404 = vmatpush1.bf16.msra.mxu1 %v3446_v51 }
 0x175   :  { %1364 = vmatprep.subr.bf16.mxu0 %v3451_v55  ;;  %1405 = vmatprep.subr.bf16.mxu1 %v3453_v57 }
 0x178   :  { %1365 = vmatpush1.bf16.msra.mxu0 %v3455_v58  ;;  %1406 = vmatpush1.bf16.msra.mxu1 %v3457_v59 }
 0x179   :  { %1366 = vmatprep.subr.bf16.mxu0 %v3463_v63  ;;  %1407 = vmatprep.subr.bf16.mxu1 %v3465_v2 }
 0x17c   :  { %1367 = vmatpush1.bf16.msra.mxu0 %v3467_v3  ;;  %1408 = vmatpush1.bf16.msra.mxu1 %v3470_v4 }
 0x17d   :  { %1368 = vmatprep.subr.bf16.mxu0 %v3475_v8  ;;  %1409 = vmatprep.subr.bf16.mxu1 %v3477_v10 }
 0x180   :  { %1369 = vmatpush1.bf16.msra.mxu0 %v3479_v11  ;;  %1410 = vmatpush1.bf16.msra.mxu1 %v3481_v12 }
 0x181   :  { %1370 = vmatprep.subr.bf16.mxu0 %v3487_v19  ;;  %1411 = vmatprep.subr.bf16.mxu1 %v3489_v21  ;;  %v5409_v21 = vld [vmem:[#allocation81_spill] sm:$0xff] }
 0x184   :  { %1371 = vmatpush2.bf16.msra.mxu0 %v3491_v24  ;;  %1412 = vmatpush2.bf16.msra.mxu1 %v3493_v26  ;;  %v5408_v26 = vld [vmem:[#allocation82_spill] sm:$0xff] }
 0x185   :  { %1372 = vmatprep.subr.bf16.mxu0 %v3502_v31  ;;  %1413 = vmatprep.subr.bf16.mxu1 %v3505_v37 }
 0x188   :  { %1373 = vmatpush2.bf16.msra.mxu0 %v3507_v42  ;;  %1414 = vmatpush2.bf16.msra.mxu1 %v3509_v43 }
 0x189   :  { %1374 = vmatprep.subr.bf16.mxu0 %v3517_v53  ;;  %1415 = vmatprep.subr.bf16.mxu1 %v3520_v56  ;;  %v5368_v53 = vld [vmem:[#allocation63_spill] sm:$0xff]  ;;  %v5369_v56 = vld [vmem:[#allocation64_spill] sm:$0xff] }
 0x18c   :  { %1375 = vmatpush2.bf16.msra.mxu0 %v5359_v13  ;;  %1416 = vmatpush2.bf16.msra.mxu1 %v5360_v5  ;;  %v5370_v13 = vld [vmem:[#allocation65_spill] sm:$0xff]  ;;  %v5371_v5 = vld [vmem:[#allocation66_spill] sm:$0xff] }
 0x18d   :  { %1376 = vmatprep.subr.bf16.mxu0 %v5361_v34  ;;  %1417 = vmatprep.subr.bf16.mxu1 %v5362_v0  ;;  %v5372_v34 = vld [vmem:[#allocation67_spill] sm:$0xff]  ;;  %v5373_v0 = vld [vmem:[#allocation68_spill] sm:$0xff] }
 0x190   :  { %1377 = vmatpush2.bf16.msra.mxu0 %v5363_v60  ;;  %1418 = vmatpush2.bf16.msra.mxu1 %v5364_v61  ;;  %v5374_v60 = vld [vmem:[#allocation69_spill] sm:$0xff]  ;;  %v5375_v61 = vld [vmem:[#allocation70_spill] sm:$0xff] }
 0x191   :  { %1378 = vmatprep.subr.bf16.mxu0 %v5365_v14  ;;  %1419 = vmatprep.subr.bf16.mxu1 %v5366_v35  ;;  %v5376_v14 = vld [vmem:[#allocation71_spill] sm:$0xff]  ;;  %v5377_v35 = vld [vmem:[#allocation72_spill] sm:$0xff] }
 0x194   :  { %1379 = vmatpush2.bf16.msra.mxu0 %v5367_v29  ;;  %1420 = vmatpush2.bf16.msra.mxu1 %v5368_v53  ;;  %v5378_v29 = vld [vmem:[#allocation73_spill] sm:$0xff]  ;;  %v5379_v53 = vld [vmem:[#allocation74_spill] sm:$0xff] }
 0x195   :  { %1380 = vmatprep.subr.bf16.mxu0 %v5369_v56  ;;  %1421 = vmatprep.subr.bf16.mxu1 %v5370_v13  ;;  %v5380_v56 = vld [vmem:[#allocation75_spill] sm:$0xff]  ;;  %v5381_v13 = vld [vmem:[#allocation76_spill] sm:$0xff] }
 0x198   :  { %1381 = vmatpush2.bf16.msra.mxu0 %v5371_v5  ;;  %1422 = vmatpush2.bf16.msra.mxu1 %v5372_v34  ;;  %v5382_v5 = vld [vmem:[#allocation77_spill] sm:$0xff]  ;;  %v428_v34 = vpop.f32.mrf.mxu1 }
 0x199   :  { %1382 = vmatprep.subr.bf16.mxu0 %v5373_v0  ;;  %1423 = vmatprep.subr.bf16.mxu1 %v5374_v60  ;;  %v355_v0 = vpop.f32.mrf.mxu0 }
 0x19a   :  { %v3902_v43 = vpop.f32.mrf.mxu1 }
 0x19b   :  { %v357_v60 = vpop.f32.mrf.mxu0 }
 0x19c   :  { %1383 = vmatpush2.bf16.msra.mxu0 %v5375_v61  ;;  %1424 = vmatpush2.bf16.msra.mxu1 %v5376_v14  ;;  %v3904_v61 = vpop.f32.mrf.mxu1 }
 0x19d   :  { %1384 = vmatprep.subr.bf16.mxu0 %v5377_v35  ;;  %1425 = vmatprep.subr.bf16.mxu1 %v5378_v29  ;;  %5383 = vst [vmem:[#allocation145_spill] sm:$0xff] %v3904_v61  ;;  %v3906_v14 = vpop.f32.mrf.mxu0 }
 0x19e   :  { %5384 = vst [vmem:[#allocation146_spill] sm:$0xff] %v3906_v14  ;;  %v3908_v35 = vpop.f32.mrf.mxu1 }
 0x19f   :  { %5385 = vst [vmem:[#allocation147_spill] sm:$0xff] %v3908_v35  ;;  %v3910_v29 = vpop.f32.mrf.mxu0 }
 0x1a0   :  { %1385 = vmatpush2.bf16.msra.mxu0 %v5379_v53  ;;  %1426 = vmatpush2.bf16.msra.mxu1 %v5380_v56  ;;  %5386 = vst [vmem:[#allocation148_spill] sm:$0xff] %v3910_v29  ;;  %v3912_v53 = vpop.f32.mrf.mxu1 }
 0x1a1   :  { %1436 = vmatprep.subr.bf16.mxu0 %v5381_v13  ;;  %1477 = vmatprep.subr.bf16.mxu1 %v5382_v5  ;;  %5387 = vst [vmem:[#allocation149_spill] sm:$0xff] %v3912_v53  ;;  %v3914_v56 = vpop.f32.mrf.mxu0 }
 0x1a2   :  { %5388 = vst [vmem:[#allocation150_spill] sm:$0xff] %v3914_v56  ;;  %v3916_v13 = vpop.f32.mrf.mxu1 }
 0x1a3   :  { %5389 = vst [vmem:[#allocation151_spill] sm:$0xff] %v3916_v13  ;;  %v3918_v5 = vpop.f32.mrf.mxu0 }
 0x1a4   :  { %5390 = vst [vmem:[#allocation152_spill] sm:$0xff] %v3918_v5  ;;  %v3920_v42 = vpop.f32.mrf.mxu1 }
 0x1a5   :  { %5391 = vst [vmem:[#allocation153_spill] sm:$0xff] %v3920_v42  ;;  %v3922_v37 = vpop.f32.mrf.mxu0 }
 0x1a6   :  { %5392 = vst [vmem:[#allocation154_spill] sm:$0xff] %v3922_v37  ;;  %v3924_v31 = vpop.f32.mrf.mxu1 }
 0x1a7   :  { %5393 = vst [vmem:[#allocation155_spill] sm:$0xff] %v3924_v31  ;;  %v3926_v61 = vpop.f32.mrf.mxu0 }
 0x1a8   :  { %5394 = vst [vmem:[#allocation156_spill] sm:$0xff] %v3926_v61  ;;  %v3928_v14 = vpop.f32.mrf.mxu1 }
 0x1a9   :  { %5395 = vst [vmem:[#allocation157_spill] sm:$0xff] %v3928_v14  ;;  %v3930_v35 = vpop.f32.mrf.mxu0 }
 0x1aa   :  { %5396 = vst [vmem:[#allocation158_spill] sm:$0xff] %v3930_v35  ;;  %v3932_v29 = vpop.f32.mrf.mxu1  ;;  %v5407_v35 = vld [vmem:[#allocation80_spill] sm:$0xff] }
 0x1ab   :  { %5397 = vst [vmem:[#allocation159_spill] sm:$0xff] %v3932_v29  ;;  %v3934_v53 = vpop.f32.mrf.mxu0  ;;  %v356_v29 = vadd.f32 %v355_v0, %v5407_v35 }
 0x1ac   :  { %5398 = vst [vmem:[#allocation160_spill] sm:$0xff] %v3934_v53  ;;  %v3936_v56 = vpop.f32.mrf.mxu1  ;;  %v429_v53 = vadd.f32 %v428_v34, %v5408_v26 }
 0x1ad   :  { %5399 = vst [vmem:[#allocation161_spill] sm:$0xff] %v3936_v56  ;;  %v3938_v13 = vpop.f32.mrf.mxu0 }
 0x1ae   :  { %5400 = vst [vmem:[#allocation162_spill] sm:$0xff] %v3938_v13  ;;  %v3940_v5 = vpop.f32.mrf.mxu1  ;;  %v358_v13 = vadd.f32 %v357_v60, %v5409_v21 }
 0x1af   :  { %5401 = vst [vmem:[#allocation163_spill] sm:$0xff] %v3940_v5  ;;  %v3942_v42 = vpop.f32.mrf.mxu0 }
 0x1b0   :  { %5402 = vst [vmem:[#allocation164_spill] sm:$0xff] %v3942_v42  ;;  %v3944_v37 = vpop.f32.mrf.mxu1 }
 0x1b1   :  { %5403 = vst [vmem:[#allocation165_spill] sm:$0xff] %v3944_v37  ;;  %v3946_v31 = vpop.f32.mrf.mxu0 }
 0x1b2   :  { %5404 = vst [vmem:[#allocation166_spill] sm:$0xff] %v3946_v31  ;;  %v3948_v61 = vpop.f32.mrf.mxu1 }
 0x1b3   :  { %5405 = vst [vmem:[#allocation167_spill] sm:$0xff] %v3948_v61  ;;  %v3950_v14 = vpop.f32.mrf.mxu0 }
 0x1b4   :  { %5406 = vst [vmem:[#allocation168_spill] sm:$0xff] %v3950_v14 }
 0x1e3   :  { %v1178_v24 = vpop.f32.mrf.mxu0  ;;  %v1219_v56 = vpop.f32.mrf.mxu1 }
 0x1e4   :  { %v1330_v19 = vadd.f32 %v1178_v24, %v356_v29  ;;  %v1332_v5 = vadd.f32 %v1219_v56, %v429_v53  ;;  %v5410_v56 = vld [vmem:[#allocation84_spill] sm:$0xff] }
 0x1e5   :  { %v1180_v12 = vpop.f32.mrf.mxu0  ;;  %v1221_v42 = vpop.f32.mrf.mxu1 }
 0x1e6   :  { %v1334_v11 = vmul.f32 0.5, %v1330_v19  ;;  %v1331_v37 = vadd.f32 %v1180_v12, %v358_v13 }
 0x1e7   :  { %v1182_v10 = vpop.f32.mrf.mxu0  ;;  %v1223_v31 = vpop.f32.mrf.mxu1 }
 0x1e8   :  { %3080 = vtanh.f32 %v1334_v11  ;;  %v1338_v61 = vmul.f32 0.5, %v1331_v37  ;;  %v463_v10 = vld [vmem:[%s4921_s4] sm:$0xf] }
 0x1e9   :  { %v1183_v8 = vpop.f32.mrf.mxu0  ;;  %v1224_v14 = vpop.f32.mrf.mxu1 }
 0x1ea   :  { %3082 = vtanh.f32 %v1338_v61  ;;  %v5411_v8 = vld [vmem:[#allocation79_spill] sm:$0xff] }
 0x1eb   :  { %3084 = vtanh.f32 %v1332_v5  ;;  %v5412_v11 = vsub.s32 0, %v5411_v8  ;;  %v5414_v31 = vsub.s32 1, %v5411_v8 }
 0x1ed   :  { %v3963_v12 = vrot.slane %v463_v10, %v5412_v11  ;;  %v3967_v37 = vrot.slane %v463_v10, %v5414_v31  ;;  %v5418_v31 = vsub.s32 3, %v5411_v8 }
 0x1ef   :  { %5413 = vst [vmem:[#allocation84_spill] sm:$0xff] %v3963_v12  ;;  %5415 = vst [vmem:[#allocation79_spill] sm:$0xff] %v3967_v37 }
 0x1f5   :  { %v3081_v0 = vpop.eup %3080 }
 0x1f6   :  { %v1336_v34 = vmul.f32 0.5, %v3081_v0 }
 0x1f7   :  { %v3083_v26 = vpop.eup %3082 }
 0x1f8   :  { %v1337_v35 = vadd.f32 0.5, %v1336_v34  ;;  %v1340_v4 = vmul.f32 0.5, %v3083_v26  ;;  %v3085_v60 = vpop.eup %3084 }
 0x1fa   :  { %v1341_v24 = vadd.f32 0.5, %v1340_v4  ;;  %v1348_v53 = vmul.f32 %v3085_v60, %v1337_v35  ;;  %v5416_v35 = vsub.s32 2, %v5411_v8 }
 0x1fc   :  { %v1347_v29 = vmul.f32 %v1341_v24, %v5410_v56  ;;  %v3972_v0 = vrot.slane %v463_v10, %v5416_v35 }
 0x1fe   :  { %v3956_v19 = vadd.f32 %v1348_v53, %v1347_v29  ;;  %5417 = vst [vmem:[#allocation169_spill] sm:$0xff] %v3972_v0 }
 0x223   :  { %v1260_v26 = vpop.f32.mrf.mxu0  ;;  %v1301_v13 = vpop.f32.mrf.mxu1 }
 0x224   :  { %v1308_v4 = vadd.f32 %v1260_v26, %v3963_v12  ;;  %v1310_v11 = vadd.f32 %v1301_v13, %v3972_v0  ;;  %v3978_v26 = vrot.slane %v463_v10, %v5418_v31 }
 0x225   :  { %v1262_v5 = vpop.f32.mrf.mxu0  ;;  %v1303_v61 = vpop.f32.mrf.mxu1 }
 0x226   :  { %v1312_v14 = vmul.f32 0.5, %v1308_v4  ;;  %v1309_v34 = vadd.f32 %v1262_v5, %v3967_v37  ;;  %5419 = vst [vmem:[#allocation170_spill] sm:$0xff] %v3978_v26  ;;  %v5420_v4 = vld [vmem:[#allocation83_spill] sm:$0xff]  ;;  %v1311_v5 = vadd.f32 %v1303_v61, %v3978_v26 }
 0x227   :  { %v1264_v60 = vpop.f32.mrf.mxu0  ;;  %v1305_v24 = vpop.f32.mrf.mxu1  ;;  %v431_v12 = vadd.f32 %v3902_v43, %v5420_v4 }
 0x228   :  { %3086 = vtanh.f32 %v1312_v14  ;;  %v1316_v53 = vmul.f32 0.5, %v1309_v34  ;;  %v1321_v24 = vmul.f32 0.5, %v1311_v5 }
 0x229   :  { %v1265_v56 = vpop.f32.mrf.mxu0  ;;  %v1306_v29 = vpop.f32.mrf.mxu1  ;;  %v1333_v35 = vadd.f32 %v1221_v42, %v431_v12 }
 0x22a   :  { %3088 = vtanh.f32 %v1316_v53 }
 0x22b   :  { %3090 = vtanh.f32 %v1310_v11  ;;  %v1343_v60 = vmul.f32 0.5, %v1333_v35 }
 0x22d   :  { %3092 = vtanh.f32 %v1343_v60 }
 0x22e   :  { %3094 = vtanh.f32 %v1321_v24 }
 0x22f   :  { %3096 = vtanh.f32 %v3956_v19 }
 0x235   :  { %v3087_v14 = vpop.eup %3086 }
 0x236   :  { %v1314_v34 = vmul.f32 0.5, %v3087_v14 }
 0x237   :  { %v3089_v56 = vpop.eup %3088 }
 0x238   :  { %v1315_v29 = vadd.f32 0.5, %v1314_v34  ;;  %v1318_v13 = vmul.f32 0.5, %v3089_v56  ;;  %v3091_v8 = vpop.eup %3090 }
 0x23a   :  { %v1319_v53 = vadd.f32 0.5, %v1318_v13  ;;  %v1326_v31 = vmul.f32 %v3091_v8, %v1315_v29  ;;  %v3093_v42 = vpop.eup %3092  ;;  %v5421_v29 = vld [vmem:[#allocation78_spill] sm:$0xff] }
 0x23b   :  { %v3095_v12 = vpop.eup %3094  ;;  %v1345_v61 = vmul.f32 0.5, %v3093_v42  ;;  %v5423_v8 = vld [vmem:[#allocation86_spill] sm:$0xff]  ;;  %v5426_v42 = vld [vmem:[#allocation89_spill] sm:$0xff] }
 0x23c   :  { %v1325_v10 = vmul.f32 0.0, %v1319_v53  ;;  %v1323_v11 = vmul.f32 0.5, %v3095_v12  ;;  %v3097_v35 = vpop.eup %3096  ;;  %v5422_v53 = vld [vmem:[#allocation85_spill] sm:$0xff]  ;;  %v5427_v12 = vld [vmem:[#allocation90_spill] sm:$0xff] }
 0x23d   :  { %v1346_v5 = vadd.f32 0.5, %v1345_v61  ;;  %v5428_v61 = vld [vmem:[#allocation91_spill] sm:$0xff] }
 0x23e   :  { %v3984_v43 = vadd.f32 %v1326_v31, %v1325_v10  ;;  %v1324_v60 = vadd.f32 0.5, %v1323_v11  ;;  %v5424_v10 = vld [vmem:[#allocation87_spill] sm:$0xff]  ;;  %v5425_v31 = vld [vmem:[#allocation88_spill] sm:$0xff] }
 0x23f   :  { %v1351_v34 = vmul.f32 %v3097_v35, %v1346_v5  ;;  %v5429_v11 = vld [vmem:[#allocation92_spill] sm:$0xff]  ;;  %v5430_v35 = vld [vmem:[#allocation93_spill] sm:$0xff]  ;;  %v5431_v5 = vld [vmem:[#allocation94_spill] sm:$0xff] }
 0x240   :  { %3098 = vtanh.f32 %v3984_v43 }
 0x241   :  { %v3987_v13 = vpack.c.bf16 %v1351_v34, %v1351_v34  ;;  %v5434_v34 = vld [vmem:[#allocation97_spill] sm:$0xff] }
 0x24d   :  { %v3099_v14 = vpop.eup %3098 }
 0x24e   :  { %v1329_v24 = vmul.f32 %v3099_v14, %v1324_v60  ;;  %v5432_v60 = vld [vmem:[#allocation95_spill] sm:$0xff]  ;;  %v5433_v14 = vld [vmem:[#allocation96_spill] sm:$0xff] }
 0x250   :  { %v1353_v56 = vpack.c.bf16 %v1329_v24, %v1329_v24  ;;  %v5435_v24 = vld [vmem:[#allocation98_spill] sm:$0xff] }
 0x252   :  { %1386 = vmatprep.mubr.bf16.mxu0 %v1353_v56  ;;  %1427 = vmatprep.mubr.bf16.mxu1 %v1353_v56 }
 0x253   :  { %1387 = vmatmul.mubr.bf16.vlgmr.msra.gmra.mxu0 %v3987_v13  ;;  %1428 = vmatmul.mubr.bf16.vlgmr.msra.gmra.mxu1 %v3987_v13 }
 0x254   :  { %1437 = vmatpush1.bf16.msra.mxu0 %v3608_v20  ;;  %1478 = vmatpush1.bf16.msra.mxu1 %v5421_v29 }
 0x255   :  { %1468 = vmatprep.mubr.bf16.mxu0 %v1353_v56  ;;  %1509 = vmatprep.mubr.bf16.mxu1 %v1353_v56  ;;  %v5436_v56 = vld [vmem:[#allocation99_spill] sm:$0xff] }
 0x256   :  { %1438 = vmatprep.subr.bf16.mxu0 %v5422_v53  ;;  %1479 = vmatprep.subr.bf16.mxu1 %v5423_v8 }
 0x258   :  { %1439 = vmatpush1.bf16.msra.mxu0 %v5424_v10  ;;  %1480 = vmatpush1.bf16.msra.mxu1 %v5425_v31 }
 0x259   :  { %1440 = vmatprep.subr.bf16.mxu0 %v5426_v42  ;;  %1481 = vmatprep.subr.bf16.mxu1 %v5427_v12  ;;  %v5437_v42 = vld [vmem:[#allocation100_spill] sm:$0xff]  ;;  %v5438_v12 = vld [vmem:[#allocation101_spill] sm:$0xff] }
 0x25c   :  { %1441 = vmatpush1.bf16.msra.mxu0 %v5428_v61  ;;  %1482 = vmatpush1.bf16.msra.mxu1 %v5429_v11  ;;  %v5439_v61 = vld [vmem:[#allocation102_spill] sm:$0xff]  ;;  %v5440_v11 = vld [vmem:[#allocation103_spill] sm:$0xff] }
 0x25d   :  { %1442 = vmatprep.subr.bf16.mxu0 %v5430_v35  ;;  %1483 = vmatprep.subr.bf16.mxu1 %v5431_v5  ;;  %v5441_v35 = vld [vmem:[#allocation104_spill] sm:$0xff]  ;;  %v5442_v5 = vld [vmem:[#allocation105_spill] sm:$0xff] }
 0x260   :  { %1443 = vmatpush1.bf16.msra.mxu0 %v5432_v60  ;;  %1484 = vmatpush1.bf16.msra.mxu1 %v5433_v14  ;;  %v5443_v60 = vld [vmem:[#allocation106_spill] sm:$0xff]  ;;  %v5444_v14 = vld [vmem:[#allocation107_spill] sm:$0xff] }
 0x261   :  { %1444 = vmatprep.subr.bf16.mxu0 %v5434_v34  ;;  %1485 = vmatprep.subr.bf16.mxu1 %v5435_v24  ;;  %v5445_v34 = vld [vmem:[#allocation108_spill] sm:$0xff]  ;;  %v5446_v24 = vld [vmem:[#allocation109_spill] sm:$0xff] }
 0x264   :  { %1445 = vmatpush1.bf16.msra.mxu0 %v5436_v56  ;;  %1486 = vmatpush1.bf16.msra.mxu1 %v5437_v42  ;;  %v5447_v56 = vld [vmem:[#allocation110_spill] sm:$0xff]  ;;  %v5448_v42 = vld [vmem:[#allocation111_spill] sm:$0xff] }
 0x265   :  { %1446 = vmatprep.subr.bf16.mxu0 %v5438_v12  ;;  %1487 = vmatprep.subr.bf16.mxu1 %v5439_v61  ;;  %v5449_v12 = vld [vmem:[#allocation112_spill] sm:$0xff]  ;;  %v5450_v61 = vld [vmem:[#allocation113_spill] sm:$0xff] }
 0x268   :  { %1447 = vmatpush1.bf16.msra.mxu0 %v5440_v11  ;;  %1488 = vmatpush1.bf16.msra.mxu1 %v5441_v35  ;;  %v5451_v11 = vld [vmem:[#allocation114_spill] sm:$0xff]  ;;  %v5452_v35 = vld [vmem:[#allocation115_spill] sm:$0xff] }
 0x269   :  { %1448 = vmatprep.subr.bf16.mxu0 %v5442_v5  ;;  %1489 = vmatprep.subr.bf16.mxu1 %v5443_v60  ;;  %v5453_v5 = vld [vmem:[#allocation116_spill] sm:$0xff]  ;;  %v5454_v60 = vld [vmem:[#allocation117_spill] sm:$0xff] }
 0x26c   :  { %1449 = vmatpush1.bf16.msra.mxu0 %v5444_v14  ;;  %1490 = vmatpush1.bf16.msra.mxu1 %v5445_v34  ;;  %v5455_v14 = vld [vmem:[#allocation118_spill] sm:$0xff]  ;;  %v5456_v34 = vld [vmem:[#allocation119_spill] sm:$0xff] }
 0x26d   :  { %1450 = vmatprep.subr.bf16.mxu0 %v5446_v24  ;;  %1491 = vmatprep.subr.bf16.mxu1 %v5447_v56  ;;  %v5457_v24 = vld [vmem:[#allocation120_spill] sm:$0xff]  ;;  %v5458_v56 = vld [vmem:[#allocation121_spill] sm:$0xff] }
 0x270   :  { %1451 = vmatpush1.bf16.msra.mxu0 %v5448_v42  ;;  %1492 = vmatpush1.bf16.msra.mxu1 %v5449_v12  ;;  %v5459_v42 = vld [vmem:[#allocation122_spill] sm:$0xff]  ;;  %v5460_v12 = vld [vmem:[#allocation123_spill] sm:$0xff] }
 0x271   :  { %1452 = vmatprep.subr.bf16.mxu0 %v5450_v61  ;;  %1493 = vmatprep.subr.bf16.mxu1 %v5451_v11  ;;  %v5461_v61 = vld [vmem:[#allocation124_spill] sm:$0xff]  ;;  %v5462_v11 = vld [vmem:[#allocation125_spill] sm:$0xff] }
 0x274   :  { %1453 = vmatpush2.bf16.msra.mxu0 %v5452_v35  ;;  %1494 = vmatpush2.bf16.msra.mxu1 %v5453_v5  ;;  %v5463_v35 = vld [vmem:[#allocation126_spill] sm:$0xff]  ;;  %v5464_v5 = vld [vmem:[#allocation127_spill] sm:$0xff] }
 0x275   :  { %1454 = vmatprep.subr.bf16.mxu0 %v5454_v60  ;;  %1495 = vmatprep.subr.bf16.mxu1 %v5455_v14  ;;  %v5465_v60 = vld [vmem:[#allocation128_spill] sm:$0xff]  ;;  %v5466_v14 = vld [vmem:[#allocation129_spill] sm:$0xff] }
 0x278   :  { %1455 = vmatpush2.bf16.msra.mxu0 %v5456_v34  ;;  %1496 = vmatpush2.bf16.msra.mxu1 %v5457_v24  ;;  %v5467_v34 = vld [vmem:[#allocation130_spill] sm:$0xff] }
 0x279   :  { %1456 = vmatprep.subr.bf16.mxu0 %v5458_v56  ;;  %1497 = vmatprep.subr.bf16.mxu1 %v5459_v42 }
 0x27c   :  { %1457 = vmatpush2.bf16.msra.mxu0 %v5460_v12  ;;  %1498 = vmatpush2.bf16.msra.mxu1 %v5461_v61  ;;  %v5468_v12 = vld [vmem:[#allocation134_spill] sm:$0xff]  ;;  %v5469_v61 = vld [vmem:[#allocation135_spill] sm:$0xff] }
 0x27d   :  { %1458 = vmatprep.subr.bf16.mxu0 %v5462_v11  ;;  %1499 = vmatprep.subr.bf16.mxu1 %v5463_v35 }
 0x280   :  { %1459 = vmatpush2.bf16.msra.mxu0 %v5464_v5  ;;  %1500 = vmatpush2.bf16.msra.mxu1 %v5465_v60 }
 0x281   :  { %1460 = vmatprep.subr.bf16.mxu0 %v5466_v14  ;;  %1501 = vmatprep.subr.bf16.mxu1 %v5467_v34 }
 0x284   :  { %1461 = vmatpush2.bf16.msra.mxu0 %v3790_v54  ;;  %1502 = vmatpush2.bf16.msra.mxu1 %v3792_v62 }
 0x285   :  { %1462 = vmatprep.subr.bf16.mxu0 %v3796_v7  ;;  %1503 = vmatprep.subr.bf16.mxu1 %v5468_v12 }
 0x288   :  { %1463 = vmatpush2.bf16.msra.mxu0 %v5469_v61  ;;  %1504 = vmatpush2.bf16.msra.mxu1 %v3804_v44 }
 0x289   :  { %1464 = vmatprep.subr.bf16.mxu0 %v3808_v52  ;;  %1505 = vmatprep.subr.bf16.mxu1 %v3810_v9 }
 0x28c   :  { %1465 = vmatpush2.bf16.msra.mxu0 %v3814_v28  ;;  %1506 = vmatpush2.bf16.msra.mxu1 %v3816_v45 }
 0x28d   :  { %1466 = vmatprep.subr.bf16.mxu0 %v3820_v15  ;;  %1507 = vmatprep.subr.bf16.mxu1 %v3822_v1 }
 0x290   :  { %1467 = vmatpush2.bf16.msra.mxu0 %v3826_v27  ;;  %1508 = vmatpush2.bf16.msra.mxu1 %v3828_v6 }
 0x291   :  { %1564 = vmatprep.subr.bf16.mxu0 %v3387_v16  ;;  %1605 = vmatprep.subr.bf16.mxu1 %v3389_v17 }
 0x293   :  { %1469 = vmatmul.mubr.bf16.vlgmr.msra.gmra.mxu0 %v3987_v13  ;;  %1510 = vmatmul.mubr.bf16.vlgmr.msra.gmra.mxu1 %v3987_v13  ;;  %v5470_v13 = vld [vmem:[#allocation39_spill] sm:$0xff] }
 0x294   :  { %1565 = vmatpush1.bf16.msra.mxu0 %v3391_v18  ;;  %1606 = vmatpush1.bf16.msra.mxu1 %v3393_v22 }
 0x295   :  { %1566 = vmatprep.subr.bf16.mxu0 %v3395_v23  ;;  %1607 = vmatprep.subr.bf16.mxu1 %v3399_v25 }
 0x298   :  { %1567 = vmatpush1.bf16.msra.mxu0 %v3404_v30  ;;  %1608 = vmatpush1.bf16.msra.mxu1 %v3408_v32 }
 0x299   :  { %1568 = vmatprep.subr.bf16.mxu0 %v3410_v33  ;;  %1609 = vmatprep.subr.bf16.mxu1 %v3413_v36 }
 0x29c   :  { %1569 = vmatpush1.bf16.msra.mxu0 %v3418_v38  ;;  %1610 = vmatpush1.bf16.msra.mxu1 %v3422_v39 }
 0x29d   :  { %1570 = vmatprep.subr.bf16.mxu0 %v3424_v40  ;;  %1611 = vmatprep.subr.bf16.mxu1 %v3427_v41 }
 0x2a0   :  { %1571 = vmatpush1.bf16.msra.mxu0 %v3430_v46  ;;  %1612 = vmatpush1.bf16.msra.mxu1 %v3434_v47  ;;  %v5512_v47 = vld [vmem:[#allocation145_spill] sm:$0xff] }
 0x2a1   :  { %1572 = vmatprep.subr.bf16.mxu0 %v3436_v48  ;;  %1613 = vmatprep.subr.bf16.mxu1 %v3439_v49  ;;  %v5471_v49 = vld [vmem:[#allocation40_spill] sm:$0xff] }
 0x2a4   :  { %1573 = vmatpush1.bf16.msra.mxu0 %v3442_v50  ;;  %1614 = vmatpush1.bf16.msra.mxu1 %v3446_v51  ;;  %v5472_v50 = vld [vmem:[#allocation41_spill] sm:$0xff]  ;;  %v5473_v51 = vld [vmem:[#allocation42_spill] sm:$0xff] }
 0x2a5   :  { %1574 = vmatprep.subr.bf16.mxu0 %v3451_v55  ;;  %1615 = vmatprep.subr.bf16.mxu1 %v3453_v57  ;;  %v5474_v55 = vld [vmem:[#allocation43_spill] sm:$0xff]  ;;  %v5475_v57 = vld [vmem:[#allocation44_spill] sm:$0xff] }
 0x2a8   :  { %1575 = vmatpush1.bf16.msra.mxu0 %v3455_v58  ;;  %1616 = vmatpush1.bf16.msra.mxu1 %v3457_v59  ;;  %v5476_v58 = vld [vmem:[#allocation45_spill] sm:$0xff]  ;;  %v5477_v59 = vld [vmem:[#allocation46_spill] sm:$0xff] }
 0x2a9   :  { %1576 = vmatprep.subr.bf16.mxu0 %v3463_v63  ;;  %1617 = vmatprep.subr.bf16.mxu1 %v3465_v2  ;;  %v5478_v63 = vld [vmem:[#allocation47_spill] sm:$0xff]  ;;  %v5479_v2 = vld [vmem:[#allocation48_spill] sm:$0xff] }
 0x2ac   :  { %1577 = vmatpush1.bf16.msra.mxu0 %v3467_v3  ;;  %1618 = vmatpush1.bf16.msra.mxu1 %v5470_v13  ;;  %v5480_v3 = vld [vmem:[#allocation49_spill] sm:$0xff]  ;;  %v5481_v13 = vld [vmem:[#allocation50_spill] sm:$0xff] }
 0x2ad   :  { %1578 = vmatprep.subr.bf16.mxu0 %v5471_v49  ;;  %1619 = vmatprep.subr.bf16.mxu1 %v5472_v50  ;;  %v5482_v49 = vld [vmem:[#allocation51_spill] sm:$0xff]  ;;  %v5483_v50 = vld [vmem:[#allocation52_spill] sm:$0xff] }
 0x2b0   :  { %1579 = vmatpush1.bf16.msra.mxu0 %v5473_v51  ;;  %1620 = vmatpush1.bf16.msra.mxu1 %v5474_v55  ;;  %v5484_v51 = vld [vmem:[#allocation53_spill] sm:$0xff]  ;;  %v5485_v55 = vld [vmem:[#allocation54_spill] sm:$0xff] }
 0x2b1   :  { %1580 = vmatprep.subr.bf16.mxu0 %v5475_v57  ;;  %1621 = vmatprep.subr.bf16.mxu1 %v5476_v58  ;;  %v5486_v57 = vld [vmem:[#allocation55_spill] sm:$0xff]  ;;  %v5487_v58 = vld [vmem:[#allocation56_spill] sm:$0xff] }
 0x2b4   :  { %1581 = vmatpush2.bf16.msra.mxu0 %v5477_v59  ;;  %1622 = vmatpush2.bf16.msra.mxu1 %v5478_v63  ;;  %v5488_v59 = vld [vmem:[#allocation57_spill] sm:$0xff]  ;;  %v5489_v63 = vld [vmem:[#allocation58_spill] sm:$0xff] }
 0x2b5   :  { %1582 = vmatprep.subr.bf16.mxu0 %v5479_v2  ;;  %1623 = vmatprep.subr.bf16.mxu1 %v5480_v3  ;;  %v5490_v2 = vld [vmem:[#allocation59_spill] sm:$0xff]  ;;  %v5491_v3 = vld [vmem:[#allocation60_spill] sm:$0xff] }
 0x2b8   :  { %1583 = vmatpush2.bf16.msra.mxu0 %v5481_v13  ;;  %1624 = vmatpush2.bf16.msra.mxu1 %v5482_v49  ;;  %v5492_v13 = vld [vmem:[#allocation61_spill] sm:$0xff]  ;;  %v5493_v49 = vld [vmem:[#allocation62_spill] sm:$0xff] }
 0x2b9   :  { %1584 = vmatprep.subr.bf16.mxu0 %v5483_v50  ;;  %1625 = vmatprep.subr.bf16.mxu1 %v5484_v51  ;;  %v5494_v50 = vld [vmem:[#allocation63_spill] sm:$0xff]  ;;  %v5495_v51 = vld [vmem:[#allocation64_spill] sm:$0xff] }
 0x2bc   :  { %1585 = vmatpush2.bf16.msra.mxu0 %v5485_v55  ;;  %1626 = vmatpush2.bf16.msra.mxu1 %v5486_v57  ;;  %v5496_v55 = vld [vmem:[#allocation65_spill] sm:$0xff]  ;;  %v5497_v57 = vld [vmem:[#allocation66_spill] sm:$0xff] }
 0x2bd   :  { %1586 = vmatprep.subr.bf16.mxu0 %v5487_v58  ;;  %1627 = vmatprep.subr.bf16.mxu1 %v5488_v59  ;;  %v5498_v58 = vld [vmem:[#allocation67_spill] sm:$0xff]  ;;  %v5499_v59 = vld [vmem:[#allocation68_spill] sm:$0xff] }
 0x2c0   :  { %1587 = vmatpush2.bf16.msra.mxu0 %v5489_v63  ;;  %1628 = vmatpush2.bf16.msra.mxu1 %v5490_v2  ;;  %v5500_v63 = vld [vmem:[#allocation69_spill] sm:$0xff]  ;;  %v5501_v2 = vld [vmem:[#allocation70_spill] sm:$0xff] }
 0x2c1   :  { %1588 = vmatprep.subr.bf16.mxu0 %v5491_v3  ;;  %1629 = vmatprep.subr.bf16.mxu1 %v5492_v13  ;;  %v5502_v3 = vld [vmem:[#allocation71_spill] sm:$0xff]  ;;  %v5503_v13 = vld [vmem:[#allocation72_spill] sm:$0xff] }
 0x2c4   :  { %1589 = vmatpush2.bf16.msra.mxu0 %v5493_v49  ;;  %1630 = vmatpush2.bf16.msra.mxu1 %v5494_v50  ;;  %v5504_v49 = vld [vmem:[#allocation73_spill] sm:$0xff]  ;;  %v5505_v50 = vld [vmem:[#allocation74_spill] sm:$0xff] }
 0x2c5   :  { %1590 = vmatprep.subr.bf16.mxu0 %v5495_v51  ;;  %1631 = vmatprep.subr.bf16.mxu1 %v5496_v55  ;;  %v5506_v51 = vld [vmem:[#allocation75_spill] sm:$0xff]  ;;  %v5507_v55 = vld [vmem:[#allocation76_spill] sm:$0xff] }
 0x2c8   :  { %1591 = vmatpush2.bf16.msra.mxu0 %v5497_v57  ;;  %1632 = vmatpush2.bf16.msra.mxu1 %v5498_v58  ;;  %v5508_v57 = vld [vmem:[#allocation77_spill] sm:$0xff]  ;;  %v5509_v58 = vld [vmem:[#allocation80_spill] sm:$0xff] }
 0x2c9   :  { %1592 = vmatprep.subr.bf16.mxu0 %v5499_v59  ;;  %1633 = vmatprep.subr.bf16.mxu1 %v5500_v63  ;;  %v5510_v59 = vld [vmem:[#allocation146_spill] sm:$0xff] }
 0x2ca   :  { %v362_v48 = vadd.f32 %v5510_v59, %v5509_v58  ;;  %v5511_v63 = vld [vmem:[#allocation82_spill] sm:$0xff] }
 0x2cc   :  { %1593 = vmatpush2.bf16.msra.mxu0 %v5501_v2  ;;  %1634 = vmatpush2.bf16.msra.mxu1 %v5502_v3  ;;  %v435_v2 = vadd.f32 %v5512_v47, %v5511_v63 }
 0x2cd   :  { %1594 = vmatprep.subr.bf16.mxu0 %v5503_v13  ;;  %1635 = vmatprep.subr.bf16.mxu1 %v5504_v49  ;;  %v5513_v13 = vld [vmem:[#allocation148_spill] sm:$0xff]  ;;  %v5514_v49 = vld [vmem:[#allocation147_spill] sm:$0xff] }
 0x2ce   :  { %v364_v41 = vadd.f32 %v5513_v13, %v5409_v21 }
 0x2d0   :  { %1595 = vmatpush2.bf16.msra.mxu0 %v5505_v50  ;;  %1636 = vmatpush2.bf16.msra.mxu1 %v5506_v51  ;;  %v437_v50 = vadd.f32 %v5514_v49, %v5420_v4 }
 0x2d1   :  { %1646 = vmatprep.subr.bf16.mxu0 %v5507_v55  ;;  %1687 = vmatprep.subr.bf16.mxu1 %v5508_v57 }
 0x313   :  { %v1388_v46 = vpop.f32.mrf.mxu0  ;;  %v1429_v3 = vpop.f32.mrf.mxu1 }
 0x314   :  { %v1540_v40 = vadd.f32 %v1388_v46, %v362_v48  ;;  %v1542_v51 = vadd.f32 %v1429_v3, %v435_v2 }
 0x315   :  { %v1390_v39 = vpop.f32.mrf.mxu0  ;;  %v1431_v55 = vpop.f32.mrf.mxu1 }
 0x316   :  { %v1544_v38 = vmul.f32 0.5, %v1540_v40  ;;  %v1541_v57 = vadd.f32 %v1390_v39, %v364_v41  ;;  %v1543_v36 = vadd.f32 %v1431_v55, %v437_v50 }
 0x317   :  { %v1392_v33 = vpop.f32.mrf.mxu0  ;;  %v1433_v59 = vpop.f32.mrf.mxu1 }
 0x318   :  { %3100 = vtanh.f32 %v1544_v38  ;;  %v1548_v58 = vmul.f32 0.5, %v1541_v57  ;;  %v5515_v38 = vld [vmem:[#allocation84_spill] sm:$0xff] }
 0x319   :  { %v1393_v47 = vpop.f32.mrf.mxu0  ;;  %v1434_v63 = vpop.f32.mrf.mxu1 }
 0x31a   :  { %3102 = vtanh.f32 %v1548_v58  ;;  %v1553_v47 = vmul.f32 0.5, %v1543_v36 }
 0x31b   :  { %3104 = vtanh.f32 %v1542_v51 }
 0x325   :  { %v3101_v32 = vpop.eup %3100 }
 0x326   :  { %v1546_v13 = vmul.f32 0.5, %v3101_v32 }
 0x327   :  { %v3103_v21 = vpop.eup %3102 }
 0x328   :  { %v1547_v30 = vadd.f32 0.5, %v1546_v13  ;;  %v1550_v49 = vmul.f32 0.5, %v3103_v21  ;;  %v3105_v46 = vpop.eup %3104 }
 0x32a   :  { %v1551_v48 = vadd.f32 0.5, %v1550_v49  ;;  %v1558_v2 = vmul.f32 %v3105_v46, %v1547_v30 }
 0x32c   :  { %v1557_v40 = vmul.f32 %v1551_v48, %v3956_v19 }
 0x32e   :  { %v4130_v39 = vadd.f32 %v1558_v2, %v1557_v40 }
 0x353   :  { %v1470_v33 = vpop.f32.mrf.mxu0  ;;  %v1511_v41 = vpop.f32.mrf.mxu1 }
 0x354   :  { %v1518_v50 = vadd.f32 %v1470_v33, %v5515_v38  ;;  %v1520_v30 = vadd.f32 %v1511_v41, %v3972_v0 }
 0x355   :  { %v1472_v55 = vpop.f32.mrf.mxu0  ;;  %v1513_v57 = vpop.f32.mrf.mxu1 }
 0x356   :  { %v1522_v58 = vmul.f32 0.5, %v1518_v50  ;;  %v1519_v51 = vadd.f32 %v1472_v55, %v3967_v37  ;;  %v1521_v19 = vadd.f32 %v1513_v57, %v3978_v26 }
 0x357   :  { %v1474_v32 = vpop.f32.mrf.mxu0  ;;  %v1515_v63 = vpop.f32.mrf.mxu1 }
 0x358   :  { %3106 = vtanh.f32 %v1522_v58  ;;  %v1526_v3 = vmul.f32 0.5, %v1519_v51  ;;  %v1531_v13 = vmul.f32 0.5, %v1521_v19 }
 0x359   :  { %v1475_v21 = vpop.f32.mrf.mxu0  ;;  %v1516_v59 = vpop.f32.mrf.mxu1 }
 0x35a   :  { %3108 = vtanh.f32 %v1526_v3 }
 0x35b   :  { %3110 = vtanh.f32 %v1520_v30 }
 0x35c   :  { %3112 = vtanh.f32 %v1553_v47 }
 0x35d   :  { %3114 = vtanh.f32 %v1531_v13 }
 0x35e   :  { %3116 = vtanh.f32 %v4130_v39 }
 0x365   :  { %v3107_v49 = vpop.eup %3106 }
 0x366   :  { %v1524_v46 = vmul.f32 0.5, %v3107_v49  ;;  %v5517_v49 = vld [vmem:[#allocation90_spill] sm:$0xff] }
 0x367   :  { %v3109_v48 = vpop.eup %3108 }
 0x368   :  { %v1525_v2 = vadd.f32 0.5, %v1524_v46  ;;  %v1528_v40 = vmul.f32 0.5, %v3109_v48  ;;  %v3111_v50 = vpop.eup %3110  ;;  %v5518_v46 = vld [vmem:[#allocation91_spill] sm:$0xff]  ;;  %v5519_v48 = vld [vmem:[#allocation92_spill] sm:$0xff] }
 0x369   :  { %v3113_v36 = vpop.eup %3112 }
 0x36a   :  { %v1529_v33 = vadd.f32 0.5, %v1528_v40  ;;  %v1536_v58 = vmul.f32 %v3111_v50, %v1525_v2  ;;  %v3115_v57 = vpop.eup %3114  ;;  %v1555_v51 = vmul.f32 0.5, %v3113_v36  ;;  %v5520_v2 = vld [vmem:[#allocation93_spill] sm:$0xff]  ;;  %v5521_v40 = vld [vmem:[#allocation94_spill] sm:$0xff]  ;;  %v5523_v50 = vld [vmem:[#allocation96_spill] sm:$0xff] }
 0x36b   :  { %v1533_v32 = vmul.f32 0.5, %v3115_v57  ;;  %v3117_v63 = vpop.eup %3116  ;;  %v5526_v36 = vld [vmem:[#allocation99_spill] sm:$0xff]  ;;  %v5527_v57 = vld [vmem:[#allocation100_spill] sm:$0xff] }
 0x36c   :  { %v1535_v55 = vmul.f32 %v1529_v33, %v3984_v43  ;;  %v1556_v3 = vadd.f32 0.5, %v1555_v51  ;;  %v5516_v43 = vld [vmem:[#allocation89_spill] sm:$0xff]  ;;  %v5522_v33 = vld [vmem:[#allocation95_spill] sm:$0xff] }
 0x36d   :  { %v1534_v21 = vadd.f32 0.5, %v1533_v32  ;;  %v5528_v51 = vld [vmem:[#allocation101_spill] sm:$0xff]  ;;  %v5529_v32 = vld [vmem:[#allocation102_spill] sm:$0xff] }
 0x36e   :  { %v4138_v41 = vadd.f32 %v1536_v58, %v1535_v55  ;;  %v1561_v30 = vmul.f32 %v3117_v63, %v1556_v3  ;;  %v5524_v55 = vld [vmem:[#allocation97_spill] sm:$0xff]  ;;  %v5525_v58 = vld [vmem:[#allocation98_spill] sm:$0xff]  ;;  %v5530_v63 = vld [vmem:[#allocation103_spill] sm:$0xff] }
 0x36f   :  { %v5531_v3 = vld [vmem:[#allocation104_spill] sm:$0xff] }
 0x370   :  { %3118 = vtanh.f32 %v4138_v41  ;;  %v4141_v13 = vpack.c.bf16 %v1561_v30, %v1561_v30  ;;  %v5534_v30 = vld [vmem:[#allocation107_spill] sm:$0xff] }
 0x37d   :  { %v3119_v59 = vpop.eup %3118 }
 0x37e   :  { %v1539_v19 = vmul.f32 %v3119_v59, %v1534_v21  ;;  %v5532_v21 = vld [vmem:[#allocation105_spill] sm:$0xff]  ;;  %v5533_v59 = vld [vmem:[#allocation106_spill] sm:$0xff] }
 0x380   :  { %v1563_v47 = vpack.c.bf16 %v1539_v19, %v1539_v19  ;;  %v5535_v19 = vld [vmem:[#allocation108_spill] sm:$0xff] }
 0x382   :  { %1596 = vmatprep.mubr.bf16.mxu0 %v1563_v47  ;;  %1637 = vmatprep.mubr.bf16.mxu1 %v1563_v47 }
 0x383   :  { %1597 = vmatmul.mubr.bf16.vlgmr.msra.gmra.mxu0 %v4141_v13  ;;  %1638 = vmatmul.mubr.bf16.vlgmr.msra.gmra.mxu1 %v4141_v13 }
 0x384   :  { %1647 = vmatpush1.bf16.msra.mxu0 %v3608_v20  ;;  %1688 = vmatpush1.bf16.msra.mxu1 %v5421_v29 }
 0x385   :  { %1678 = vmatprep.mubr.bf16.mxu0 %v1563_v47  ;;  %1719 = vmatprep.mubr.bf16.mxu1 %v1563_v47  ;;  %v5536_v47 = vld [vmem:[#allocation109_spill] sm:$0xff] }
 0x386   :  { %1648 = vmatprep.subr.bf16.mxu0 %v5422_v53  ;;  %1689 = vmatprep.subr.bf16.mxu1 %v5423_v8 }
 0x388   :  { %1649 = vmatpush1.bf16.msra.mxu0 %v5424_v10  ;;  %1690 = vmatpush1.bf16.msra.mxu1 %v5425_v31 }
 0x389   :  { %1650 = vmatprep.subr.bf16.mxu0 %v5516_v43  ;;  %1691 = vmatprep.subr.bf16.mxu1 %v5517_v49 }
 0x38c   :  { %1651 = vmatpush1.bf16.msra.mxu0 %v5518_v46  ;;  %1692 = vmatpush1.bf16.msra.mxu1 %v5519_v48 }
 0x38d   :  { %1652 = vmatprep.subr.bf16.mxu0 %v5520_v2  ;;  %1693 = vmatprep.subr.bf16.mxu1 %v5521_v40 }
 0x390   :  { %1653 = vmatpush1.bf16.msra.mxu0 %v5522_v33  ;;  %1694 = vmatpush1.bf16.msra.mxu1 %v5523_v50 }
 0x391   :  { %1654 = vmatprep.subr.bf16.mxu0 %v5524_v55  ;;  %1695 = vmatprep.subr.bf16.mxu1 %v5525_v58 }
 0x394   :  { %1655 = vmatpush1.bf16.msra.mxu0 %v5526_v36  ;;  %1696 = vmatpush1.bf16.msra.mxu1 %v5527_v57  ;;  %v5537_v36 = vld [vmem:[#allocation110_spill] sm:$0xff]  ;;  %v5538_v57 = vld [vmem:[#allocation111_spill] sm:$0xff] }
 0x395   :  { %1656 = vmatprep.subr.bf16.mxu0 %v5528_v51  ;;  %1697 = vmatprep.subr.bf16.mxu1 %v5529_v32  ;;  %v5539_v51 = vld [vmem:[#allocation112_spill] sm:$0xff]  ;;  %v5540_v32 = vld [vmem:[#allocation113_spill] sm:$0xff] }
 0x398   :  { %1657 = vmatpush1.bf16.msra.mxu0 %v5530_v63  ;;  %1698 = vmatpush1.bf16.msra.mxu1 %v5531_v3  ;;  %v5541_v63 = vld [vmem:[#allocation114_spill] sm:$0xff]  ;;  %v5542_v3 = vld [vmem:[#allocation115_spill] sm:$0xff] }
 0x399   :  { %1658 = vmatprep.subr.bf16.mxu0 %v5532_v21  ;;  %1699 = vmatprep.subr.bf16.mxu1 %v5533_v59  ;;  %v5543_v21 = vld [vmem:[#allocation116_spill] sm:$0xff]  ;;  %v5544_v59 = vld [vmem:[#allocation117_spill] sm:$0xff] }
 0x39c   :  { %1659 = vmatpush1.bf16.msra.mxu0 %v5534_v30  ;;  %1700 = vmatpush1.bf16.msra.mxu1 %v5535_v19  ;;  %v5545_v30 = vld [vmem:[#allocation118_spill] sm:$0xff]  ;;  %v5546_v19 = vld [vmem:[#allocation119_spill] sm:$0xff] }
 0x39d   :  { %1660 = vmatprep.subr.bf16.mxu0 %v5536_v47  ;;  %1701 = vmatprep.subr.bf16.mxu1 %v5537_v36 }
 0x3a0   :  { %1661 = vmatpush1.bf16.msra.mxu0 %v5538_v57  ;;  %1702 = vmatpush1.bf16.msra.mxu1 %v5539_v51  ;;  %v5547_v51 = vld [vmem:[#allocation123_spill] sm:$0xff] }
 0x3a1   :  { %1662 = vmatprep.subr.bf16.mxu0 %v5540_v32  ;;  %1703 = vmatprep.subr.bf16.mxu1 %v5541_v63  ;;  %v5548_v32 = vld [vmem:[#allocation124_spill] sm:$0xff] }
 0x3a4   :  { %1663 = vmatpush2.bf16.msra.mxu0 %v5542_v3  ;;  %1704 = vmatpush2.bf16.msra.mxu1 %v5543_v21 }
 0x3a5   :  { %1664 = vmatprep.subr.bf16.mxu0 %v5544_v59  ;;  %1705 = vmatprep.subr.bf16.mxu1 %v5545_v30 }
 0x3a8   :  { %1665 = vmatpush2.bf16.msra.mxu0 %v5546_v19  ;;  %1706 = vmatpush2.bf16.msra.mxu1 %v5457_v24 }
 0x3a9   :  { %1666 = vmatprep.subr.bf16.mxu0 %v5458_v56  ;;  %1707 = vmatprep.subr.bf16.mxu1 %v5459_v42 }
 0x3ac   :  { %1667 = vmatpush2.bf16.msra.mxu0 %v5547_v51  ;;  %1708 = vmatpush2.bf16.msra.mxu1 %v5548_v32 }
 0x3ad   :  { %1668 = vmatprep.subr.bf16.mxu0 %v5462_v11  ;;  %1709 = vmatprep.subr.bf16.mxu1 %v5463_v35 }
 0x3b0   :  { %1669 = vmatpush2.bf16.msra.mxu0 %v5464_v5  ;;  %1710 = vmatpush2.bf16.msra.mxu1 %v5465_v60 }
 0x3b1   :  { %1670 = vmatprep.subr.bf16.mxu0 %v5466_v14  ;;  %1711 = vmatprep.subr.bf16.mxu1 %v5467_v34 }
 0x3b4   :  { %1671 = vmatpush2.bf16.msra.mxu0 %v3790_v54  ;;  %1712 = vmatpush2.bf16.msra.mxu1 %v3792_v62 }
 0x3b5   :  { %1672 = vmatprep.subr.bf16.mxu0 %v3796_v7  ;;  %1713 = vmatprep.subr.bf16.mxu1 %v5468_v12 }
 0x3b8   :  { %1673 = vmatpush2.bf16.msra.mxu0 %v5469_v61  ;;  %1714 = vmatpush2.bf16.msra.mxu1 %v3804_v44 }
 0x3b9   :  { %1674 = vmatprep.subr.bf16.mxu0 %v3808_v52  ;;  %1715 = vmatprep.subr.bf16.mxu1 %v3810_v9  ;;  %v5613_v52 = vld [vmem:[#allocation81_spill] sm:$0xff] }
 0x3bc   :  { %1675 = vmatpush2.bf16.msra.mxu0 %v3814_v28  ;;  %1716 = vmatpush2.bf16.msra.mxu1 %v3816_v45  ;;  %v5612_v28 = vld [vmem:[#allocation149_spill] sm:$0xff] }
 0x3bd   :  { %1676 = vmatprep.subr.bf16.mxu0 %v3820_v15  ;;  %1717 = vmatprep.subr.bf16.mxu1 %v3822_v1  ;;  %v5549_v1 = vld [vmem:[#allocation18_spill] sm:$0xff]  ;;  %v5554_v15 = vld [vmem:[#allocation23_spill] sm:$0xff] }
 0x3c0   :  { %1677 = vmatpush2.bf16.msra.mxu0 %v3826_v27  ;;  %1718 = vmatpush2.bf16.msra.mxu1 %v3828_v6  ;;  %v5550_v27 = vld [vmem:[#allocation19_spill] sm:$0xff]  ;;  %v5551_v6 = vld [vmem:[#allocation20_spill] sm:$0xff] }
 0x3c1   :  { %1774 = vmatprep.subr.bf16.mxu0 %v3387_v16  ;;  %1815 = vmatprep.subr.bf16.mxu1 %v3389_v17  ;;  %v5552_v16 = vld [vmem:[#allocation21_spill] sm:$0xff]  ;;  %v5553_v17 = vld [vmem:[#allocation22_spill] sm:$0xff] }
 0x3c3   :  { %1679 = vmatmul.mubr.bf16.vlgmr.msra.gmra.mxu0 %v4141_v13  ;;  %1720 = vmatmul.mubr.bf16.vlgmr.msra.gmra.mxu1 %v4141_v13  ;;  %v5555_v13 = vld [vmem:[#allocation24_spill] sm:$0xff] }
 0x3c4   :  { %1775 = vmatpush1.bf16.msra.mxu0 %v3391_v18  ;;  %1816 = vmatpush1.bf16.msra.mxu1 %v3393_v22  ;;  %v5556_v18 = vld [vmem:[#allocation25_spill] sm:$0xff]  ;;  %v5557_v22 = vld [vmem:[#allocation26_spill] sm:$0xff] }
 0x3c5   :  { %1776 = vmatprep.subr.bf16.mxu0 %v3395_v23  ;;  %1817 = vmatprep.subr.bf16.mxu1 %v3399_v25  ;;  %v5558_v23 = vld [vmem:[#allocation27_spill] sm:$0xff]  ;;  %v5559_v25 = vld [vmem:[#allocation28_spill] sm:$0xff] }
 0x3c8   :  { %1777 = vmatpush1.bf16.msra.mxu0 %v5549_v1  ;;  %1818 = vmatpush1.bf16.msra.mxu1 %v5550_v27  ;;  %v5560_v1 = vld [vmem:[#allocation29_spill] sm:$0xff]  ;;  %v5561_v27 = vld [vmem:[#allocation30_spill] sm:$0xff] }
 0x3c9   :  { %1778 = vmatprep.subr.bf16.mxu0 %v5551_v6  ;;  %1819 = vmatprep.subr.bf16.mxu1 %v5552_v16  ;;  %v5562_v6 = vld [vmem:[#allocation31_spill] sm:$0xff]  ;;  %v5563_v16 = vld [vmem:[#allocation32_spill] sm:$0xff] }
 0x3cc   :  { %1779 = vmatpush1.bf16.msra.mxu0 %v5553_v17  ;;  %1820 = vmatpush1.bf16.msra.mxu1 %v5554_v15  ;;  %v5564_v17 = vld [vmem:[#allocation33_spill] sm:$0xff]  ;;  %v5565_v15 = vld [vmem:[#allocation34_spill] sm:$0xff] }
 0x3cd   :  { %1780 = vmatprep.subr.bf16.mxu0 %v5555_v13  ;;  %1821 = vmatprep.subr.bf16.mxu1 %v5556_v18  ;;  %v5566_v13 = vld [vmem:[#allocation35_spill] sm:$0xff]  ;;  %v5567_v18 = vld [vmem:[#allocation36_spill] sm:$0xff] }
 0x3d0   :  { %1781 = vmatpush1.bf16.msra.mxu0 %v5557_v22  ;;  %1822 = vmatpush1.bf16.msra.mxu1 %v5558_v23  ;;  %v5568_v22 = vld [vmem:[#allocation37_spill] sm:$0xff]  ;;  %v5569_v23 = vld [vmem:[#allocation38_spill] sm:$0xff] }
 0x3d1   :  { %1782 = vmatprep.subr.bf16.mxu0 %v5559_v25  ;;  %1823 = vmatprep.subr.bf16.mxu1 %v5560_v1  ;;  %v5570_v25 = vld [vmem:[#allocation39_spill] sm:$0xff]  ;;  %v5571_v1 = vld [vmem:[#allocation40_spill] sm:$0xff] }
 0x3d4   :  { %1783 = vmatpush1.bf16.msra.mxu0 %v5561_v27  ;;  %1824 = vmatpush1.bf16.msra.mxu1 %v5562_v6  ;;  %v5572_v27 = vld [vmem:[#allocation41_spill] sm:$0xff]  ;;  %v5573_v6 = vld [vmem:[#allocation42_spill] sm:$0xff] }
 0x3d5   :  { %1784 = vmatprep.subr.bf16.mxu0 %v5563_v16  ;;  %1825 = vmatprep.subr.bf16.mxu1 %v5564_v17  ;;  %v5574_v16 = vld [vmem:[#allocation43_spill] sm:$0xff]  ;;  %v5575_v17 = vld [vmem:[#allocation44_spill] sm:$0xff] }
 0x3d8   :  { %1785 = vmatpush1.bf16.msra.mxu0 %v5565_v15  ;;  %1826 = vmatpush1.bf16.msra.mxu1 %v5566_v13  ;;  %v5576_v15 = vld [vmem:[#allocation45_spill] sm:$0xff]  ;;  %v5577_v13 = vld [vmem:[#allocation46_spill] sm:$0xff] }
 0x3d9   :  { %1786 = vmatprep.subr.bf16.mxu0 %v5567_v18  ;;  %1827 = vmatprep.subr.bf16.mxu1 %v5568_v22  ;;  %v5578_v18 = vld [vmem:[#allocation47_spill] sm:$0xff]  ;;  %v5579_v22 = vld [vmem:[#allocation48_spill] sm:$0xff] }
 0x3dc   :  { %1787 = vmatpush1.bf16.msra.mxu0 %v5569_v23  ;;  %1828 = vmatpush1.bf16.msra.mxu1 %v5570_v25  ;;  %v5580_v23 = vld [vmem:[#allocation49_spill] sm:$0xff]  ;;  %v5581_v25 = vld [vmem:[#allocation50_spill] sm:$0xff] }
 0x3dd   :  { %1788 = vmatprep.subr.bf16.mxu0 %v5571_v1  ;;  %1829 = vmatprep.subr.bf16.mxu1 %v5572_v27  ;;  %v5582_v1 = vld [vmem:[#allocation51_spill] sm:$0xff]  ;;  %v5583_v27 = vld [vmem:[#allocation52_spill] sm:$0xff] }
 0x3e0   :  { %1789 = vmatpush1.bf16.msra.mxu0 %v5573_v6  ;;  %1830 = vmatpush1.bf16.msra.mxu1 %v5574_v16  ;;  %v5584_v6 = vld [vmem:[#allocation53_spill] sm:$0xff]  ;;  %v5585_v16 = vld [vmem:[#allocation54_spill] sm:$0xff] }
 0x3e1   :  { %1790 = vmatprep.subr.bf16.mxu0 %v5575_v17  ;;  %1831 = vmatprep.subr.bf16.mxu1 %v5576_v15  ;;  %v5586_v17 = vld [vmem:[#allocation55_spill] sm:$0xff]  ;;  %v5587_v15 = vld [vmem:[#allocation56_spill] sm:$0xff] }
 0x3e4   :  { %1791 = vmatpush2.bf16.msra.mxu0 %v5577_v13  ;;  %1832 = vmatpush2.bf16.msra.mxu1 %v5578_v18  ;;  %v5588_v13 = vld [vmem:[#allocation57_spill] sm:$0xff]  ;;  %v5589_v18 = vld [vmem:[#allocation58_spill] sm:$0xff] }
 0x3e5   :  { %1792 = vmatprep.subr.bf16.mxu0 %v5579_v22  ;;  %1833 = vmatprep.subr.bf16.mxu1 %v5580_v23  ;;  %v5590_v22 = vld [vmem:[#allocation59_spill] sm:$0xff]  ;;  %v5591_v23 = vld [vmem:[#allocation60_spill] sm:$0xff] }
 0x3e8   :  { %1793 = vmatpush2.bf16.msra.mxu0 %v5581_v25  ;;  %1834 = vmatpush2.bf16.msra.mxu1 %v5582_v1  ;;  %v5592_v25 = vld [vmem:[#allocation61_spill] sm:$0xff]  ;;  %v5593_v1 = vld [vmem:[#allocation62_spill] sm:$0xff] }
 0x3e9   :  { %1794 = vmatprep.subr.bf16.mxu0 %v5583_v27  ;;  %1835 = vmatprep.subr.bf16.mxu1 %v5584_v6  ;;  %v5594_v27 = vld [vmem:[#allocation63_spill] sm:$0xff]  ;;  %v5595_v6 = vld [vmem:[#allocation64_spill] sm:$0xff] }
 0x3ec   :  { %1795 = vmatpush2.bf16.msra.mxu0 %v5585_v16  ;;  %1836 = vmatpush2.bf16.msra.mxu1 %v5586_v17  ;;  %v5596_v16 = vld [vmem:[#allocation65_spill] sm:$0xff]  ;;  %v5597_v17 = vld [vmem:[#allocation66_spill] sm:$0xff] }
 0x3ed   :  { %1796 = vmatprep.subr.bf16.mxu0 %v5587_v15  ;;  %1837 = vmatprep.subr.bf16.mxu1 %v5588_v13  ;;  %v5598_v15 = vld [vmem:[#allocation67_spill] sm:$0xff]  ;;  %v5599_v13 = vld [vmem:[#allocation68_spill] sm:$0xff] }
 0x3f0   :  { %1797 = vmatpush2.bf16.msra.mxu0 %v5589_v18  ;;  %1838 = vmatpush2.bf16.msra.mxu1 %v5590_v22  ;;  %v5600_v18 = vld [vmem:[#allocation69_spill] sm:$0xff]  ;;  %v5601_v22 = vld [vmem:[#allocation70_spill] sm:$0xff] }
 0x3f1   :  { %1798 = vmatprep.subr.bf16.mxu0 %v5591_v23  ;;  %1839 = vmatprep.subr.bf16.mxu1 %v5592_v25  ;;  %v5602_v23 = vld [vmem:[#allocation71_spill] sm:$0xff]  ;;  %v5603_v25 = vld [vmem:[#allocation72_spill] sm:$0xff] }
 0x3f4   :  { %1799 = vmatpush2.bf16.msra.mxu0 %v5593_v1  ;;  %1840 = vmatpush2.bf16.msra.mxu1 %v5594_v27  ;;  %v5604_v1 = vld [vmem:[#allocation73_spill] sm:$0xff]  ;;  %v5605_v27 = vld [vmem:[#allocation74_spill] sm:$0xff] }
 0x3f5   :  { %1800 = vmatprep.subr.bf16.mxu0 %v5595_v6  ;;  %1841 = vmatprep.subr.bf16.mxu1 %v5596_v16  ;;  %v5606_v6 = vld [vmem:[#allocation75_spill] sm:$0xff]  ;;  %v5607_v16 = vld [vmem:[#allocation76_spill] sm:$0xff] }
 0x3f8   :  { %1801 = vmatpush2.bf16.msra.mxu0 %v5597_v17  ;;  %1842 = vmatpush2.bf16.msra.mxu1 %v5598_v15  ;;  %v5608_v17 = vld [vmem:[#allocation77_spill] sm:$0xff]  ;;  %v5609_v15 = vld [vmem:[#allocation80_spill] sm:$0xff] }
 0x3f9   :  { %1802 = vmatprep.subr.bf16.mxu0 %v5599_v13  ;;  %1843 = vmatprep.subr.bf16.mxu1 %v5600_v18  ;;  %v5610_v13 = vld [vmem:[#allocation150_spill] sm:$0xff] }
 0x3fa   :  { %v366_v45 = vadd.f32 %v5610_v13, %v5609_v15  ;;  %v5611_v18 = vld [vmem:[#allocation82_spill] sm:$0xff] }
 0x3fc   :  { %1803 = vmatpush2.bf16.msra.mxu0 %v5601_v22  ;;  %1844 = vmatpush2.bf16.msra.mxu1 %v5602_v23  ;;  %v439_v22 = vadd.f32 %v5612_v28, %v5611_v18 }
 0x3fd   :  { %1804 = vmatprep.subr.bf16.mxu0 %v5603_v25  ;;  %1845 = vmatprep.subr.bf16.mxu1 %v5604_v1  ;;  %v5614_v25 = vld [vmem:[#allocation152_spill] sm:$0xff]  ;;  %v5615_v1 = vld [vmem:[#allocation151_spill] sm:$0xff] }
 0x3fe   :  { %v368_v44 = vadd.f32 %v5614_v25, %v5613_v52 }
 0x400   :  { %1805 = vmatpush2.bf16.msra.mxu0 %v5605_v27  ;;  %1846 = vmatpush2.bf16.msra.mxu1 %v5606_v6  ;;  %v441_v27 = vadd.f32 %v5615_v1, %v5420_v4 }
 0x401   :  { %1856 = vmatprep.subr.bf16.mxu0 %v5607_v16  ;;  %1897 = vmatprep.subr.bf16.mxu1 %v5608_v17 }
 0x443   :  { %v1598_v9 = vpop.f32.mrf.mxu0  ;;  %v1639_v23 = vpop.f32.mrf.mxu1 }
 0x444   :  { %v1750_v61 = vadd.f32 %v1598_v9, %v366_v45  ;;  %v1752_v6 = vadd.f32 %v1639_v23, %v439_v22 }
 0x445   :  { %v1600_v12 = vpop.f32.mrf.mxu0  ;;  %v1641_v16 = vpop.f32.mrf.mxu1 }
 0x446   :  { %v1754_v7 = vmul.f32 0.5, %v1750_v61  ;;  %v1751_v17 = vadd.f32 %v1600_v12, %v368_v44  ;;  %v1753_v62 = vadd.f32 %v1641_v16, %v441_v27 }
 0x447   :  { %v1602_v54 = vpop.f32.mrf.mxu0  ;;  %v1643_v13 = vpop.f32.mrf.mxu1 }
 0x448   :  { %3120 = vtanh.f32 %v1754_v7  ;;  %v1758_v15 = vmul.f32 0.5, %v1751_v17  ;;  %v1763_v13 = vmul.f32 0.5, %v1753_v62 }
 0x449   :  { %v1603_v28 = vpop.f32.mrf.mxu0  ;;  %v1644_v18 = vpop.f32.mrf.mxu1 }
 0x44a   :  { %3122 = vtanh.f32 %v1758_v15 }
 0x44b   :  { %3124 = vtanh.f32 %v1752_v6 }
 0x455   :  { %v3121_v34 = vpop.eup %3120 }
 0x456   :  { %v1756_v25 = vmul.f32 0.5, %v3121_v34 }
 0x457   :  { %v3123_v52 = vpop.eup %3122 }
 0x458   :  { %v1757_v14 = vadd.f32 0.5, %v1756_v25  ;;  %v1760_v1 = vmul.f32 0.5, %v3123_v52  ;;  %v3125_v9 = vpop.eup %3124 }
 0x45a   :  { %v1761_v22 = vadd.f32 0.5, %v1760_v1  ;;  %v1768_v23 = vmul.f32 %v3125_v9, %v1757_v14 }
 0x45c   :  { %v1767_v45 = vmul.f32 %v1761_v22, %v4130_v39 }
 0x45e   :  { %v4284_v44 = vadd.f32 %v1768_v23, %v1767_v45 }
 0x483   :  { %v1680_v16 = vpop.f32.mrf.mxu0  ;;  %v1721_v54 = vpop.f32.mrf.mxu1 }
 0x484   :  { %v1728_v17 = vadd.f32 %v1680_v16, %v5515_v38  ;;  %v1730_v14 = vadd.f32 %v1721_v54, %v3972_v0 }
 0x485   :  { %v1682_v7 = vpop.f32.mrf.mxu0  ;;  %v1723_v18 = vpop.f32.mrf.mxu1 }
 0x486   :  { %v1732_v27 = vmul.f32 0.5, %v1728_v17  ;;  %v1729_v6 = vadd.f32 %v1682_v7, %v3967_v37  ;;  %v1731_v39 = vadd.f32 %v1723_v18, %v3978_v26 }
 0x487   :  { %v1684_v15 = vpop.f32.mrf.mxu0  ;;  %v1725_v12 = vpop.f32.mrf.mxu1 }
 0x488   :  { %3126 = vtanh.f32 %v1732_v27  ;;  %v1736_v52 = vmul.f32 0.5, %v1729_v6  ;;  %v1741_v28 = vmul.f32 0.5, %v1731_v39 }
 0x489   :  { %v1685_v61 = vpop.f32.mrf.mxu0  ;;  %v1726_v34 = vpop.f32.mrf.mxu1 }
 0x48a   :  { %3128 = vtanh.f32 %v1736_v52 }
 0x48b   :  { %3130 = vtanh.f32 %v1730_v14 }
 0x48c   :  { %3132 = vtanh.f32 %v1763_v13 }
 0x48d   :  { %3134 = vtanh.f32 %v1741_v28  ;;  %v5617_v28 = vld [vmem:[#allocation100_spill] sm:$0xff] }
 0x48e   :  { %3136 = vtanh.f32 %v4284_v44 }
 0x495   :  { %v3127_v25 = vpop.eup %3126 }
 0x496   :  { %v1734_v1 = vmul.f32 0.5, %v3127_v25  ;;  %v5618_v25 = vld [vmem:[#allocation101_spill] sm:$0xff] }
 0x497   :  { %v3129_v9 = vpop.eup %3128 }
 0x498   :  { %v1735_v22 = vadd.f32 0.5, %v1734_v1  ;;  %v1738_v23 = vmul.f32 0.5, %v3129_v9  ;;  %v3131_v16 = vpop.eup %3130  ;;  %v5619_v1 = vld [vmem:[#allocation102_spill] sm:$0xff]  ;;  %v5620_v9 = vld [vmem:[#allocation103_spill] sm:$0xff] }
 0x499   :  { %v3133_v62 = vpop.eup %3132 }
 0x49a   :  { %v1739_v45 = vadd.f32 0.5, %v1738_v23  ;;  %v1746_v7 = vmul.f32 %v3131_v16, %v1735_v22  ;;  %v3135_v18 = vpop.eup %3134  ;;  %v1765_v27 = vmul.f32 0.5, %v3133_v62  ;;  %v5621_v22 = vld [vmem:[#allocation104_spill] sm:$0xff]  ;;  %v5622_v23 = vld [vmem:[#allocation105_spill] sm:$0xff]  ;;  %v5624_v16 = vld [vmem:[#allocation107_spill] sm:$0xff] }
 0x49b   :  { %v1743_v6 = vmul.f32 0.5, %v3135_v18  ;;  %v3137_v15 = vpop.eup %3136  ;;  %v5627_v62 = vld [vmem:[#allocation113_spill] sm:$0xff] }
 0x49c   :  { %v1745_v17 = vmul.f32 %v1739_v45, %v4138_v41  ;;  %v1766_v12 = vadd.f32 0.5, %v1765_v27  ;;  %v5616_v41 = vld [vmem:[#allocation99_spill] sm:$0xff]  ;;  %v5623_v45 = vld [vmem:[#allocation106_spill] sm:$0xff]  ;;  %v5628_v18 = vld [vmem:[#allocation129_spill] sm:$0xff] }
 0x49d   :  { %v1744_v52 = vadd.f32 0.5, %v1743_v6  ;;  %v5629_v27 = vld [vmem:[#allocation130_spill] sm:$0xff]  ;;  %v5630_v6 = vld [vmem:[#allocation131_spill] sm:$0xff] }
 0x49e   :  { %v4292_v54 = vadd.f32 %v1746_v7, %v1745_v17  ;;  %v1771_v34 = vmul.f32 %v3137_v15, %v1766_v12  ;;  %v5625_v17 = vld [vmem:[#allocation108_spill] sm:$0xff]  ;;  %v5632_v12 = vld [vmem:[#allocation133_spill] sm:$0xff] }
 0x49f   :  { %v5626_v7 = vld [vmem:[#allocation112_spill] sm:$0xff] }
 0x4a0   :  { %3138 = vtanh.f32 %v4292_v54  ;;  %v4295_v13 = vpack.c.bf16 %v1771_v34, %v1771_v34  ;;  %v5631_v15 = vld [vmem:[#allocation132_spill] sm:$0xff] }
 0x4a1   :  { %v5635_v34 = vld [vmem:[#allocation136_spill] sm:$0xff] }
 0x4ad   :  { %v3139_v61 = vpop.eup %3138 }
 0x4ae   :  { %v1749_v14 = vmul.f32 %v3139_v61, %v1744_v52  ;;  %v5633_v52 = vld [vmem:[#allocation134_spill] sm:$0xff]  ;;  %v5634_v61 = vld [vmem:[#allocation135_spill] sm:$0xff] }
 0x4b0   :  { %v1773_v39 = vpack.c.bf16 %v1749_v14, %v1749_v14  ;;  %v5636_v14 = vld [vmem:[#allocation137_spill] sm:$0xff] }
 0x4b2   :  { %1806 = vmatprep.mubr.bf16.mxu0 %v1773_v39  ;;  %1847 = vmatprep.mubr.bf16.mxu1 %v1773_v39 }
 0x4b3   :  { %1807 = vmatmul.mubr.bf16.vlgmr.msra.gmra.mxu0 %v4295_v13  ;;  %1848 = vmatmul.mubr.bf16.vlgmr.msra.gmra.mxu1 %v4295_v13 }
 0x4b4   :  { %1857 = vmatpush1.bf16.msra.mxu0 %v3608_v20  ;;  %1898 = vmatpush1.bf16.msra.mxu1 %v5421_v29 }
 0x4b5   :  { %1888 = vmatprep.mubr.bf16.mxu0 %v1773_v39  ;;  %1929 = vmatprep.mubr.bf16.mxu1 %v1773_v39  ;;  %v5637_v39 = vld [vmem:[#allocation138_spill] sm:$0xff] }
 0x4b6   :  { %1858 = vmatprep.subr.bf16.mxu0 %v5422_v53  ;;  %1899 = vmatprep.subr.bf16.mxu1 %v5423_v8 }
 0x4b8   :  { %1859 = vmatpush1.bf16.msra.mxu0 %v5424_v10  ;;  %1900 = vmatpush1.bf16.msra.mxu1 %v5425_v31 }
 0x4b9   :  { %1860 = vmatprep.subr.bf16.mxu0 %v5516_v43  ;;  %1901 = vmatprep.subr.bf16.mxu1 %v5517_v49 }
 0x4bc   :  { %1861 = vmatpush1.bf16.msra.mxu0 %v5518_v46  ;;  %1902 = vmatpush1.bf16.msra.mxu1 %v5519_v48 }
 0x4bd   :  { %1862 = vmatprep.subr.bf16.mxu0 %v5520_v2  ;;  %1903 = vmatprep.subr.bf16.mxu1 %v5521_v40 }
 0x4c0   :  { %1863 = vmatpush1.bf16.msra.mxu0 %v5522_v33  ;;  %1904 = vmatpush1.bf16.msra.mxu1 %v5523_v50 }
 0x4c1   :  { %1864 = vmatprep.subr.bf16.mxu0 %v5524_v55  ;;  %1905 = vmatprep.subr.bf16.mxu1 %v5525_v58 }
 0x4c4   :  { %1865 = vmatpush1.bf16.msra.mxu0 %v5616_v41  ;;  %1906 = vmatpush1.bf16.msra.mxu1 %v5617_v28 }
 0x4c5   :  { %1866 = vmatprep.subr.bf16.mxu0 %v5618_v25  ;;  %1907 = vmatprep.subr.bf16.mxu1 %v5619_v1 }
 0x4c8   :  { %1867 = vmatpush1.bf16.msra.mxu0 %v5620_v9  ;;  %1908 = vmatpush1.bf16.msra.mxu1 %v5621_v22 }
 0x4c9   :  { %1868 = vmatprep.subr.bf16.mxu0 %v5622_v23  ;;  %1909 = vmatprep.subr.bf16.mxu1 %v5623_v45 }
 0x4cc   :  { %1869 = vmatpush1.bf16.msra.mxu0 %v5624_v16  ;;  %1910 = vmatpush1.bf16.msra.mxu1 %v5625_v17 }
 0x4cd   :  { %1870 = vmatprep.subr.bf16.mxu0 %v5536_v47  ;;  %1911 = vmatprep.subr.bf16.mxu1 %v5537_v36 }
 0x4d0   :  { %1871 = vmatpush1.bf16.msra.mxu0 %v5538_v57  ;;  %1912 = vmatpush1.bf16.msra.mxu1 %v5626_v7 }
 0x4d1   :  { %1872 = vmatprep.subr.bf16.mxu0 %v5627_v62  ;;  %1913 = vmatprep.subr.bf16.mxu1 %v5541_v63 }
 0x4d4   :  { %1873 = vmatpush2.bf16.msra.mxu0 %v5542_v3  ;;  %1914 = vmatpush2.bf16.msra.mxu1 %v5543_v21 }
 0x4d5   :  { %1874 = vmatprep.subr.bf16.mxu0 %v5544_v59  ;;  %1915 = vmatprep.subr.bf16.mxu1 %v5545_v30 }
 0x4d8   :  { %1875 = vmatpush2.bf16.msra.mxu0 %v5546_v19  ;;  %1916 = vmatpush2.bf16.msra.mxu1 %v5457_v24 }
 0x4d9   :  { %1876 = vmatprep.subr.bf16.mxu0 %v5458_v56  ;;  %1917 = vmatprep.subr.bf16.mxu1 %v5459_v42 }
 0x4dc   :  { %1877 = vmatpush2.bf16.msra.mxu0 %v5547_v51  ;;  %1918 = vmatpush2.bf16.msra.mxu1 %v5548_v32 }
 0x4dd   :  { %1878 = vmatprep.subr.bf16.mxu0 %v5462_v11  ;;  %1919 = vmatprep.subr.bf16.mxu1 %v5463_v35  ;;  %v5714_v11 = vld [vmem:[#allocation81_spill] sm:$0xff] }
 0x4e0   :  { %1879 = vmatpush2.bf16.msra.mxu0 %v5464_v5  ;;  %1920 = vmatpush2.bf16.msra.mxu1 %v5465_v60  ;;  %v5638_v60 = vld [vmem:[#allocation139_spill] sm:$0xff]  ;;  %v5713_v5 = vld [vmem:[#allocation153_spill] sm:$0xff] }
 0x4e1   :  { %1880 = vmatprep.subr.bf16.mxu0 %v5628_v18  ;;  %1921 = vmatprep.subr.bf16.mxu1 %v5629_v27  ;;  %v5639_v18 = vld [vmem:[#allocation140_spill] sm:$0xff]  ;;  %v5640_v27 = vld [vmem:[#allocation141_spill] sm:$0xff] }
 0x4e4   :  { %1881 = vmatpush2.bf16.msra.mxu0 %v5630_v6  ;;  %1922 = vmatpush2.bf16.msra.mxu1 %v5631_v15  ;;  %v5641_v6 = vld [vmem:[#allocation142_spill] sm:$0xff]  ;;  %v5642_v15 = vld [vmem:[#allocation143_spill] sm:$0xff] }
 0x4e5   :  { %1882 = vmatprep.subr.bf16.mxu0 %v5632_v12  ;;  %1923 = vmatprep.subr.bf16.mxu1 %v5633_v52  ;;  %v5643_v12 = vld [vmem:[#allocation144_spill] sm:$0xff] }
 0x4e6   :  { %v5644_v52 = vld [vmem:[#allocation12_spill] sm:$0xff] }
 0x4e8   :  { %1883 = vmatpush2.bf16.msra.mxu0 %v5634_v61  ;;  %1924 = vmatpush2.bf16.msra.mxu1 %v5635_v34  ;;  %v5645_v61 = vld [vmem:[#allocation13_spill] sm:$0xff] }
 0x4e9   :  { %1884 = vmatprep.subr.bf16.mxu0 %v5636_v14  ;;  %1925 = vmatprep.subr.bf16.mxu1 %v5637_v39  ;;  %v5646_v39 = vld [vmem:[#allocation14_spill] sm:$0xff]  ;;  %v5655_v14 = vld [vmem:[#allocation23_spill] sm:$0xff] }
 0x4ec   :  { %1885 = vmatpush2.bf16.msra.mxu0 %v5638_v60  ;;  %1926 = vmatpush2.bf16.msra.mxu1 %v5639_v18  ;;  %v5647_v60 = vld [vmem:[#allocation15_spill] sm:$0xff]  ;;  %v5648_v18 = vld [vmem:[#allocation16_spill] sm:$0xff] }
 0x4ed   :  { %1886 = vmatprep.subr.bf16.mxu0 %v5640_v27  ;;  %1927 = vmatprep.subr.bf16.mxu1 %v5641_v6  ;;  %v5649_v27 = vld [vmem:[#allocation17_spill] sm:$0xff]  ;;  %v5650_v6 = vld [vmem:[#allocation18_spill] sm:$0xff] }
 0x4f0   :  { %1887 = vmatpush2.bf16.msra.mxu0 %v5642_v15  ;;  %1928 = vmatpush2.bf16.msra.mxu1 %v5643_v12  ;;  %v5651_v15 = vld [vmem:[#allocation19_spill] sm:$0xff]  ;;  %v5652_v12 = vld [vmem:[#allocation20_spill] sm:$0xff] }
 0x4f1   :  { %1984 = vmatprep.subr.bf16.mxu0 %v5644_v52  ;;  %2025 = vmatprep.subr.bf16.mxu1 %v5645_v61  ;;  %v5653_v52 = vld [vmem:[#allocation21_spill] sm:$0xff]  ;;  %v5654_v61 = vld [vmem:[#allocation22_spill] sm:$0xff] }
 0x4f3   :  { %1889 = vmatmul.mubr.bf16.vlgmr.msra.gmra.mxu0 %v4295_v13  ;;  %1930 = vmatmul.mubr.bf16.vlgmr.msra.gmra.mxu1 %v4295_v13  ;;  %v5656_v13 = vld [vmem:[#allocation24_spill] sm:$0xff] }
 0x4f4   :  { %1985 = vmatpush1.bf16.msra.mxu0 %v5646_v39  ;;  %2026 = vmatpush1.bf16.msra.mxu1 %v5647_v60  ;;  %v5657_v39 = vld [vmem:[#allocation25_spill] sm:$0xff]  ;;  %v5658_v60 = vld [vmem:[#allocation26_spill] sm:$0xff] }
 0x4f5   :  { %1986 = vmatprep.subr.bf16.mxu0 %v5648_v18  ;;  %2027 = vmatprep.subr.bf16.mxu1 %v5649_v27  ;;  %v5659_v18 = vld [vmem:[#allocation27_spill] sm:$0xff]  ;;  %v5660_v27 = vld [vmem:[#allocation28_spill] sm:$0xff] }
 0x4f8   :  { %1987 = vmatpush1.bf16.msra.mxu0 %v5650_v6  ;;  %2028 = vmatpush1.bf16.msra.mxu1 %v5651_v15  ;;  %v5661_v6 = vld [vmem:[#allocation29_spill] sm:$0xff]  ;;  %v5662_v15 = vld [vmem:[#allocation30_spill] sm:$0xff] }
 0x4f9   :  { %1988 = vmatprep.subr.bf16.mxu0 %v5652_v12  ;;  %2029 = vmatprep.subr.bf16.mxu1 %v5653_v52  ;;  %v5663_v12 = vld [vmem:[#allocation31_spill] sm:$0xff]  ;;  %v5664_v52 = vld [vmem:[#allocation32_spill] sm:$0xff] }
 0x4fc   :  { %1989 = vmatpush1.bf16.msra.mxu0 %v5654_v61  ;;  %2030 = vmatpush1.bf16.msra.mxu1 %v5655_v14  ;;  %v5665_v61 = vld [vmem:[#allocation33_spill] sm:$0xff]  ;;  %v5666_v14 = vld [vmem:[#allocation34_spill] sm:$0xff] }
 0x4fd   :  { %1990 = vmatprep.subr.bf16.mxu0 %v5656_v13  ;;  %2031 = vmatprep.subr.bf16.mxu1 %v5657_v39  ;;  %v5667_v13 = vld [vmem:[#allocation35_spill] sm:$0xff]  ;;  %v5668_v39 = vld [vmem:[#allocation36_spill] sm:$0xff] }
 0x500   :  { %1991 = vmatpush1.bf16.msra.mxu0 %v5658_v60  ;;  %2032 = vmatpush1.bf16.msra.mxu1 %v5659_v18  ;;  %v5669_v60 = vld [vmem:[#allocation37_spill] sm:$0xff]  ;;  %v5670_v18 = vld [vmem:[#allocation38_spill] sm:$0xff] }
 0x501   :  { %1992 = vmatprep.subr.bf16.mxu0 %v5660_v27  ;;  %2033 = vmatprep.subr.bf16.mxu1 %v5661_v6  ;;  %v5671_v27 = vld [vmem:[#allocation39_spill] sm:$0xff]  ;;  %v5672_v6 = vld [vmem:[#allocation40_spill] sm:$0xff] }
 0x504   :  { %1993 = vmatpush1.bf16.msra.mxu0 %v5662_v15  ;;  %2034 = vmatpush1.bf16.msra.mxu1 %v5663_v12  ;;  %v5673_v15 = vld [vmem:[#allocation41_spill] sm:$0xff]  ;;  %v5674_v12 = vld [vmem:[#allocation42_spill] sm:$0xff] }
 0x505   :  { %1994 = vmatprep.subr.bf16.mxu0 %v5664_v52  ;;  %2035 = vmatprep.subr.bf16.mxu1 %v5665_v61  ;;  %v5675_v52 = vld [vmem:[#allocation43_spill] sm:$0xff]  ;;  %v5676_v61 = vld [vmem:[#allocation44_spill] sm:$0xff] }
 0x508   :  { %1995 = vmatpush1.bf16.msra.mxu0 %v5666_v14  ;;  %2036 = vmatpush1.bf16.msra.mxu1 %v5667_v13  ;;  %v5677_v14 = vld [vmem:[#allocation45_spill] sm:$0xff]  ;;  %v5678_v13 = vld [vmem:[#allocation46_spill] sm:$0xff] }
 0x509   :  { %1996 = vmatprep.subr.bf16.mxu0 %v5668_v39  ;;  %2037 = vmatprep.subr.bf16.mxu1 %v5669_v60  ;;  %v5679_v39 = vld [vmem:[#allocation47_spill] sm:$0xff]  ;;  %v5680_v60 = vld [vmem:[#allocation48_spill] sm:$0xff] }
 0x50c   :  { %1997 = vmatpush1.bf16.msra.mxu0 %v5670_v18  ;;  %2038 = vmatpush1.bf16.msra.mxu1 %v5671_v27  ;;  %v5681_v18 = vld [vmem:[#allocation49_spill] sm:$0xff]  ;;  %v5682_v27 = vld [vmem:[#allocation50_spill] sm:$0xff] }
 0x50d   :  { %1998 = vmatprep.subr.bf16.mxu0 %v5672_v6  ;;  %2039 = vmatprep.subr.bf16.mxu1 %v5673_v15  ;;  %v5683_v6 = vld [vmem:[#allocation51_spill] sm:$0xff]  ;;  %v5684_v15 = vld [vmem:[#allocation52_spill] sm:$0xff] }
 0x510   :  { %1999 = vmatpush1.bf16.msra.mxu0 %v5674_v12  ;;  %2040 = vmatpush1.bf16.msra.mxu1 %v5675_v52  ;;  %v5685_v12 = vld [vmem:[#allocation53_spill] sm:$0xff]  ;;  %v5686_v52 = vld [vmem:[#allocation54_spill] sm:$0xff] }
 0x511   :  { %2000 = vmatprep.subr.bf16.mxu0 %v5676_v61  ;;  %2041 = vmatprep.subr.bf16.mxu1 %v5677_v14  ;;  %v5687_v61 = vld [vmem:[#allocation55_spill] sm:$0xff]  ;;  %v5688_v14 = vld [vmem:[#allocation56_spill] sm:$0xff] }
 0x514   :  { %2001 = vmatpush2.bf16.msra.mxu0 %v5678_v13  ;;  %2042 = vmatpush2.bf16.msra.mxu1 %v5679_v39  ;;  %v5689_v13 = vld [vmem:[#allocation57_spill] sm:$0xff]  ;;  %v5690_v39 = vld [vmem:[#allocation58_spill] sm:$0xff] }
 0x515   :  { %2002 = vmatprep.subr.bf16.mxu0 %v5680_v60  ;;  %2043 = vmatprep.subr.bf16.mxu1 %v5681_v18  ;;  %v5691_v60 = vld [vmem:[#allocation59_spill] sm:$0xff]  ;;  %v5692_v18 = vld [vmem:[#allocation60_spill] sm:$0xff] }
 0x518   :  { %2003 = vmatpush2.bf16.msra.mxu0 %v5682_v27  ;;  %2044 = vmatpush2.bf16.msra.mxu1 %v5683_v6  ;;  %v5693_v27 = vld [vmem:[#allocation61_spill] sm:$0xff]  ;;  %v5694_v6 = vld [vmem:[#allocation62_spill] sm:$0xff] }
 0x519   :  { %2004 = vmatprep.subr.bf16.mxu0 %v5684_v15  ;;  %2045 = vmatprep.subr.bf16.mxu1 %v5685_v12  ;;  %v5695_v15 = vld [vmem:[#allocation63_spill] sm:$0xff]  ;;  %v5696_v12 = vld [vmem:[#allocation64_spill] sm:$0xff] }
 0x51c   :  { %2005 = vmatpush2.bf16.msra.mxu0 %v5686_v52  ;;  %2046 = vmatpush2.bf16.msra.mxu1 %v5687_v61  ;;  %v5697_v52 = vld [vmem:[#allocation65_spill] sm:$0xff]  ;;  %v5698_v61 = vld [vmem:[#allocation66_spill] sm:$0xff] }
 0x51d   :  { %2006 = vmatprep.subr.bf16.mxu0 %v5688_v14  ;;  %2047 = vmatprep.subr.bf16.mxu1 %v5689_v13  ;;  %v5699_v14 = vld [vmem:[#allocation67_spill] sm:$0xff]  ;;  %v5700_v13 = vld [vmem:[#allocation68_spill] sm:$0xff] }
 0x520   :  { %2007 = vmatpush2.bf16.msra.mxu0 %v5690_v39  ;;  %2048 = vmatpush2.bf16.msra.mxu1 %v5691_v60  ;;  %v5701_v39 = vld [vmem:[#allocation69_spill] sm:$0xff]  ;;  %v5702_v60 = vld [vmem:[#allocation70_spill] sm:$0xff] }
 0x521   :  { %2008 = vmatprep.subr.bf16.mxu0 %v5692_v18  ;;  %2049 = vmatprep.subr.bf16.mxu1 %v5693_v27  ;;  %v5703_v18 = vld [vmem:[#allocation71_spill] sm:$0xff]  ;;  %v5704_v27 = vld [vmem:[#allocation72_spill] sm:$0xff] }
 0x524   :  { %2009 = vmatpush2.bf16.msra.mxu0 %v5694_v6  ;;  %2050 = vmatpush2.bf16.msra.mxu1 %v5695_v15  ;;  %v5705_v6 = vld [vmem:[#allocation73_spill] sm:$0xff]  ;;  %v5706_v15 = vld [vmem:[#allocation74_spill] sm:$0xff] }
 0x525   :  { %2010 = vmatprep.subr.bf16.mxu0 %v5696_v12  ;;  %2051 = vmatprep.subr.bf16.mxu1 %v5697_v52  ;;  %v5707_v12 = vld [vmem:[#allocation75_spill] sm:$0xff]  ;;  %v5708_v52 = vld [vmem:[#allocation76_spill] sm:$0xff] }
 0x528   :  { %2011 = vmatpush2.bf16.msra.mxu0 %v5698_v61  ;;  %2052 = vmatpush2.bf16.msra.mxu1 %v5699_v14  ;;  %v5709_v61 = vld [vmem:[#allocation77_spill] sm:$0xff]  ;;  %v5710_v14 = vld [vmem:[#allocation80_spill] sm:$0xff] }
 0x529   :  { %2012 = vmatprep.subr.bf16.mxu0 %v5700_v13  ;;  %2053 = vmatprep.subr.bf16.mxu1 %v5701_v39  ;;  %v5711_v13 = vld [vmem:[#allocation154_spill] sm:$0xff] }
 0x52a   :  { %v372_v34 = vadd.f32 %v5711_v13, %v5710_v14  ;;  %v5712_v39 = vld [vmem:[#allocation82_spill] sm:$0xff] }
 0x52c   :  { %2013 = vmatpush2.bf16.msra.mxu0 %v5702_v60  ;;  %2054 = vmatpush2.bf16.msra.mxu1 %v5703_v18  ;;  %v445_v60 = vadd.f32 %v5713_v5, %v5712_v39 }
 0x52d   :  { %2014 = vmatprep.subr.bf16.mxu0 %v5704_v27  ;;  %2055 = vmatprep.subr.bf16.mxu1 %v5705_v6  ;;  %v5715_v27 = vld [vmem:[#allocation156_spill] sm:$0xff]  ;;  %v5716_v6 = vld [vmem:[#allocation155_spill] sm:$0xff] }
 0x52e   :  { %v374_v32 = vadd.f32 %v5715_v27, %v5714_v11 }
 0x530   :  { %2015 = vmatpush2.bf16.msra.mxu0 %v5706_v15  ;;  %2056 = vmatpush2.bf16.msra.mxu1 %v5707_v12  ;;  %v447_v15 = vadd.f32 %v5716_v6, %v5420_v4 }
 0x531   :  { %2066 = vmatprep.subr.bf16.mxu0 %v5708_v52  ;;  %2107 = vmatprep.subr.bf16.mxu1 %v5709_v61 }
 0x573   :  { %v1808_v35 = vpop.f32.mrf.mxu0  ;;  %v1849_v18 = vpop.f32.mrf.mxu1 }
 0x574   :  { %v1960_v51 = vadd.f32 %v1808_v35, %v372_v34  ;;  %v1962_v12 = vadd.f32 %v1849_v18, %v445_v60 }
 0x575   :  { %v1810_v42 = vpop.f32.mrf.mxu0  ;;  %v1851_v52 = vpop.f32.mrf.mxu1 }
 0x576   :  { %v1964_v56 = vmul.f32 0.5, %v1960_v51  ;;  %v1961_v61 = vadd.f32 %v1810_v42, %v374_v32  ;;  %v1963_v24 = vadd.f32 %v1851_v52, %v447_v15 }
 0x577   :  { %v1812_v19 = vpop.f32.mrf.mxu0  ;;  %v1853_v13 = vpop.f32.mrf.mxu1 }
 0x578   :  { %3140 = vtanh.f32 %v1964_v56  ;;  %v1968_v14 = vmul.f32 0.5, %v1961_v61  ;;  %v1973_v13 = vmul.f32 0.5, %v1963_v24 }
 0x579   :  { %v1813_v5 = vpop.f32.mrf.mxu0  ;;  %v1854_v39 = vpop.f32.mrf.mxu1 }
 0x57a   :  { %3142 = vtanh.f32 %v1968_v14 }
 0x57b   :  { %3144 = vtanh.f32 %v1962_v12 }
 0x585   :  { %v3141_v30 = vpop.eup %3140 }
 0x586   :  { %v1966_v27 = vmul.f32 0.5, %v3141_v30 }
 0x587   :  { %v3143_v11 = vpop.eup %3142 }
 0x588   :  { %v1967_v59 = vadd.f32 0.5, %v1966_v27  ;;  %v1970_v6 = vmul.f32 0.5, %v3143_v11  ;;  %v3145_v35 = vpop.eup %3144 }
 0x58a   :  { %v1971_v60 = vadd.f32 0.5, %v1970_v6  ;;  %v1978_v18 = vmul.f32 %v3145_v35, %v1967_v59 }
 0x58c   :  { %v1977_v51 = vmul.f32 %v1971_v60, %v4284_v44 }
 0x58e   :  { %v4438_v42 = vadd.f32 %v1978_v18, %v1977_v51 }
 0x5b3   :  { %v1890_v32 = vpop.f32.mrf.mxu0  ;;  %v1931_v19 = vpop.f32.mrf.mxu1 }
 0x5b4   :  { %v1938_v56 = vadd.f32 %v1890_v32, %v5515_v38  ;;  %v1940_v59 = vadd.f32 %v1931_v19, %v3972_v0 }
 0x5b5   :  { %v1892_v15 = vpop.f32.mrf.mxu0  ;;  %v1933_v52 = vpop.f32.mrf.mxu1 }
 0x5b6   :  { %v1942_v61 = vmul.f32 0.5, %v1938_v56  ;;  %v1939_v12 = vadd.f32 %v1892_v15, %v3967_v37  ;;  %v1941_v44 = vadd.f32 %v1933_v52, %v3978_v26 }
 0x5b7   :  { %v1894_v30 = vpop.f32.mrf.mxu0  ;;  %v1935_v34 = vpop.f32.mrf.mxu1 }
 0x5b8   :  { %3146 = vtanh.f32 %v1942_v61  ;;  %v1946_v11 = vmul.f32 0.5, %v1939_v12  ;;  %v1951_v5 = vmul.f32 0.5, %v1941_v44 }
 0x5b9   :  { %v1895_v14 = vpop.f32.mrf.mxu0  ;;  %v1936_v39 = vpop.f32.mrf.mxu1 }
 0x5ba   :  { %3148 = vtanh.f32 %v1946_v11 }
 0x5bb   :  { %3150 = vtanh.f32 %v1940_v59 }
 0x5bc   :  { %3152 = vtanh.f32 %v1973_v13 }
 0x5bd   :  { %3154 = vtanh.f32 %v1951_v5  ;;  %v5718_v5 = vld [vmem:[#allocation118_spill] sm:$0xff] }
 0x5be   :  { %3156 = vtanh.f32 %v4438_v42 }
 0x5c5   :  { %v3147_v27 = vpop.eup %3146 }
 0x5c6   :  { %v1944_v6 = vmul.f32 0.5, %v3147_v27  ;;  %v5719_v27 = vld [vmem:[#allocation119_spill] sm:$0xff] }
 0x5c7   :  { %v3149_v35 = vpop.eup %3148 }
 0x5c8   :  { %v1945_v60 = vadd.f32 0.5, %v1944_v6  ;;  %v1948_v18 = vmul.f32 0.5, %v3149_v35  ;;  %v3151_v32 = vpop.eup %3150  ;;  %v5720_v6 = vld [vmem:[#allocation120_spill] sm:$0xff]  ;;  %v5721_v35 = vld [vmem:[#allocation121_spill] sm:$0xff] }
 0x5c9   :  { %v3153_v24 = vpop.eup %3152 }
 0x5ca   :  { %v1949_v51 = vadd.f32 0.5, %v1948_v18  ;;  %v1956_v15 = vmul.f32 %v3151_v32, %v1945_v60  ;;  %v3155_v52 = vpop.eup %3154  ;;  %v1975_v61 = vmul.f32 0.5, %v3153_v24  ;;  %v5722_v60 = vld [vmem:[#allocation122_spill] sm:$0xff]  ;;  %v5723_v18 = vld [vmem:[#allocation123_spill] sm:$0xff]  ;;  %v5725_v32 = vld [vmem:[#allocation125_spill] sm:$0xff] }
 0x5cb   :  { %v1953_v12 = vmul.f32 0.5, %v3155_v52  ;;  %v3157_v30 = vpop.eup %3156  ;;  %v5728_v24 = vld [vmem:[#allocation128_spill] sm:$0xff]  ;;  %v5729_v52 = vld [vmem:[#allocation129_spill] sm:$0xff] }
 0x5cc   :  { %v1955_v56 = vmul.f32 %v1949_v51, %v4292_v54  ;;  %v1976_v34 = vadd.f32 0.5, %v1975_v61  ;;  %v5717_v54 = vld [vmem:[#allocation117_spill] sm:$0xff]  ;;  %v5724_v51 = vld [vmem:[#allocation124_spill] sm:$0xff]  ;;  %v5730_v61 = vld [vmem:[#allocation130_spill] sm:$0xff] }
 0x5cd   :  { %v1954_v11 = vadd.f32 0.5, %v1953_v12  ;;  %v5731_v12 = vld [vmem:[#allocation131_spill] sm:$0xff] }
 0x5ce   :  { %v4446_v19 = vadd.f32 %v1956_v15, %v1955_v56  ;;  %v1981_v39 = vmul.f32 %v3157_v30, %v1976_v34  ;;  %v5726_v56 = vld [vmem:[#allocation126_spill] sm:$0xff]  ;;  %v5727_v15 = vld [vmem:[#allocation127_spill] sm:$0xff]  ;;  %v5732_v30 = vld [vmem:[#allocation132_spill] sm:$0xff] }
 0x5cf   :  { %v5733_v34 = vld [vmem:[#allocation133_spill] sm:$0xff] }
 0x5d0   :  { %3158 = vtanh.f32 %v4446_v19  ;;  %v4449_v13 = vpack.c.bf16 %v1981_v39, %v1981_v39  ;;  %v5736_v39 = vld [vmem:[#allocation136_spill] sm:$0xff] }
 0x5dd   :  { %v3159_v14 = vpop.eup %3158 }
 0x5de   :  { %v1959_v59 = vmul.f32 %v3159_v14, %v1954_v11  ;;  %v5734_v11 = vld [vmem:[#allocation134_spill] sm:$0xff]  ;;  %v5735_v14 = vld [vmem:[#allocation135_spill] sm:$0xff] }
 0x5e0   :  { %v1983_v44 = vpack.c.bf16 %v1959_v59, %v1959_v59  ;;  %v5737_v59 = vld [vmem:[#allocation137_spill] sm:$0xff] }
 0x5e2   :  { %2016 = vmatprep.mubr.bf16.mxu0 %v1983_v44  ;;  %2057 = vmatprep.mubr.bf16.mxu1 %v1983_v44 }
 0x5e3   :  { %2017 = vmatmul.mubr.bf16.vlgmr.msra.gmra.mxu0 %v4449_v13  ;;  %2058 = vmatmul.mubr.bf16.vlgmr.msra.gmra.mxu1 %v4449_v13 }
 0x5e4   :  { %2067 = vmatpush1.bf16.msra.mxu0 %v3608_v20  ;;  %2108 = vmatpush1.bf16.msra.mxu1 %v5421_v29 }
 0x5e5   :  { %2098 = vmatprep.mubr.bf16.mxu0 %v1983_v44  ;;  %2139 = vmatprep.mubr.bf16.mxu1 %v1983_v44  ;;  %v5738_v44 = vld [vmem:[#allocation138_spill] sm:$0xff] }
 0x5e6   :  { %2068 = vmatprep.subr.bf16.mxu0 %v5422_v53  ;;  %2109 = vmatprep.subr.bf16.mxu1 %v5423_v8 }
 0x5e8   :  { %2069 = vmatpush1.bf16.msra.mxu0 %v5424_v10  ;;  %2110 = vmatpush1.bf16.msra.mxu1 %v5425_v31 }
 0x5e9   :  { %2070 = vmatprep.subr.bf16.mxu0 %v5516_v43  ;;  %2111 = vmatprep.subr.bf16.mxu1 %v5517_v49 }
 0x5ec   :  { %2071 = vmatpush1.bf16.msra.mxu0 %v5518_v46  ;;  %2112 = vmatpush1.bf16.msra.mxu1 %v5519_v48 }
 0x5ed   :  { %2072 = vmatprep.subr.bf16.mxu0 %v5520_v2  ;;  %2113 = vmatprep.subr.bf16.mxu1 %v5521_v40 }
 0x5f0   :  { %2073 = vmatpush1.bf16.msra.mxu0 %v5522_v33  ;;  %2114 = vmatpush1.bf16.msra.mxu1 %v5523_v50 }
 0x5f1   :  { %2074 = vmatprep.subr.bf16.mxu0 %v5524_v55  ;;  %2115 = vmatprep.subr.bf16.mxu1 %v5525_v58 }
 0x5f4   :  { %2075 = vmatpush1.bf16.msra.mxu0 %v5616_v41  ;;  %2116 = vmatpush1.bf16.msra.mxu1 %v5617_v28 }
 0x5f5   :  { %2076 = vmatprep.subr.bf16.mxu0 %v5618_v25  ;;  %2117 = vmatprep.subr.bf16.mxu1 %v5619_v1 }
 0x5f8   :  { %2077 = vmatpush1.bf16.msra.mxu0 %v5620_v9  ;;  %2118 = vmatpush1.bf16.msra.mxu1 %v5621_v22 }
 0x5f9   :  { %2078 = vmatprep.subr.bf16.mxu0 %v5622_v23  ;;  %2119 = vmatprep.subr.bf16.mxu1 %v5623_v45 }
 0x5fc   :  { %2079 = vmatpush1.bf16.msra.mxu0 %v5624_v16  ;;  %2120 = vmatpush1.bf16.msra.mxu1 %v5625_v17 }
 0x5fd   :  { %2080 = vmatprep.subr.bf16.mxu0 %v5536_v47  ;;  %2121 = vmatprep.subr.bf16.mxu1 %v5537_v36 }
 0x600   :  { %2081 = vmatpush1.bf16.msra.mxu0 %v5538_v57  ;;  %2122 = vmatpush1.bf16.msra.mxu1 %v5626_v7 }
 0x601   :  { %2082 = vmatprep.subr.bf16.mxu0 %v5627_v62  ;;  %2123 = vmatprep.subr.bf16.mxu1 %v5541_v63 }
 0x604   :  { %2083 = vmatpush2.bf16.msra.mxu0 %v5542_v3  ;;  %2124 = vmatpush2.bf16.msra.mxu1 %v5543_v21 }
 0x605   :  { %2084 = vmatprep.subr.bf16.mxu0 %v5717_v54  ;;  %2125 = vmatprep.subr.bf16.mxu1 %v5718_v5 }
 0x608   :  { %2085 = vmatpush2.bf16.msra.mxu0 %v5719_v27  ;;  %2126 = vmatpush2.bf16.msra.mxu1 %v5720_v6 }
 0x609   :  { %2086 = vmatprep.subr.bf16.mxu0 %v5721_v35  ;;  %2127 = vmatprep.subr.bf16.mxu1 %v5722_v60 }
 0x60c   :  { %2087 = vmatpush2.bf16.msra.mxu0 %v5723_v18  ;;  %2128 = vmatpush2.bf16.msra.mxu1 %v5724_v51 }
 0x60d   :  { %2088 = vmatprep.subr.bf16.mxu0 %v5725_v32  ;;  %2129 = vmatprep.subr.bf16.mxu1 %v5726_v56  ;;  %v5815_v32 = vld [vmem:[#allocation81_spill] sm:$0xff] }
 0x610   :  { %2089 = vmatpush2.bf16.msra.mxu0 %v5727_v15  ;;  %2130 = vmatpush2.bf16.msra.mxu1 %v5728_v24  ;;  %v5739_v24 = vld [vmem:[#allocation139_spill] sm:$0xff]  ;;  %v5814_v15 = vld [vmem:[#allocation157_spill] sm:$0xff] }
 0x611   :  { %2090 = vmatprep.subr.bf16.mxu0 %v5729_v52  ;;  %2131 = vmatprep.subr.bf16.mxu1 %v5730_v61  ;;  %v5740_v52 = vld [vmem:[#allocation140_spill] sm:$0xff]  ;;  %v5741_v61 = vld [vmem:[#allocation141_spill] sm:$0xff] }
 0x614   :  { %2091 = vmatpush2.bf16.msra.mxu0 %v5731_v12  ;;  %2132 = vmatpush2.bf16.msra.mxu1 %v5732_v30  ;;  %v5742_v12 = vld [vmem:[#allocation142_spill] sm:$0xff]  ;;  %v5743_v30 = vld [vmem:[#allocation143_spill] sm:$0xff] }
 0x615   :  { %2092 = vmatprep.subr.bf16.mxu0 %v5733_v34  ;;  %2133 = vmatprep.subr.bf16.mxu1 %v5734_v11  ;;  %v5744_v34 = vld [vmem:[#allocation144_spill] sm:$0xff] }
 0x616   :  { %v5745_v11 = vld [vmem:[#allocation12_spill] sm:$0xff] }
 0x618   :  { %2093 = vmatpush2.bf16.msra.mxu0 %v5735_v14  ;;  %2134 = vmatpush2.bf16.msra.mxu1 %v5736_v39  ;;  %v5746_v14 = vld [vmem:[#allocation13_spill] sm:$0xff] }
 0x619   :  { %2094 = vmatprep.subr.bf16.mxu0 %v5737_v59  ;;  %2135 = vmatprep.subr.bf16.mxu1 %v5738_v44  ;;  %v5747_v44 = vld [vmem:[#allocation14_spill] sm:$0xff]  ;;  %v5756_v59 = vld [vmem:[#allocation23_spill] sm:$0xff] }
 0x61c   :  { %2095 = vmatpush2.bf16.msra.mxu0 %v5739_v24  ;;  %2136 = vmatpush2.bf16.msra.mxu1 %v5740_v52  ;;  %v5748_v24 = vld [vmem:[#allocation15_spill] sm:$0xff]  ;;  %v5749_v52 = vld [vmem:[#allocation16_spill] sm:$0xff] }
 0x61d   :  { %2096 = vmatprep.subr.bf16.mxu0 %v5741_v61  ;;  %2137 = vmatprep.subr.bf16.mxu1 %v5742_v12  ;;  %v5750_v61 = vld [vmem:[#allocation17_spill] sm:$0xff]  ;;  %v5751_v12 = vld [vmem:[#allocation18_spill] sm:$0xff] }
 0x620   :  { %2097 = vmatpush2.bf16.msra.mxu0 %v5743_v30  ;;  %2138 = vmatpush2.bf16.msra.mxu1 %v5744_v34  ;;  %v5752_v30 = vld [vmem:[#allocation19_spill] sm:$0xff]  ;;  %v5753_v34 = vld [vmem:[#allocation20_spill] sm:$0xff] }
 0x621   :  { %2194 = vmatprep.subr.bf16.mxu0 %v5745_v11  ;;  %2235 = vmatprep.subr.bf16.mxu1 %v5746_v14  ;;  %v5754_v11 = vld [vmem:[#allocation21_spill] sm:$0xff]  ;;  %v5755_v14 = vld [vmem:[#allocation22_spill] sm:$0xff] }
 0x623   :  { %2099 = vmatmul.mubr.bf16.vlgmr.msra.gmra.mxu0 %v4449_v13  ;;  %2140 = vmatmul.mubr.bf16.vlgmr.msra.gmra.mxu1 %v4449_v13  ;;  %v5757_v13 = vld [vmem:[#allocation24_spill] sm:$0xff] }
 0x624   :  { %2195 = vmatpush1.bf16.msra.mxu0 %v5747_v44  ;;  %2236 = vmatpush1.bf16.msra.mxu1 %v5748_v24  ;;  %v5758_v44 = vld [vmem:[#allocation25_spill] sm:$0xff]  ;;  %v5759_v24 = vld [vmem:[#allocation26_spill] sm:$0xff] }
 0x625   :  { %2196 = vmatprep.subr.bf16.mxu0 %v5749_v52  ;;  %2237 = vmatprep.subr.bf16.mxu1 %v5750_v61  ;;  %v5760_v52 = vld [vmem:[#allocation27_spill] sm:$0xff]  ;;  %v5761_v61 = vld [vmem:[#allocation28_spill] sm:$0xff] }
 0x628   :  { %2197 = vmatpush1.bf16.msra.mxu0 %v5751_v12  ;;  %2238 = vmatpush1.bf16.msra.mxu1 %v5752_v30  ;;  %v5762_v12 = vld [vmem:[#allocation29_spill] sm:$0xff]  ;;  %v5763_v30 = vld [vmem:[#allocation30_spill] sm:$0xff] }
 0x629   :  { %2198 = vmatprep.subr.bf16.mxu0 %v5753_v34  ;;  %2239 = vmatprep.subr.bf16.mxu1 %v5754_v11  ;;  %v5764_v34 = vld [vmem:[#allocation31_spill] sm:$0xff]  ;;  %v5765_v11 = vld [vmem:[#allocation32_spill] sm:$0xff] }
 0x62c   :  { %2199 = vmatpush1.bf16.msra.mxu0 %v5755_v14  ;;  %2240 = vmatpush1.bf16.msra.mxu1 %v5756_v59  ;;  %v5766_v14 = vld [vmem:[#allocation33_spill] sm:$0xff]  ;;  %v5767_v59 = vld [vmem:[#allocation34_spill] sm:$0xff] }
 0x62d   :  { %2200 = vmatprep.subr.bf16.mxu0 %v5757_v13  ;;  %2241 = vmatprep.subr.bf16.mxu1 %v5758_v44  ;;  %v5768_v13 = vld [vmem:[#allocation35_spill] sm:$0xff]  ;;  %v5769_v44 = vld [vmem:[#allocation36_spill] sm:$0xff] }
 0x630   :  { %2201 = vmatpush1.bf16.msra.mxu0 %v5759_v24  ;;  %2242 = vmatpush1.bf16.msra.mxu1 %v5760_v52  ;;  %v5770_v24 = vld [vmem:[#allocation37_spill] sm:$0xff]  ;;  %v5771_v52 = vld [vmem:[#allocation38_spill] sm:$0xff] }
 0x631   :  { %2202 = vmatprep.subr.bf16.mxu0 %v5761_v61  ;;  %2243 = vmatprep.subr.bf16.mxu1 %v5762_v12  ;;  %v5772_v61 = vld [vmem:[#allocation39_spill] sm:$0xff]  ;;  %v5773_v12 = vld [vmem:[#allocation40_spill] sm:$0xff] }
 0x634   :  { %2203 = vmatpush1.bf16.msra.mxu0 %v5763_v30  ;;  %2244 = vmatpush1.bf16.msra.mxu1 %v5764_v34  ;;  %v5774_v30 = vld [vmem:[#allocation41_spill] sm:$0xff]  ;;  %v5775_v34 = vld [vmem:[#allocation42_spill] sm:$0xff] }
 0x635   :  { %2204 = vmatprep.subr.bf16.mxu0 %v5765_v11  ;;  %2245 = vmatprep.subr.bf16.mxu1 %v5766_v14  ;;  %v5776_v11 = vld [vmem:[#allocation43_spill] sm:$0xff]  ;;  %v5777_v14 = vld [vmem:[#allocation44_spill] sm:$0xff] }
 0x638   :  { %2205 = vmatpush1.bf16.msra.mxu0 %v5767_v59  ;;  %2246 = vmatpush1.bf16.msra.mxu1 %v5768_v13  ;;  %v5778_v59 = vld [vmem:[#allocation45_spill] sm:$0xff]  ;;  %v5779_v13 = vld [vmem:[#allocation46_spill] sm:$0xff] }
 0x639   :  { %2206 = vmatprep.subr.bf16.mxu0 %v5769_v44  ;;  %2247 = vmatprep.subr.bf16.mxu1 %v5770_v24  ;;  %v5780_v44 = vld [vmem:[#allocation47_spill] sm:$0xff]  ;;  %v5781_v24 = vld [vmem:[#allocation48_spill] sm:$0xff] }
 0x63c   :  { %2207 = vmatpush1.bf16.msra.mxu0 %v5771_v52  ;;  %2248 = vmatpush1.bf16.msra.mxu1 %v5772_v61  ;;  %v5782_v52 = vld [vmem:[#allocation49_spill] sm:$0xff]  ;;  %v5783_v61 = vld [vmem:[#allocation50_spill] sm:$0xff] }
 0x63d   :  { %2208 = vmatprep.subr.bf16.mxu0 %v5773_v12  ;;  %2249 = vmatprep.subr.bf16.mxu1 %v5774_v30  ;;  %v5784_v12 = vld [vmem:[#allocation51_spill] sm:$0xff]  ;;  %v5785_v30 = vld [vmem:[#allocation52_spill] sm:$0xff] }
 0x640   :  { %2209 = vmatpush1.bf16.msra.mxu0 %v5775_v34  ;;  %2250 = vmatpush1.bf16.msra.mxu1 %v5776_v11  ;;  %v5786_v34 = vld [vmem:[#allocation53_spill] sm:$0xff]  ;;  %v5787_v11 = vld [vmem:[#allocation54_spill] sm:$0xff] }
 0x641   :  { %2210 = vmatprep.subr.bf16.mxu0 %v5777_v14  ;;  %2251 = vmatprep.subr.bf16.mxu1 %v5778_v59  ;;  %v5788_v14 = vld [vmem:[#allocation55_spill] sm:$0xff]  ;;  %v5789_v59 = vld [vmem:[#allocation56_spill] sm:$0xff] }
 0x644   :  { %2211 = vmatpush2.bf16.msra.mxu0 %v5779_v13  ;;  %2252 = vmatpush2.bf16.msra.mxu1 %v5780_v44  ;;  %v5790_v13 = vld [vmem:[#allocation57_spill] sm:$0xff]  ;;  %v5791_v44 = vld [vmem:[#allocation58_spill] sm:$0xff] }
 0x645   :  { %2212 = vmatprep.subr.bf16.mxu0 %v5781_v24  ;;  %2253 = vmatprep.subr.bf16.mxu1 %v5782_v52  ;;  %v5792_v24 = vld [vmem:[#allocation59_spill] sm:$0xff]  ;;  %v5793_v52 = vld [vmem:[#allocation60_spill] sm:$0xff] }
 0x648   :  { %2213 = vmatpush2.bf16.msra.mxu0 %v5783_v61  ;;  %2254 = vmatpush2.bf16.msra.mxu1 %v5784_v12  ;;  %v5794_v61 = vld [vmem:[#allocation61_spill] sm:$0xff]  ;;  %v5795_v12 = vld [vmem:[#allocation62_spill] sm:$0xff] }
 0x649   :  { %2214 = vmatprep.subr.bf16.mxu0 %v5785_v30  ;;  %2255 = vmatprep.subr.bf16.mxu1 %v5786_v34  ;;  %v5796_v30 = vld [vmem:[#allocation63_spill] sm:$0xff]  ;;  %v5797_v34 = vld [vmem:[#allocation64_spill] sm:$0xff] }
 0x64c   :  { %2215 = vmatpush2.bf16.msra.mxu0 %v5787_v11  ;;  %2256 = vmatpush2.bf16.msra.mxu1 %v5788_v14  ;;  %v5798_v11 = vld [vmem:[#allocation65_spill] sm:$0xff]  ;;  %v5799_v14 = vld [vmem:[#allocation66_spill] sm:$0xff] }
 0x64d   :  { %2216 = vmatprep.subr.bf16.mxu0 %v5789_v59  ;;  %2257 = vmatprep.subr.bf16.mxu1 %v5790_v13  ;;  %v5800_v59 = vld [vmem:[#allocation67_spill] sm:$0xff]  ;;  %v5801_v13 = vld [vmem:[#allocation68_spill] sm:$0xff] }
 0x650   :  { %2217 = vmatpush2.bf16.msra.mxu0 %v5791_v44  ;;  %2258 = vmatpush2.bf16.msra.mxu1 %v5792_v24  ;;  %v5802_v44 = vld [vmem:[#allocation69_spill] sm:$0xff]  ;;  %v5803_v24 = vld [vmem:[#allocation70_spill] sm:$0xff] }
 0x651   :  { %2218 = vmatprep.subr.bf16.mxu0 %v5793_v52  ;;  %2259 = vmatprep.subr.bf16.mxu1 %v5794_v61  ;;  %v5804_v52 = vld [vmem:[#allocation71_spill] sm:$0xff]  ;;  %v5805_v61 = vld [vmem:[#allocation72_spill] sm:$0xff] }
 0x654   :  { %2219 = vmatpush2.bf16.msra.mxu0 %v5795_v12  ;;  %2260 = vmatpush2.bf16.msra.mxu1 %v5796_v30  ;;  %v5806_v12 = vld [vmem:[#allocation73_spill] sm:$0xff]  ;;  %v5807_v30 = vld [vmem:[#allocation74_spill] sm:$0xff] }
 0x655   :  { %2220 = vmatprep.subr.bf16.mxu0 %v5797_v34  ;;  %2261 = vmatprep.subr.bf16.mxu1 %v5798_v11  ;;  %v5808_v34 = vld [vmem:[#allocation75_spill] sm:$0xff]  ;;  %v5809_v11 = vld [vmem:[#allocation76_spill] sm:$0xff] }
 0x658   :  { %2221 = vmatpush2.bf16.msra.mxu0 %v5799_v14  ;;  %2262 = vmatpush2.bf16.msra.mxu1 %v5800_v59  ;;  %v5810_v14 = vld [vmem:[#allocation77_spill] sm:$0xff]  ;;  %v5811_v59 = vld [vmem:[#allocation80_spill] sm:$0xff] }
 0x659   :  { %2222 = vmatprep.subr.bf16.mxu0 %v5801_v13  ;;  %2263 = vmatprep.subr.bf16.mxu1 %v5802_v44  ;;  %v5812_v13 = vld [vmem:[#allocation158_spill] sm:$0xff] }
 0x65a   :  { %v376_v39 = vadd.f32 %v5812_v13, %v5811_v59  ;;  %v5813_v44 = vld [vmem:[#allocation82_spill] sm:$0xff] }
 0x65c   :  { %2223 = vmatpush2.bf16.msra.mxu0 %v5803_v24  ;;  %2264 = vmatpush2.bf16.msra.mxu1 %v5804_v52  ;;  %v449_v24 = vadd.f32 %v5814_v15, %v5813_v44 }
 0x65d   :  { %2224 = vmatprep.subr.bf16.mxu0 %v5805_v61  ;;  %2265 = vmatprep.subr.bf16.mxu1 %v5806_v12  ;;  %v5816_v61 = vld [vmem:[#allocation160_spill] sm:$0xff]  ;;  %v5817_v12 = vld [vmem:[#allocation159_spill] sm:$0xff] }
 0x65e   :  { %v378_v51 = vadd.f32 %v5816_v61, %v5815_v32 }
 0x660   :  { %2225 = vmatpush2.bf16.msra.mxu0 %v5807_v30  ;;  %2266 = vmatpush2.bf16.msra.mxu1 %v5808_v34  ;;  %v451_v30 = vadd.f32 %v5817_v12, %v5420_v4 }
 0x661   :  { %2276 = vmatprep.subr.bf16.mxu0 %v5809_v11  ;;  %2317 = vmatprep.subr.bf16.mxu1 %v5810_v14 }
 0x6a3   :  { %v2018_v56 = vpop.f32.mrf.mxu0  ;;  %v2059_v52 = vpop.f32.mrf.mxu1 }
 0x6a4   :  { %v2170_v18 = vadd.f32 %v2018_v56, %v376_v39  ;;  %v2172_v34 = vadd.f32 %v2059_v52, %v449_v24 }
 0x6a5   :  { %v2020_v60 = vpop.f32.mrf.mxu0  ;;  %v2061_v11 = vpop.f32.mrf.mxu1 }
 0x6a6   :  { %v2174_v35 = vmul.f32 0.5, %v2170_v18  ;;  %v2171_v14 = vadd.f32 %v2020_v60, %v378_v51  ;;  %v2173_v6 = vadd.f32 %v2061_v11, %v451_v30 }
 0x6a7   :  { %v2022_v27 = vpop.f32.mrf.mxu0  ;;  %v2063_v13 = vpop.f32.mrf.mxu1 }
 0x6a8   :  { %3160 = vtanh.f32 %v2174_v35  ;;  %v2178_v59 = vmul.f32 0.5, %v2171_v14  ;;  %v2183_v13 = vmul.f32 0.5, %v2173_v6 }
 0x6a9   :  { %v2023_v15 = vpop.f32.mrf.mxu0  ;;  %v2064_v44 = vpop.f32.mrf.mxu1 }
 0x6aa   :  { %3162 = vtanh.f32 %v2178_v59 }
 0x6ab   :  { %3164 = vtanh.f32 %v2172_v34 }
 0x6b5   :  { %v3161_v5 = vpop.eup %3160 }
 0x6b6   :  { %v2176_v61 = vmul.f32 0.5, %v3161_v5 }
 0x6b7   :  { %v3163_v32 = vpop.eup %3162 }
 0x6b8   :  { %v2177_v54 = vadd.f32 0.5, %v2176_v61  ;;  %v2180_v12 = vmul.f32 0.5, %v3163_v32  ;;  %v3165_v56 = vpop.eup %3164 }
 0x6ba   :  { %v2181_v24 = vadd.f32 0.5, %v2180_v12  ;;  %v2188_v52 = vmul.f32 %v3165_v56, %v2177_v54 }
 0x6bc   :  { %v2187_v18 = vmul.f32 %v2181_v24, %v4438_v42 }
 0x6be   :  { %v4592_v60 = vadd.f32 %v2188_v52, %v2187_v18 }
 0x6e3   :  { %v2100_v27 = vpop.f32.mrf.mxu0  ;;  %v2141_v51 = vpop.f32.mrf.mxu1 }
 0x6e4   :  { %v2148_v35 = vadd.f32 %v2100_v27, %v5515_v38  ;;  %v2150_v54 = vadd.f32 %v2141_v51, %v3972_v0 }
 0x6e5   :  { %v2102_v30 = vpop.f32.mrf.mxu0  ;;  %v2143_v11 = vpop.f32.mrf.mxu1 }
 0x6e6   :  { %v2152_v14 = vmul.f32 0.5, %v2148_v35  ;;  %v2149_v34 = vadd.f32 %v2102_v30, %v3967_v37  ;;  %v2151_v42 = vadd.f32 %v2143_v11, %v3978_v26 }
 0x6e7   :  { %v2104_v5 = vpop.f32.mrf.mxu0  ;;  %v2145_v39 = vpop.f32.mrf.mxu1 }
 0x6e8   :  { %3166 = vtanh.f32 %v2152_v14  ;;  %v2156_v32 = vmul.f32 0.5, %v2149_v34  ;;  %v2161_v15 = vmul.f32 0.5, %v2151_v42 }
 0x6e9   :  { %v2105_v59 = vpop.f32.mrf.mxu0  ;;  %v2146_v44 = vpop.f32.mrf.mxu1 }
 0x6ea   :  { %3168 = vtanh.f32 %v2156_v32 }
 0x6eb   :  { %3170 = vtanh.f32 %v2150_v54 }
 0x6ec   :  { %3172 = vtanh.f32 %v2183_v13 }
 0x6ed   :  { %3174 = vtanh.f32 %v2161_v15  ;;  %v5819_v15 = vld [vmem:[#allocation118_spill] sm:$0xff] }
 0x6ee   :  { %3176 = vtanh.f32 %v4592_v60 }
 0x6f5   :  { %v3167_v61 = vpop.eup %3166 }
 0x6f6   :  { %v2154_v12 = vmul.f32 0.5, %v3167_v61  ;;  %v5820_v61 = vld [vmem:[#allocation119_spill] sm:$0xff] }
 0x6f7   :  { %v3169_v56 = vpop.eup %3168 }
 0x6f8   :  { %v2155_v24 = vadd.f32 0.5, %v2154_v12  ;;  %v2158_v52 = vmul.f32 0.5, %v3169_v56  ;;  %v3171_v27 = vpop.eup %3170  ;;  %v5821_v12 = vld [vmem:[#allocation120_spill] sm:$0xff]  ;;  %v5822_v56 = vld [vmem:[#allocation121_spill] sm:$0xff] }
 0x6f9   :  { %v3173_v6 = vpop.eup %3172 }
 0x6fa   :  { %v2159_v18 = vadd.f32 0.5, %v2158_v52  ;;  %v2166_v30 = vmul.f32 %v3171_v27, %v2155_v24  ;;  %v3175_v11 = vpop.eup %3174  ;;  %v2185_v14 = vmul.f32 0.5, %v3173_v6  ;;  %v5823_v24 = vld [vmem:[#allocation122_spill] sm:$0xff]  ;;  %v5824_v52 = vld [vmem:[#allocation123_spill] sm:$0xff]  ;;  %v5826_v27 = vld [vmem:[#allocation125_spill] sm:$0xff] }
 0x6fb   :  { %v2163_v34 = vmul.f32 0.5, %v3175_v11  ;;  %v3177_v5 = vpop.eup %3176  ;;  %v5829_v6 = vld [vmem:[#allocation128_spill] sm:$0xff]  ;;  %v5830_v11 = vld [vmem:[#allocation129_spill] sm:$0xff] }
 0x6fc   :  { %v2165_v35 = vmul.f32 %v2159_v18, %v4446_v19  ;;  %v2186_v39 = vadd.f32 0.5, %v2185_v14  ;;  %v5818_v19 = vld [vmem:[#allocation117_spill] sm:$0xff]  ;;  %v5825_v18 = vld [vmem:[#allocation124_spill] sm:$0xff]  ;;  %v5831_v14 = vld [vmem:[#allocation130_spill] sm:$0xff] }
 0x6fd   :  { %v2164_v32 = vadd.f32 0.5, %v2163_v34  ;;  %v5832_v34 = vld [vmem:[#allocation131_spill] sm:$0xff] }
 0x6fe   :  { %v4600_v51 = vadd.f32 %v2166_v30, %v2165_v35  ;;  %v2191_v44 = vmul.f32 %v3177_v5, %v2186_v39  ;;  %v5827_v35 = vld [vmem:[#allocation126_spill] sm:$0xff]  ;;  %v5828_v30 = vld [vmem:[#allocation127_spill] sm:$0xff]  ;;  %v5833_v5 = vld [vmem:[#allocation132_spill] sm:$0xff] }
 0x6ff   :  { %v5834_v39 = vld [vmem:[#allocation133_spill] sm:$0xff] }
 0x700   :  { %3178 = vtanh.f32 %v4600_v51  ;;  %v4603_v13 = vpack.c.bf16 %v2191_v44, %v2191_v44  ;;  %v5837_v44 = vld [vmem:[#allocation136_spill] sm:$0xff] }
 0x70d   :  { %v3179_v59 = vpop.eup %3178 }
 0x70e   :  { %v2169_v54 = vmul.f32 %v3179_v59, %v2164_v32  ;;  %v5835_v32 = vld [vmem:[#allocation134_spill] sm:$0xff]  ;;  %v5836_v59 = vld [vmem:[#allocation135_spill] sm:$0xff] }
 0x710   :  { %v2193_v42 = vpack.c.bf16 %v2169_v54, %v2169_v54  ;;  %v5838_v54 = vld [vmem:[#allocation137_spill] sm:$0xff] }
 0x712   :  { %2226 = vmatprep.mubr.bf16.mxu0 %v2193_v42  ;;  %2267 = vmatprep.mubr.bf16.mxu1 %v2193_v42 }
 0x713   :  { %2227 = vmatmul.mubr.bf16.vlgmr.msra.gmra.mxu0 %v4603_v13  ;;  %2268 = vmatmul.mubr.bf16.vlgmr.msra.gmra.mxu1 %v4603_v13 }
 0x714   :  { %2277 = vmatpush1.bf16.msra.mxu0 %v3608_v20  ;;  %2318 = vmatpush1.bf16.msra.mxu1 %v5421_v29 }
 0x715   :  { %2308 = vmatprep.mubr.bf16.mxu0 %v2193_v42  ;;  %2349 = vmatprep.mubr.bf16.mxu1 %v2193_v42  ;;  %v5839_v42 = vld [vmem:[#allocation138_spill] sm:$0xff] }
 0x716   :  { %2278 = vmatprep.subr.bf16.mxu0 %v5422_v53  ;;  %2319 = vmatprep.subr.bf16.mxu1 %v5423_v8 }
 0x718   :  { %2279 = vmatpush1.bf16.msra.mxu0 %v5424_v10  ;;  %2320 = vmatpush1.bf16.msra.mxu1 %v5425_v31 }
 0x719   :  { %2280 = vmatprep.subr.bf16.mxu0 %v5516_v43  ;;  %2321 = vmatprep.subr.bf16.mxu1 %v5517_v49 }
 0x71c   :  { %2281 = vmatpush1.bf16.msra.mxu0 %v5518_v46  ;;  %2322 = vmatpush1.bf16.msra.mxu1 %v5519_v48 }
 0x71d   :  { %2282 = vmatprep.subr.bf16.mxu0 %v5520_v2  ;;  %2323 = vmatprep.subr.bf16.mxu1 %v5521_v40 }
 0x720   :  { %2283 = vmatpush1.bf16.msra.mxu0 %v5522_v33  ;;  %2324 = vmatpush1.bf16.msra.mxu1 %v5523_v50 }
 0x721   :  { %2284 = vmatprep.subr.bf16.mxu0 %v5524_v55  ;;  %2325 = vmatprep.subr.bf16.mxu1 %v5525_v58 }
 0x724   :  { %2285 = vmatpush1.bf16.msra.mxu0 %v5616_v41  ;;  %2326 = vmatpush1.bf16.msra.mxu1 %v5617_v28 }
 0x725   :  { %2286 = vmatprep.subr.bf16.mxu0 %v5618_v25  ;;  %2327 = vmatprep.subr.bf16.mxu1 %v5619_v1 }
 0x728   :  { %2287 = vmatpush1.bf16.msra.mxu0 %v5620_v9  ;;  %2328 = vmatpush1.bf16.msra.mxu1 %v5621_v22 }
 0x729   :  { %2288 = vmatprep.subr.bf16.mxu0 %v5622_v23  ;;  %2329 = vmatprep.subr.bf16.mxu1 %v5623_v45 }
 0x72c   :  { %2289 = vmatpush1.bf16.msra.mxu0 %v5624_v16  ;;  %2330 = vmatpush1.bf16.msra.mxu1 %v5625_v17 }
 0x72d   :  { %2290 = vmatprep.subr.bf16.mxu0 %v5536_v47  ;;  %2331 = vmatprep.subr.bf16.mxu1 %v5537_v36 }
 0x730   :  { %2291 = vmatpush1.bf16.msra.mxu0 %v5538_v57  ;;  %2332 = vmatpush1.bf16.msra.mxu1 %v5626_v7 }
 0x731   :  { %2292 = vmatprep.subr.bf16.mxu0 %v5627_v62  ;;  %2333 = vmatprep.subr.bf16.mxu1 %v5541_v63 }
 0x734   :  { %2293 = vmatpush2.bf16.msra.mxu0 %v5542_v3  ;;  %2334 = vmatpush2.bf16.msra.mxu1 %v5543_v21 }
 0x735   :  { %2294 = vmatprep.subr.bf16.mxu0 %v5818_v19  ;;  %2335 = vmatprep.subr.bf16.mxu1 %v5819_v15 }
 0x738   :  { %2295 = vmatpush2.bf16.msra.mxu0 %v5820_v61  ;;  %2336 = vmatpush2.bf16.msra.mxu1 %v5821_v12 }
 0x739   :  { %2296 = vmatprep.subr.bf16.mxu0 %v5822_v56  ;;  %2337 = vmatprep.subr.bf16.mxu1 %v5823_v24 }
 0x73c   :  { %2297 = vmatpush2.bf16.msra.mxu0 %v5824_v52  ;;  %2338 = vmatpush2.bf16.msra.mxu1 %v5825_v18 }
 0x73d   :  { %2298 = vmatprep.subr.bf16.mxu0 %v5826_v27  ;;  %2339 = vmatprep.subr.bf16.mxu1 %v5827_v35  ;;  %v5916_v27 = vld [vmem:[#allocation81_spill] sm:$0xff] }
 0x740   :  { %2299 = vmatpush2.bf16.msra.mxu0 %v5828_v30  ;;  %2340 = vmatpush2.bf16.msra.mxu1 %v5829_v6  ;;  %v5840_v6 = vld [vmem:[#allocation139_spill] sm:$0xff]  ;;  %v5915_v30 = vld [vmem:[#allocation161_spill] sm:$0xff] }
 0x741   :  { %2300 = vmatprep.subr.bf16.mxu0 %v5830_v11  ;;  %2341 = vmatprep.subr.bf16.mxu1 %v5831_v14  ;;  %v5841_v11 = vld [vmem:[#allocation140_spill] sm:$0xff]  ;;  %v5842_v14 = vld [vmem:[#allocation141_spill] sm:$0xff] }
 0x744   :  { %2301 = vmatpush2.bf16.msra.mxu0 %v5832_v34  ;;  %2342 = vmatpush2.bf16.msra.mxu1 %v5833_v5  ;;  %v5843_v34 = vld [vmem:[#allocation142_spill] sm:$0xff]  ;;  %v5844_v5 = vld [vmem:[#allocation143_spill] sm:$0xff] }
 0x745   :  { %2302 = vmatprep.subr.bf16.mxu0 %v5834_v39  ;;  %2343 = vmatprep.subr.bf16.mxu1 %v5835_v32  ;;  %v5845_v39 = vld [vmem:[#allocation144_spill] sm:$0xff] }
 0x746   :  { %v5846_v32 = vld [vmem:[#allocation12_spill] sm:$0xff] }
 0x748   :  { %2303 = vmatpush2.bf16.msra.mxu0 %v5836_v59  ;;  %2344 = vmatpush2.bf16.msra.mxu1 %v5837_v44  ;;  %v5847_v59 = vld [vmem:[#allocation13_spill] sm:$0xff] }
 0x749   :  { %2304 = vmatprep.subr.bf16.mxu0 %v5838_v54  ;;  %2345 = vmatprep.subr.bf16.mxu1 %v5839_v42  ;;  %v5848_v42 = vld [vmem:[#allocation14_spill] sm:$0xff]  ;;  %v5857_v54 = vld [vmem:[#allocation23_spill] sm:$0xff] }
 0x74c   :  { %2305 = vmatpush2.bf16.msra.mxu0 %v5840_v6  ;;  %2346 = vmatpush2.bf16.msra.mxu1 %v5841_v11  ;;  %v5849_v6 = vld [vmem:[#allocation15_spill] sm:$0xff]  ;;  %v5850_v11 = vld [vmem:[#allocation16_spill] sm:$0xff] }
 0x74d   :  { %2306 = vmatprep.subr.bf16.mxu0 %v5842_v14  ;;  %2347 = vmatprep.subr.bf16.mxu1 %v5843_v34  ;;  %v5851_v14 = vld [vmem:[#allocation17_spill] sm:$0xff]  ;;  %v5852_v34 = vld [vmem:[#allocation18_spill] sm:$0xff] }
 0x750   :  { %2307 = vmatpush2.bf16.msra.mxu0 %v5844_v5  ;;  %2348 = vmatpush2.bf16.msra.mxu1 %v5845_v39  ;;  %v5853_v5 = vld [vmem:[#allocation19_spill] sm:$0xff]  ;;  %v5854_v39 = vld [vmem:[#allocation20_spill] sm:$0xff] }
 0x751   :  { %2404 = vmatprep.subr.bf16.mxu0 %v5846_v32  ;;  %2445 = vmatprep.subr.bf16.mxu1 %v5847_v59  ;;  %v5855_v32 = vld [vmem:[#allocation21_spill] sm:$0xff]  ;;  %v5856_v59 = vld [vmem:[#allocation22_spill] sm:$0xff] }
 0x753   :  { %2309 = vmatmul.mubr.bf16.vlgmr.msra.gmra.mxu0 %v4603_v13  ;;  %2350 = vmatmul.mubr.bf16.vlgmr.msra.gmra.mxu1 %v4603_v13  ;;  %v5858_v13 = vld [vmem:[#allocation24_spill] sm:$0xff] }
 0x754   :  { %2405 = vmatpush1.bf16.msra.mxu0 %v5848_v42  ;;  %2446 = vmatpush1.bf16.msra.mxu1 %v5849_v6  ;;  %v5859_v42 = vld [vmem:[#allocation25_spill] sm:$0xff]  ;;  %v5860_v6 = vld [vmem:[#allocation26_spill] sm:$0xff] }
 0x755   :  { %2406 = vmatprep.subr.bf16.mxu0 %v5850_v11  ;;  %2447 = vmatprep.subr.bf16.mxu1 %v5851_v14  ;;  %v5861_v11 = vld [vmem:[#allocation27_spill] sm:$0xff]  ;;  %v5862_v14 = vld [vmem:[#allocation28_spill] sm:$0xff] }
 0x758   :  { %2407 = vmatpush1.bf16.msra.mxu0 %v5852_v34  ;;  %2448 = vmatpush1.bf16.msra.mxu1 %v5853_v5  ;;  %v5863_v34 = vld [vmem:[#allocation29_spill] sm:$0xff]  ;;  %v5864_v5 = vld [vmem:[#allocation30_spill] sm:$0xff] }
 0x759   :  { %2408 = vmatprep.subr.bf16.mxu0 %v5854_v39  ;;  %2449 = vmatprep.subr.bf16.mxu1 %v5855_v32  ;;  %v5865_v39 = vld [vmem:[#allocation31_spill] sm:$0xff]  ;;  %v5866_v32 = vld [vmem:[#allocation32_spill] sm:$0xff] }
 0x75c   :  { %2409 = vmatpush1.bf16.msra.mxu0 %v5856_v59  ;;  %2450 = vmatpush1.bf16.msra.mxu1 %v5857_v54  ;;  %v5867_v59 = vld [vmem:[#allocation33_spill] sm:$0xff]  ;;  %v5868_v54 = vld [vmem:[#allocation34_spill] sm:$0xff] }
 0x75d   :  { %2410 = vmatprep.subr.bf16.mxu0 %v5858_v13  ;;  %2451 = vmatprep.subr.bf16.mxu1 %v5859_v42  ;;  %v5869_v13 = vld [vmem:[#allocation35_spill] sm:$0xff]  ;;  %v5870_v42 = vld [vmem:[#allocation36_spill] sm:$0xff] }
 0x760   :  { %2411 = vmatpush1.bf16.msra.mxu0 %v5860_v6  ;;  %2452 = vmatpush1.bf16.msra.mxu1 %v5861_v11  ;;  %v5871_v6 = vld [vmem:[#allocation37_spill] sm:$0xff]  ;;  %v5872_v11 = vld [vmem:[#allocation38_spill] sm:$0xff] }
 0x761   :  { %2412 = vmatprep.subr.bf16.mxu0 %v5862_v14  ;;  %2453 = vmatprep.subr.bf16.mxu1 %v5863_v34  ;;  %v5873_v14 = vld [vmem:[#allocation39_spill] sm:$0xff]  ;;  %v5874_v34 = vld [vmem:[#allocation40_spill] sm:$0xff] }
 0x764   :  { %2413 = vmatpush1.bf16.msra.mxu0 %v5864_v5  ;;  %2454 = vmatpush1.bf16.msra.mxu1 %v5865_v39  ;;  %v5875_v5 = vld [vmem:[#allocation41_spill] sm:$0xff]  ;;  %v5876_v39 = vld [vmem:[#allocation42_spill] sm:$0xff] }
 0x765   :  { %2414 = vmatprep.subr.bf16.mxu0 %v5866_v32  ;;  %2455 = vmatprep.subr.bf16.mxu1 %v5867_v59  ;;  %v5877_v32 = vld [vmem:[#allocation43_spill] sm:$0xff]  ;;  %v5878_v59 = vld [vmem:[#allocation44_spill] sm:$0xff] }
 0x768   :  { %2415 = vmatpush1.bf16.msra.mxu0 %v5868_v54  ;;  %2456 = vmatpush1.bf16.msra.mxu1 %v5869_v13  ;;  %v5879_v54 = vld [vmem:[#allocation45_spill] sm:$0xff]  ;;  %v5880_v13 = vld [vmem:[#allocation46_spill] sm:$0xff] }
 0x769   :  { %2416 = vmatprep.subr.bf16.mxu0 %v5870_v42  ;;  %2457 = vmatprep.subr.bf16.mxu1 %v5871_v6  ;;  %v5881_v42 = vld [vmem:[#allocation47_spill] sm:$0xff]  ;;  %v5882_v6 = vld [vmem:[#allocation48_spill] sm:$0xff] }
 0x76c   :  { %2417 = vmatpush1.bf16.msra.mxu0 %v5872_v11  ;;  %2458 = vmatpush1.bf16.msra.mxu1 %v5873_v14  ;;  %v5883_v11 = vld [vmem:[#allocation49_spill] sm:$0xff]  ;;  %v5884_v14 = vld [vmem:[#allocation50_spill] sm:$0xff] }
 0x76d   :  { %2418 = vmatprep.subr.bf16.mxu0 %v5874_v34  ;;  %2459 = vmatprep.subr.bf16.mxu1 %v5875_v5  ;;  %v5885_v34 = vld [vmem:[#allocation51_spill] sm:$0xff]  ;;  %v5886_v5 = vld [vmem:[#allocation52_spill] sm:$0xff] }
 0x770   :  { %2419 = vmatpush1.bf16.msra.mxu0 %v5876_v39  ;;  %2460 = vmatpush1.bf16.msra.mxu1 %v5877_v32  ;;  %v5887_v39 = vld [vmem:[#allocation53_spill] sm:$0xff]  ;;  %v5888_v32 = vld [vmem:[#allocation54_spill] sm:$0xff] }
 0x771   :  { %2420 = vmatprep.subr.bf16.mxu0 %v5878_v59  ;;  %2461 = vmatprep.subr.bf16.mxu1 %v5879_v54  ;;  %v5889_v59 = vld [vmem:[#allocation55_spill] sm:$0xff]  ;;  %v5890_v54 = vld [vmem:[#allocation56_spill] sm:$0xff] }
 0x774   :  { %2421 = vmatpush2.bf16.msra.mxu0 %v5880_v13  ;;  %2462 = vmatpush2.bf16.msra.mxu1 %v5881_v42  ;;  %v5891_v13 = vld [vmem:[#allocation57_spill] sm:$0xff]  ;;  %v5892_v42 = vld [vmem:[#allocation58_spill] sm:$0xff] }
 0x775   :  { %2422 = vmatprep.subr.bf16.mxu0 %v5882_v6  ;;  %2463 = vmatprep.subr.bf16.mxu1 %v5883_v11  ;;  %v5893_v6 = vld [vmem:[#allocation59_spill] sm:$0xff]  ;;  %v5894_v11 = vld [vmem:[#allocation60_spill] sm:$0xff] }
 0x778   :  { %2423 = vmatpush2.bf16.msra.mxu0 %v5884_v14  ;;  %2464 = vmatpush2.bf16.msra.mxu1 %v5885_v34  ;;  %v5895_v14 = vld [vmem:[#allocation61_spill] sm:$0xff]  ;;  %v5896_v34 = vld [vmem:[#allocation62_spill] sm:$0xff] }
 0x779   :  { %2424 = vmatprep.subr.bf16.mxu0 %v5886_v5  ;;  %2465 = vmatprep.subr.bf16.mxu1 %v5887_v39  ;;  %v5897_v5 = vld [vmem:[#allocation63_spill] sm:$0xff]  ;;  %v5898_v39 = vld [vmem:[#allocation64_spill] sm:$0xff] }
 0x77c   :  { %2425 = vmatpush2.bf16.msra.mxu0 %v5888_v32  ;;  %2466 = vmatpush2.bf16.msra.mxu1 %v5889_v59  ;;  %v5899_v32 = vld [vmem:[#allocation65_spill] sm:$0xff]  ;;  %v5900_v59 = vld [vmem:[#allocation66_spill] sm:$0xff] }
 0x77d   :  { %2426 = vmatprep.subr.bf16.mxu0 %v5890_v54  ;;  %2467 = vmatprep.subr.bf16.mxu1 %v5891_v13  ;;  %v5901_v54 = vld [vmem:[#allocation67_spill] sm:$0xff]  ;;  %v5902_v13 = vld [vmem:[#allocation68_spill] sm:$0xff] }
 0x780   :  { %2427 = vmatpush2.bf16.msra.mxu0 %v5892_v42  ;;  %2468 = vmatpush2.bf16.msra.mxu1 %v5893_v6  ;;  %v5903_v42 = vld [vmem:[#allocation69_spill] sm:$0xff]  ;;  %v5904_v6 = vld [vmem:[#allocation70_spill] sm:$0xff] }
 0x781   :  { %2428 = vmatprep.subr.bf16.mxu0 %v5894_v11  ;;  %2469 = vmatprep.subr.bf16.mxu1 %v5895_v14  ;;  %v5905_v11 = vld [vmem:[#allocation71_spill] sm:$0xff]  ;;  %v5906_v14 = vld [vmem:[#allocation72_spill] sm:$0xff] }
 0x784   :  { %2429 = vmatpush2.bf16.msra.mxu0 %v5896_v34  ;;  %2470 = vmatpush2.bf16.msra.mxu1 %v5897_v5  ;;  %v5907_v34 = vld [vmem:[#allocation73_spill] sm:$0xff]  ;;  %v5908_v5 = vld [vmem:[#allocation74_spill] sm:$0xff] }
 0x785   :  { %2430 = vmatprep.subr.bf16.mxu0 %v5898_v39  ;;  %2471 = vmatprep.subr.bf16.mxu1 %v5899_v32  ;;  %v5909_v39 = vld [vmem:[#allocation75_spill] sm:$0xff]  ;;  %v5910_v32 = vld [vmem:[#allocation76_spill] sm:$0xff] }
 0x788   :  { %2431 = vmatpush2.bf16.msra.mxu0 %v5900_v59  ;;  %2472 = vmatpush2.bf16.msra.mxu1 %v5901_v54  ;;  %v5911_v59 = vld [vmem:[#allocation77_spill] sm:$0xff]  ;;  %v5912_v54 = vld [vmem:[#allocation80_spill] sm:$0xff] }
 0x789   :  { %2432 = vmatprep.subr.bf16.mxu0 %v5902_v13  ;;  %2473 = vmatprep.subr.bf16.mxu1 %v5903_v42  ;;  %v5913_v13 = vld [vmem:[#allocation162_spill] sm:$0xff] }
 0x78a   :  { %v382_v44 = vadd.f32 %v5913_v13, %v5912_v54  ;;  %v5914_v42 = vld [vmem:[#allocation82_spill] sm:$0xff] }
 0x78c   :  { %2433 = vmatpush2.bf16.msra.mxu0 %v5904_v6  ;;  %2474 = vmatpush2.bf16.msra.mxu1 %v5905_v11  ;;  %v455_v6 = vadd.f32 %v5915_v30, %v5914_v42 }
 0x78d   :  { %2434 = vmatprep.subr.bf16.mxu0 %v5906_v14  ;;  %2475 = vmatprep.subr.bf16.mxu1 %v5907_v34  ;;  %v5917_v14 = vld [vmem:[#allocation164_spill] sm:$0xff]  ;;  %v5918_v34 = vld [vmem:[#allocation163_spill] sm:$0xff] }
 0x78e   :  { %v384_v18 = vadd.f32 %v5917_v14, %v5916_v27 }
 0x790   :  { %2435 = vmatpush2.bf16.msra.mxu0 %v5908_v5  ;;  %2476 = vmatpush2.bf16.msra.mxu1 %v5909_v39  ;;  %v457_v5 = vadd.f32 %v5918_v34, %v5420_v4  ;;  %v5949_v4 = vld [vmem:[#allocation76_spill] sm:$0xff] }
 0x791   :  { %2486 = vmatprep.subr.bf16.mxu0 %v5910_v32  ;;  %2527 = vmatprep.subr.bf16.mxu1 %v5911_v59 }
 0x7d3   :  { %v2228_v35 = vpop.f32.mrf.mxu0  ;;  %v2269_v11 = vpop.f32.mrf.mxu1 }
 0x7d4   :  { %v2380_v52 = vadd.f32 %v2228_v35, %v382_v44  ;;  %v2382_v39 = vadd.f32 %v2269_v11, %v455_v6 }
 0x7d5   :  { %v2230_v24 = vpop.f32.mrf.mxu0  ;;  %v2271_v32 = vpop.f32.mrf.mxu1 }
 0x7d6   :  { %v2384_v56 = vmul.f32 0.5, %v2380_v52  ;;  %v2381_v59 = vadd.f32 %v2230_v24, %v384_v18  ;;  %v2383_v12 = vadd.f32 %v2271_v32, %v457_v5 }
 0x7d7   :  { %v2232_v61 = vpop.f32.mrf.mxu0  ;;  %v2273_v13 = vpop.f32.mrf.mxu1 }
 0x7d8   :  { %3180 = vtanh.f32 %v2384_v56  ;;  %v2388_v54 = vmul.f32 0.5, %v2381_v59  ;;  %v2393_v13 = vmul.f32 0.5, %v2383_v12 }
 0x7d9   :  { %v2233_v30 = vpop.f32.mrf.mxu0  ;;  %v2274_v42 = vpop.f32.mrf.mxu1 }
 0x7da   :  { %3182 = vtanh.f32 %v2388_v54 }
 0x7db   :  { %3184 = vtanh.f32 %v2382_v39 }
 0x7e5   :  { %v3181_v15 = vpop.eup %3180 }
 0x7e6   :  { %v2386_v14 = vmul.f32 0.5, %v3181_v15 }
 0x7e7   :  { %v3183_v27 = vpop.eup %3182 }
 0x7e8   :  { %v2387_v19 = vadd.f32 0.5, %v2386_v14  ;;  %v2390_v34 = vmul.f32 0.5, %v3183_v27  ;;  %v3185_v35 = vpop.eup %3184 }
 0x7ea   :  { %v2391_v44 = vadd.f32 0.5, %v2390_v34  ;;  %v2398_v6 = vmul.f32 %v3185_v35, %v2387_v19 }
 0x7ec   :  { %v2397_v52 = vmul.f32 %v2391_v44, %v4592_v60 }
 0x7ee   :  { %v4746_v24 = vadd.f32 %v2398_v6, %v2397_v52 }
 0x7f0   :  { %5919 = vst [vmem:[#allocation78_spill] sm:$0xff] %v4746_v24 }
 0x813   :  { %v2310_v61 = vpop.f32.mrf.mxu0  ;;  %v2351_v18 = vpop.f32.mrf.mxu1 }
 0x814   :  { %v2358_v56 = vadd.f32 %v2310_v61, %v5515_v38  ;;  %v2360_v19 = vadd.f32 %v2351_v18, %v3972_v0  ;;  %v5945_v0 = vld [vmem:[#allocation141_spill] sm:$0xff]  ;;  %v5947_v38 = vld [vmem:[#allocation143_spill] sm:$0xff] }
 0x815   :  { %v2312_v32 = vpop.f32.mrf.mxu0  ;;  %v2353_v59 = vpop.f32.mrf.mxu1 }
 0x816   :  { %v2362_v54 = vmul.f32 0.5, %v2358_v56  ;;  %v2359_v42 = vadd.f32 %v2312_v32, %v3967_v37  ;;  %v2361_v60 = vadd.f32 %v2353_v59, %v3978_v26  ;;  %v5944_v26 = vld [vmem:[#allocation140_spill] sm:$0xff]  ;;  %v5946_v37 = vld [vmem:[#allocation142_spill] sm:$0xff] }
 0x817   :  { %v2314_v15 = vpop.f32.mrf.mxu0  ;;  %v2355_v11 = vpop.f32.mrf.mxu1 }
 0x818   :  { %3186 = vtanh.f32 %v2362_v54  ;;  %v2366_v27 = vmul.f32 0.5, %v2359_v42  ;;  %v2371_v30 = vmul.f32 0.5, %v2361_v60 }
 0x819   :  { %v2315_v5 = vpop.f32.mrf.mxu0  ;;  %v2356_v39 = vpop.f32.mrf.mxu1 }
 0x81a   :  { %3188 = vtanh.f32 %v2366_v27 }
 0x81b   :  { %3190 = vtanh.f32 %v2360_v19 }
 0x81c   :  { %3192 = vtanh.f32 %v2393_v13 }
 0x81d   :  { %3194 = vtanh.f32 %v2371_v30  ;;  %v5922_v30 = vld [vmem:[#allocation118_spill] sm:$0xff] }
 0x81e   :  { %3196 = vtanh.f32 %v4746_v24  ;;  %v5948_v24 = vld [vmem:[#allocation144_spill] sm:$0xff] }
 0x825   :  { %v3187_v14 = vpop.eup %3186 }
 0x826   :  { %v2364_v34 = vmul.f32 0.5, %v3187_v14  ;;  %v5923_v14 = vld [vmem:[#allocation119_spill] sm:$0xff] }
 0x827   :  { %v3189_v35 = vpop.eup %3188 }
 0x828   :  { %v2365_v44 = vadd.f32 0.5, %v2364_v34  ;;  %v2368_v6 = vmul.f32 0.5, %v3189_v35  ;;  %v3191_v61 = vpop.eup %3190  ;;  %v5924_v34 = vld [vmem:[#allocation120_spill] sm:$0xff]  ;;  %v5925_v35 = vld [vmem:[#allocation121_spill] sm:$0xff] }
 0x829   :  { %v3193_v12 = vpop.eup %3192 }
 0x82a   :  { %v2369_v52 = vadd.f32 0.5, %v2368_v6  ;;  %v2376_v32 = vmul.f32 %v3191_v61, %v2365_v44  ;;  %v3195_v59 = vpop.eup %3194  ;;  %v2395_v54 = vmul.f32 0.5, %v3193_v12  ;;  %v5926_v44 = vld [vmem:[#allocation122_spill] sm:$0xff]  ;;  %v5927_v6 = vld [vmem:[#allocation123_spill] sm:$0xff]  ;;  %v5929_v61 = vld [vmem:[#allocation125_spill] sm:$0xff] }
 0x82b   :  { %v2373_v42 = vmul.f32 0.5, %v3195_v59  ;;  %v3197_v15 = vpop.eup %3196  ;;  %v5932_v12 = vld [vmem:[#allocation128_spill] sm:$0xff]  ;;  %v5933_v59 = vld [vmem:[#allocation129_spill] sm:$0xff] }
 0x82c   :  { %v2375_v56 = vmul.f32 %v2369_v52, %v4600_v51  ;;  %v2396_v11 = vadd.f32 0.5, %v2395_v54  ;;  %v5921_v51 = vld [vmem:[#allocation117_spill] sm:$0xff]  ;;  %v5928_v52 = vld [vmem:[#allocation124_spill] sm:$0xff]  ;;  %v5934_v54 = vld [vmem:[#allocation130_spill] sm:$0xff] }
 0x82d   :  { %v2374_v27 = vadd.f32 0.5, %v2373_v42  ;;  %v5935_v42 = vld [vmem:[#allocation131_spill] sm:$0xff] }
 0x82e   :  { %v4754_v18 = vadd.f32 %v2376_v32, %v2375_v56  ;;  %v2401_v39 = vmul.f32 %v3197_v15, %v2396_v11  ;;  %v5930_v56 = vld [vmem:[#allocation126_spill] sm:$0xff]  ;;  %v5931_v32 = vld [vmem:[#allocation127_spill] sm:$0xff]  ;;  %v5936_v15 = vld [vmem:[#allocation132_spill] sm:$0xff] }
 0x82f   :  { %v5937_v11 = vld [vmem:[#allocation133_spill] sm:$0xff] }
 0x830   :  { %5920 = vst [vmem:[#allocation85_spill] sm:$0xff] %v4754_v18  ;;  %3198 = vtanh.f32 %v4754_v18  ;;  %v4757_v13 = vpack.c.bf16 %v2401_v39, %v2401_v39  ;;  %v5940_v39 = vld [vmem:[#allocation136_spill] sm:$0xff]  ;;  %v5943_v18 = vld [vmem:[#allocation139_spill] sm:$0xff] }
 0x83d   :  { %v3199_v5 = vpop.eup %3198 }
 0x83e   :  { %v2379_v19 = vmul.f32 %v3199_v5, %v2374_v27  ;;  %v5938_v27 = vld [vmem:[#allocation134_spill] sm:$0xff]  ;;  %v5939_v5 = vld [vmem:[#allocation135_spill] sm:$0xff] }
 0x840   :  { %v2403_v60 = vpack.c.bf16 %v2379_v19, %v2379_v19  ;;  %v5941_v19 = vld [vmem:[#allocation137_spill] sm:$0xff] }
 0x842   :  { %2436 = vmatprep.mubr.bf16.mxu0 %v2403_v60  ;;  %2477 = vmatprep.mubr.bf16.mxu1 %v2403_v60 }
 0x843   :  { %2437 = vmatmul.mubr.bf16.vlgmr.msra.gmra.mxu0 %v4757_v13  ;;  %2478 = vmatmul.mubr.bf16.vlgmr.msra.gmra.mxu1 %v4757_v13 }
 0x844   :  { %2487 = vmatpush1.bf16.msra.mxu0 %v3608_v20  ;;  %2528 = vmatpush1.bf16.msra.mxu1 %v5421_v29 }
 0x845   :  { %2518 = vmatprep.mubr.bf16.mxu0 %v2403_v60  ;;  %2559 = vmatprep.mubr.bf16.mxu1 %v2403_v60  ;;  %v5942_v60 = vld [vmem:[#allocation138_spill] sm:$0xff] }
 0x846   :  { %2488 = vmatprep.subr.bf16.mxu0 %v5422_v53  ;;  %2529 = vmatprep.subr.bf16.mxu1 %v5423_v8 }
 0x848   :  { %2489 = vmatpush1.bf16.msra.mxu0 %v5424_v10  ;;  %2530 = vmatpush1.bf16.msra.mxu1 %v5425_v31 }
 0x849   :  { %2490 = vmatprep.subr.bf16.mxu0 %v5516_v43  ;;  %2531 = vmatprep.subr.bf16.mxu1 %v5517_v49 }
 0x84c   :  { %2491 = vmatpush1.bf16.msra.mxu0 %v5518_v46  ;;  %2532 = vmatpush1.bf16.msra.mxu1 %v5519_v48 }
 0x84d   :  { %2492 = vmatprep.subr.bf16.mxu0 %v5520_v2  ;;  %2533 = vmatprep.subr.bf16.mxu1 %v5521_v40 }
 0x850   :  { %2493 = vmatpush1.bf16.msra.mxu0 %v5522_v33  ;;  %2534 = vmatpush1.bf16.msra.mxu1 %v5523_v50 }
 0x851   :  { %2494 = vmatprep.subr.bf16.mxu0 %v5524_v55  ;;  %2535 = vmatprep.subr.bf16.mxu1 %v5525_v58 }
 0x854   :  { %2495 = vmatpush1.bf16.msra.mxu0 %v5616_v41  ;;  %2536 = vmatpush1.bf16.msra.mxu1 %v5617_v28 }
 0x855   :  { %2496 = vmatprep.subr.bf16.mxu0 %v5618_v25  ;;  %2537 = vmatprep.subr.bf16.mxu1 %v5619_v1 }
 0x858   :  { %2497 = vmatpush1.bf16.msra.mxu0 %v5620_v9  ;;  %2538 = vmatpush1.bf16.msra.mxu1 %v5621_v22 }
 0x859   :  { %2498 = vmatprep.subr.bf16.mxu0 %v5622_v23  ;;  %2539 = vmatprep.subr.bf16.mxu1 %v5623_v45 }
 0x85c   :  { %2499 = vmatpush1.bf16.msra.mxu0 %v5624_v16  ;;  %2540 = vmatpush1.bf16.msra.mxu1 %v5625_v17 }
 0x85d   :  { %2500 = vmatprep.subr.bf16.mxu0 %v5536_v47  ;;  %2541 = vmatprep.subr.bf16.mxu1 %v5537_v36 }
 0x860   :  { %2501 = vmatpush1.bf16.msra.mxu0 %v5538_v57  ;;  %2542 = vmatpush1.bf16.msra.mxu1 %v5626_v7 }
 0x861   :  { %2502 = vmatprep.subr.bf16.mxu0 %v5627_v62  ;;  %2543 = vmatprep.subr.bf16.mxu1 %v5541_v63 }
 0x864   :  { %2503 = vmatpush2.bf16.msra.mxu0 %v5542_v3  ;;  %2544 = vmatpush2.bf16.msra.mxu1 %v5543_v21 }
 0x865   :  { %2504 = vmatprep.subr.bf16.mxu0 %v5921_v51  ;;  %2545 = vmatprep.subr.bf16.mxu1 %v5922_v30 }
 0x868   :  { %2505 = vmatpush2.bf16.msra.mxu0 %v5923_v14  ;;  %2546 = vmatpush2.bf16.msra.mxu1 %v5924_v34 }
 0x869   :  { %2506 = vmatprep.subr.bf16.mxu0 %v5925_v35  ;;  %2547 = vmatprep.subr.bf16.mxu1 %v5926_v44 }
 0x86c   :  { %2507 = vmatpush2.bf16.msra.mxu0 %v5927_v6  ;;  %2548 = vmatpush2.bf16.msra.mxu1 %v5928_v52 }
 0x86d   :  { %2508 = vmatprep.subr.bf16.mxu0 %v5929_v61  ;;  %2549 = vmatprep.subr.bf16.mxu1 %v5930_v56 }
 0x870   :  { %2509 = vmatpush2.bf16.msra.mxu0 %v5931_v32  ;;  %2550 = vmatpush2.bf16.msra.mxu1 %v5932_v12 }
 0x871   :  { %2510 = vmatprep.subr.bf16.mxu0 %v5933_v59  ;;  %2551 = vmatprep.subr.bf16.mxu1 %v5934_v54 }
 0x874   :  { %2511 = vmatpush2.bf16.msra.mxu0 %v5935_v42  ;;  %2552 = vmatpush2.bf16.msra.mxu1 %v5936_v15 }
 0x875   :  { %2512 = vmatprep.subr.bf16.mxu0 %v5937_v11  ;;  %2553 = vmatprep.subr.bf16.mxu1 %v5938_v27 }
 0x878   :  { %2513 = vmatpush2.bf16.msra.mxu0 %v5939_v5  ;;  %2554 = vmatpush2.bf16.msra.mxu1 %v5940_v39  ;;  %v5950_v5 = vld [vmem:[#allocation77_spill] sm:$0xff] }
 0x879   :  { %2514 = vmatprep.subr.bf16.mxu0 %v5941_v19  ;;  %2555 = vmatprep.subr.bf16.mxu1 %v5942_v60 }
 0x87c   :  { %2515 = vmatpush2.bf16.msra.mxu0 %v5943_v18  ;;  %2556 = vmatpush2.bf16.msra.mxu1 %v5944_v26 }
 0x87d   :  { %2516 = vmatprep.subr.bf16.mxu0 %v5945_v0  ;;  %2557 = vmatprep.subr.bf16.mxu1 %v5946_v37 }
 0x880   :  { %2517 = vmatpush2.bf16.msra.mxu0 %v5947_v38  ;;  %2558 = vmatpush2.bf16.msra.mxu1 %v5948_v24 }
 0x881   :  { %2614 = vmatprep.subr.bf16.mxu0 %v5949_v4  ;;  %2655 = vmatprep.subr.bf16.mxu1 %v5950_v5  ;;  %v5952_v4 = vld [vmem:[#allocation80_spill] sm:$0xff]  ;;  %v5964_v5 = vld [vmem:[#allocation170_spill] sm:$0xff] }
 0x883   :  { %2519 = vmatmul.mubr.bf16.vlgmr.msra.gmra.mxu0 %v4757_v13  ;;  %2560 = vmatmul.mubr.bf16.vlgmr.msra.gmra.mxu1 %v4757_v13 }
 0x884   :  { %2615 = vmatpush1.bf16.msra.mxu0 %v3608_v20  ;;  %2656 = vmatpush1.bf16.msra.mxu1 %v5421_v29  ;;  %v5951_v20 = vld [vmem:[#allocation135_spill] sm:$0xff]  ;;  %v5953_v29 = vld [vmem:[#allocation166_spill] sm:$0xff] }
 0x885   :  { %2616 = vmatprep.subr.bf16.mxu0 %v5422_v53  ;;  %2657 = vmatprep.subr.bf16.mxu1 %v5423_v8  ;;  %v386_v53 = vadd.f32 %v5953_v29, %v5952_v4  ;;  %v5954_v8 = vld [vmem:[#allocation82_spill] sm:$0xff] }
 0x888   :  { %2617 = vmatpush1.bf16.msra.mxu0 %v5424_v10  ;;  %2658 = vmatpush1.bf16.msra.mxu1 %v5425_v31  ;;  %v5955_v10 = vld [vmem:[#allocation165_spill] sm:$0xff] }
 0x889   :  { %2618 = vmatprep.subr.bf16.mxu0 %v5516_v43  ;;  %2659 = vmatprep.subr.bf16.mxu1 %v5517_v49  ;;  %v459_v31 = vadd.f32 %v5955_v10, %v5954_v8 }
 0x88c   :  { %2619 = vmatpush1.bf16.msra.mxu0 %v5518_v46  ;;  %2660 = vmatpush1.bf16.msra.mxu1 %v5519_v48  ;;  %v5956_v46 = vld [vmem:[#allocation81_spill] sm:$0xff]  ;;  %v5957_v48 = vld [vmem:[#allocation168_spill] sm:$0xff] }
 0x88d   :  { %2620 = vmatprep.subr.bf16.mxu0 %v5520_v2  ;;  %2661 = vmatprep.subr.bf16.mxu1 %v5521_v40  ;;  %v388_v2 = vadd.f32 %v5957_v48, %v5956_v46 }
 0x890   :  { %2621 = vmatpush1.bf16.msra.mxu0 %v5522_v33  ;;  %2662 = vmatpush1.bf16.msra.mxu1 %v5523_v50 }
 0x891   :  { %2622 = vmatprep.subr.bf16.mxu0 %v5524_v55  ;;  %2663 = vmatprep.subr.bf16.mxu1 %v5525_v58 }
 0x894   :  { %2623 = vmatpush1.bf16.msra.mxu0 %v5616_v41  ;;  %2664 = vmatpush1.bf16.msra.mxu1 %v5617_v28 }
 0x895   :  { %2624 = vmatprep.subr.bf16.mxu0 %v5618_v25  ;;  %2665 = vmatprep.subr.bf16.mxu1 %v5619_v1 }
 0x898   :  { %2625 = vmatpush1.bf16.msra.mxu0 %v5620_v9  ;;  %2666 = vmatpush1.bf16.msra.mxu1 %v5621_v22 }
 0x899   :  { %2626 = vmatprep.subr.bf16.mxu0 %v5622_v23  ;;  %2667 = vmatprep.subr.bf16.mxu1 %v5623_v45 }
 0x89c   :  { %2627 = vmatpush1.bf16.msra.mxu0 %v5624_v16  ;;  %2668 = vmatpush1.bf16.msra.mxu1 %v5625_v17  ;;  %v5960_v17 = vld [vmem:[#allocation78_spill] sm:$0xff] }
 0x89d   :  { %2628 = vmatprep.subr.bf16.mxu0 %v5536_v47  ;;  %2669 = vmatprep.subr.bf16.mxu1 %v5537_v36 }
 0x8a0   :  { %2629 = vmatpush1.bf16.msra.mxu0 %v5538_v57  ;;  %2670 = vmatpush1.bf16.msra.mxu1 %v5626_v7 }
 0x8a1   :  { %2630 = vmatprep.subr.bf16.mxu0 %v5627_v62  ;;  %2671 = vmatprep.subr.bf16.mxu1 %v5541_v63  ;;  %v5958_v63 = vld [vmem:[#allocation83_spill] sm:$0xff] }
 0x8a4   :  { %2631 = vmatpush2.bf16.msra.mxu0 %v5542_v3  ;;  %2672 = vmatpush2.bf16.msra.mxu1 %v5543_v21  ;;  %v5959_v3 = vld [vmem:[#allocation167_spill] sm:$0xff] }
 0x8a5   :  { %2632 = vmatprep.subr.bf16.mxu0 %v5921_v51  ;;  %2673 = vmatprep.subr.bf16.mxu1 %v5922_v30  ;;  %v461_v21 = vadd.f32 %v5959_v3, %v5958_v63  ;;  %v2728_v63 = vld [vmem:[#allocation7 + $0x50] sm:$0xff]  ;;  %v2727_v3 = vld [vmem:[#allocation7 + $0x48] sm:$0xff] }
 0x8a8   :  { %2633 = vmatpush2.bf16.msra.mxu0 %v5923_v14  ;;  %2674 = vmatpush2.bf16.msra.mxu1 %v5924_v34 }
 0x8a9   :  { %2634 = vmatprep.subr.bf16.mxu0 %v5925_v35  ;;  %2675 = vmatprep.subr.bf16.mxu1 %v5926_v44  ;;  %v5961_v35 = vld [vmem:[#allocation84_spill] sm:$0xff] }
 0x8ac   :  { %2635 = vmatpush2.bf16.msra.mxu0 %v5927_v6  ;;  %2676 = vmatpush2.bf16.msra.mxu1 %v5928_v52 }
 0x8ad   :  { %2636 = vmatprep.subr.bf16.mxu0 %v5929_v61  ;;  %2677 = vmatprep.subr.bf16.mxu1 %v5930_v56  ;;  %v5962_v56 = vld [vmem:[#allocation79_spill] sm:$0xff] }
 0x8b0   :  { %2637 = vmatpush2.bf16.msra.mxu0 %v5931_v32  ;;  %2678 = vmatpush2.bf16.msra.mxu1 %v5932_v12 }
 0x8b1   :  { %2638 = vmatprep.subr.bf16.mxu0 %v5933_v59  ;;  %2679 = vmatprep.subr.bf16.mxu1 %v5934_v54 }
 0x8b4   :  { %2639 = vmatpush2.bf16.msra.mxu0 %v5935_v42  ;;  %2680 = vmatpush2.bf16.msra.mxu1 %v5936_v15 }
 0x8b5   :  { %2640 = vmatprep.subr.bf16.mxu0 %v5937_v11  ;;  %2681 = vmatprep.subr.bf16.mxu1 %v5938_v27  ;;  %v5963_v11 = vld [vmem:[#allocation169_spill] sm:$0xff] }
 0x8b8   :  { %2641 = vmatpush2.bf16.msra.mxu0 %v5951_v20  ;;  %2682 = vmatpush2.bf16.msra.mxu1 %v5940_v39 }
 0x8b9   :  { %2642 = vmatprep.subr.bf16.mxu0 %v5941_v19  ;;  %2683 = vmatprep.subr.bf16.mxu1 %v5942_v60 }
 0x8bc   :  { %2643 = vmatpush2.bf16.msra.mxu0 %v5943_v18  ;;  %2684 = vmatpush2.bf16.msra.mxu1 %v5944_v26 }
 0x8bd   :  { %2644 = vmatprep.subr.bf16.mxu0 %v5945_v0  ;;  %2685 = vmatprep.subr.bf16.mxu1 %v5946_v37 }
 0x8c0   :  { %2645 = vmatpush2.bf16.msra.mxu0 %v5947_v38  ;;  %2686 = vmatpush2.bf16.msra.mxu1 %v5948_v24 }
 0x903   :  { %v2438_v43 = vpop.f32.mrf.mxu0  ;;  %v2479_v49 = vpop.f32.mrf.mxu1 }
 0x904   :  { %v2590_v26 = vadd.f32 %v2438_v43, %v386_v53  ;;  %v2592_v40 = vadd.f32 %v2479_v49, %v459_v31  ;;  %v5965_v31 = vld [vmem:[#allocation85_spill] sm:$0xff] }
 0x905   :  { %v2440_v0 = vpop.f32.mrf.mxu0  ;;  %v2481_v33 = vpop.f32.mrf.mxu1 }
 0x906   :  { %v2594_v37 = vmul.f32 0.5, %v2590_v26  ;;  %v2591_v50 = vadd.f32 %v2440_v0, %v388_v2  ;;  %v2593_v47 = vadd.f32 %v2481_v33, %v461_v21  ;;  %v2726_v21 = vld [vmem:[#allocation7 + $0x40] sm:$0xff] }
 0x907   :  { %v2442_v38 = vpop.f32.mrf.mxu0  ;;  %v2483_v55 = vpop.f32.mrf.mxu1 }
 0x908   :  { %3200 = vtanh.f32 %v2594_v37  ;;  %v2598_v58 = vmul.f32 0.5, %v2591_v50  ;;  %v2603_v41 = vmul.f32 0.5, %v2593_v47  ;;  %v3330_v50 = vmov 0.0   ;;  %v2733_v38 = vld [vmem:[#allocation7 + $0x78] sm:$0xff]  ;;  %v2732_v55 = vld [vmem:[#allocation7 + $0x70] sm:$0xff] }
 0x909   :  { %v2443_v36 = vpop.f32.mrf.mxu0  ;;  %v2484_v57 = vpop.f32.mrf.mxu1  ;;  %3006 = vmatprep.subr.mxu0 %v3330_v50  ;;  %v2725_v47 = vld [vmem:[#allocation7 + $0x38] sm:$0xff] }
 0x90a   :  { %3202 = vtanh.f32 %v2598_v58  ;;  %v2731_v58 = vld [vmem:[#allocation7 + $0x68] sm:$0xff]  ;;  %v2730_v36 = vld [vmem:[#allocation7 + $0x60] sm:$0xff]  ;;  %v2729_v57 = vld [vmem:[#allocation7 + $0x58] sm:$0xff] }
 0x90b   :  { %3204 = vtanh.f32 %v2592_v40 }
 0x90c   :  { %3206 = vtanh.f32 %v2603_v41  ;;  %v2724_v41 = vld [vmem:[#allocation7 + $0x30] sm:$0xff] }
 0x915   :  { %v3201_v28 = vpop.eup %3200 }
 0x916   :  { %v2596_v25 = vmul.f32 0.5, %v3201_v28  ;;  %v2723_v28 = vld [vmem:[#allocation7 + $0x28] sm:$0xff] }
 0x917   :  { %v3203_v1 = vpop.eup %3202 }
 0x918   :  { %v2597_v9 = vadd.f32 0.5, %v2596_v25  ;;  %v2600_v22 = vmul.f32 0.5, %v3203_v1  ;;  %v3205_v23 = vpop.eup %3204  ;;  %v2722_v25 = vld [vmem:[#allocation7 + $0x20] sm:$0xff]  ;;  %v2721_v1 = vld [vmem:[#allocation7 + $0x18] sm:$0xff] }
 0x919   :  { %v3207_v24 = vpop.eup %3206 }
 0x91a   :  { %v2601_v45 = vadd.f32 0.5, %v2600_v22  ;;  %v2608_v16 = vmul.f32 %v3205_v23, %v2597_v9  ;;  %v2605_v18 = vmul.f32 0.5, %v3207_v24  ;;  %v2720_v9 = vld [vmem:[#allocation7 + $0x10] sm:$0xff]  ;;  %v2719_v22 = vld [vmem:[#allocation7 + $0x8] sm:$0xff]  ;;  %v2718_v23 = vld [vmem:[#allocation7] sm:$0xff] }
 0x91c   :  { %v2607_v7 = vmul.f32 %v2601_v45, %v5960_v17  ;;  %v2606_v13 = vadd.f32 0.5, %v2605_v18 }
 0x91e   :  { %v2609_v62 = vadd.f32 %v2608_v16, %v2607_v7 }
 0x920   :  { %3208 = vtanh.f32 %v2609_v62 }
 0x92d   :  { %v3209_v51 = vpop.eup %3208 }
 0x92e   :  { %v2611_v30 = vmul.f32 %v3209_v51, %v2606_v13 }
 0x930   :  { %v2612_v37 = vpack.c.bf16 %v2611_v30, %v2611_v30 }
 0x943   :  { %v2520_v14 = vpop.f32.mrf.mxu0  ;;  %v2561_v34 = vpop.f32.mrf.mxu1 }
 0x944   :  { %v2568_v44 = vadd.f32 %v2520_v14, %v5961_v35  ;;  %v2570_v27 = vadd.f32 %v2561_v34, %v5963_v11 }
 0x945   :  { %v2522_v6 = vpop.f32.mrf.mxu0  ;;  %v2563_v52 = vpop.f32.mrf.mxu1 }
 0x946   :  { %v2572_v61 = vmul.f32 0.5, %v2568_v44  ;;  %v2569_v32 = vadd.f32 %v2522_v6, %v5962_v56  ;;  %v2571_v39 = vadd.f32 %v2563_v52, %v5964_v5 }
 0x947   :  { %v2524_v12 = vpop.f32.mrf.mxu0  ;;  %v2565_v59 = vpop.f32.mrf.mxu1 }
 0x948   :  { %3210 = vtanh.f32 %v2572_v61  ;;  %v2576_v54 = vmul.f32 0.5, %v2569_v32  ;;  %v2581_v19 = vmul.f32 0.5, %v2571_v39 }
 0x949   :  { %v2525_v42 = vpop.f32.mrf.mxu0  ;;  %v2566_v15 = vpop.f32.mrf.mxu1 }
 0x94a   :  { %3212 = vtanh.f32 %v2576_v54 }
 0x94b   :  { %3214 = vtanh.f32 %v2570_v27 }
 0x94c   :  { %3216 = vtanh.f32 %v2581_v19 }
 0x955   :  { %v3211_v60 = vpop.eup %3210 }
 0x956   :  { %v2574_v20 = vmul.f32 0.5, %v3211_v60 }
 0x957   :  { %v3213_v4 = vpop.eup %3212 }
 0x958   :  { %v2575_v29 = vadd.f32 0.5, %v2574_v20  ;;  %v2578_v53 = vmul.f32 0.5, %v3213_v4  ;;  %v3215_v10 = vpop.eup %3214 }
 0x959   :  { %v3217_v48 = vpop.eup %3216 }
 0x95a   :  { %v2579_v8 = vadd.f32 0.5, %v2578_v53  ;;  %v2586_v49 = vmul.f32 %v3215_v10, %v2575_v29  ;;  %v2583_v2 = vmul.f32 0.5, %v3217_v48 }
 0x95c   :  { %v2585_v43 = vmul.f32 %v2579_v8, %v5965_v31  ;;  %v2584_v26 = vadd.f32 0.5, %v2583_v2 }
 0x95e   :  { %v4903_v46 = vadd.f32 %v2586_v49, %v2585_v43 }
 0x960   :  { %3218 = vtanh.f32 %v4903_v46 }
 0x96d   :  { %v3219_v40 = vpop.eup %3218 }
 0x96e   :  { %v2589_v0 = vmul.f32 %v3219_v40, %v2584_v26 }
 0x970   :  { %v2613_v33 = vpack.c.bf16 %v2589_v0, %v2589_v0 }
 0x972   :  { %2646 = vmatprep.mubr.bf16.mxu0 %v2613_v33  ;;  %2687 = vmatprep.mubr.bf16.mxu1 %v2613_v33 }
 0x973   :  { %2647 = vmatmul.mubr.bf16.vlgmr.msra.gmra.mxu0 %v2612_v37  ;;  %2688 = vmatmul.mubr.bf16.vlgmr.msra.gmra.mxu1 %v2612_v37 }
 0x974   :  { %3007 = vmatpush3.msra.mxu0 %v2733_v38  ;;  %3038 = vmatprep.mubr.msk.f32.mxu0 %vm3331_vm2, %v3330_v50 }
 0x975   :  { %3008 = vmatprep.subr.mxu0 %v3330_v50 }
 0x976   :  { %3009 = vmatpush3.msra.mxu0 %v2732_v55 }
 0x977   :  { %3010 = vmatprep.subr.mxu0 %v3330_v50 }
 0x978   :  { %3011 = vmatpush3.msra.mxu0 %v2731_v58 }
 0x979   :  { %3012 = vmatprep.subr.mxu0 %v3330_v50 }
 0x97a   :  { %3013 = vmatpush3.msra.mxu0 %v2730_v36 }
 0x97b   :  { %3014 = vmatprep.subr.mxu0 %v3330_v50 }
 0x97c   :  { %3015 = vmatpush3.msra.mxu0 %v2729_v57 }
 0x97d   :  { %3016 = vmatprep.subr.mxu0 %v3330_v50 }
 0x97e   :  { %3017 = vmatpush3.msra.mxu0 %v2728_v63 }
 0x97f   :  { %3018 = vmatprep.subr.mxu0 %v3330_v50 }
 0x980   :  { %3019 = vmatpush3.msra.mxu0 %v2727_v3 }
 0x981   :  { %3020 = vmatprep.subr.mxu0 %v3330_v50 }
 0x982   :  { %3021 = vmatpush3.msra.mxu0 %v2726_v21 }
 0x983   :  { %3022 = vmatprep.subr.mxu0 %v3330_v50 }
 0x984   :  { %3023 = vmatpush3.msra.mxu0 %v2725_v47 }
 0x985   :  { %3024 = vmatprep.subr.mxu0 %v3330_v50 }
 0x986   :  { %3025 = vmatpush3.msra.mxu0 %v2724_v41 }
 0x987   :  { %3026 = vmatprep.subr.mxu0 %v3330_v50 }
 0x988   :  { %3027 = vmatpush3.msra.mxu0 %v2723_v28 }
 0x989   :  { %3028 = vmatprep.subr.mxu0 %v3330_v50 }
 0x98a   :  { %3029 = vmatpush3.msra.mxu0 %v2722_v25 }
 0x98b   :  { %3030 = vmatprep.subr.mxu0 %v3330_v50 }
 0x98c   :  { %3031 = vmatpush3.msra.mxu0 %v2721_v1 }
 0x98d   :  { %3032 = vmatprep.subr.mxu0 %v3330_v50 }
 0x98e   :  { %3033 = vmatpush3.msra.mxu0 %v2720_v9 }
 0x98f   :  { %3034 = vmatprep.subr.mxu0 %v3330_v50 }
 0x990   :  { %3035 = vmatpush3.msra.mxu0 %v2719_v22 }
 0x991   :  { %3036 = vmatprep.subr.mxu0 %v3330_v50 }
 0x992   :  { %3037 = vmatpush3.msra.mxu0 %v2718_v23 }
 0xa33   :  { %v2648_v45 = vpop.f32.mrf.mxu0  ;;  %v2689_v16 = vpop.f32.mrf.mxu1 }
 0xa34   :  { %v2696_v17 = vadd.f32 %v2648_v45, %v5961_v35  ;;  %v2698_v44 = vadd.f32 %v2689_v16, %v5963_v11 }
 0xa35   :  { %v2650_v7 = vpop.f32.mrf.mxu0  ;;  %v2691_v62 = vpop.f32.mrf.mxu1 }
 0xa36   :  { %v2700_v24 = vmul.f32 0.5, %v2696_v17  ;;  %v2697_v18 = vadd.f32 %v2650_v7, %v5962_v56  ;;  %v2699_v6 = vadd.f32 %v2691_v62, %v5964_v5  ;;  %v2988_v5 = vld [vmem:[%s4923_s6] ss:$0 sm:$0xff]  ;;  %s3294_s6 = scalar_lea.vmem %s2829_s8, 128 }
 0xa37   :  { %v2652_v13 = vpop.f32.mrf.mxu0  ;;  %v2693_v51 = vpop.f32.mrf.mxu1  ;;  %p3295_p1 = scmp.ne.s32.totalorder %s2829_s8, %s3294_s6  ;;  %p3300_p3 = scmp.lt.s32.totalorder %s3294_s6, %s3294_s6 }
 0xa38   :  { %3220 = vtanh.f32 %v2700_v24  ;;  %v2704_v30 = vmul.f32 0.5, %v2697_v18  ;;  %v2709_v52 = vmul.f32 0.5, %v2699_v6 }
 0xa39   :  { %v2653_v14 = vpop.f32.mrf.mxu0  ;;  %v2694_v34 = vpop.f32.mrf.mxu1  ;;  %p3301_p4 = por %p3300_p3, %p3299_p2 }
 0xa3a   :  { %3222 = vtanh.f32 %v2704_v30 }
 0xa3b   :  { %3224 = vtanh.f32 %v2698_v44  ;;  %p3302_p5 = pnand %p3301_p4, %p3295_p1 }
 0xa3c   :  { %3226 = vtanh.f32 %v2709_v52 }
 0xa45   :  { %v3221_v61 = vpop.eup %3220 }
 0xa46   :  { %v2702_v35 = vmul.f32 0.5, %v3221_v61 }
 0xa47   :  { %v3223_v32 = vpop.eup %3222 }
 0xa48   :  { %v2703_v12 = vadd.f32 0.5, %v2702_v35  ;;  %v2706_v59 = vmul.f32 0.5, %v3223_v32  ;;  %v3225_v54 = vpop.eup %3224 }
 0xa49   :  { %v3227_v39 = vpop.eup %3226 }
 0xa4a   :  { %v2707_v56 = vadd.f32 0.5, %v2706_v59  ;;  %v2714_v15 = vmul.f32 %v3225_v54, %v2703_v12  ;;  %v2711_v11 = vmul.f32 0.5, %v3227_v39 }
 0xa4c   :  { %v2713_v42 = vmul.f32 %v2707_v56, %v4903_v46  ;;  %v2712_v19 = vadd.f32 0.5, %v2711_v11 }
 0xa4e   :  { %v2715_v27 = vadd.f32 %v2714_v15, %v2713_v42 }
 0xa50   :  { %3228 = vtanh.f32 %v2715_v27 }
 0xa5d   :  { %v3229_v60 = vpop.eup %3228 }
 0xa5e   :  { %v2717_v20 = vmul.f32 %v3229_v60, %v2712_v19 }
 0xa60   :  { %3039 = vmatmul.mubr.f32.vlgmr.msra.gmra.mxu0 %v2717_v20 }
 0xb20   :  { %v2807_v4 = vpop.f32.mrf.mxu0 }
 0xb21   :  { %v2808_v29 = vadd.f32 %v2988_v5, %v2807_v4 }
 0xb22   :  { %v3040_v53 = vpop.f32.mrf.mxu0 }
 0xb23   :  { %2811 = vmax.xlane.f32.xlu0 %v2808_v29 }
 0xbac   :  { %v2812_v8 = vpop.xlane.xlu0 %2811 }
 0xbad   :  { %v2813_v10 = vsub.f32 %v2808_v29, %v2812_v8 }
 0xbaf   :  { %v2814_v31 = vmul.f32 1.442695, %v2813_v10 }
 0xbb1   :  { %3230 = vpow2.f32 %v2814_v31 }
 0xbbe   :  { %v3231_v43 = vpop.eup %3230 }
 0xbbf   :  { %2816 = vadd.xlane.f32.xlu0 %v3231_v43 }
 0xc48   :  { %v2817_v49 = vpop.xlane.xlu0 %2816 }
 0xc49   :  { %3232 = vlog2.f32 %v2817_v49 }
 0xc56   :  { %v3233_v46 = vpop.eup %3232 }
 0xc57   :  { %v2819_v48 = vmul.f32 0.6931472, %v3233_v46 }
 0xc59   :  { %v2820_v2 = vsub.f32 %v2813_v10, %v2819_v48 }
 0xc5b   :  { %2821 = vst [vmem:[#allocation8] sm:$0xff] %v2820_v2 }
 0xc5c   :  { %3305 = shalt.err (!%p3302_p5)
}
 0xc5d   :  { %2831 = dma.vmem_to_hbm [thread:$0]  %s2829_s8, 128, %s4924_s7, [#allocation4]  }
 0xc5e   :  { %3318 = dma.done.wait [#allocation4], 128  }
 0xc5f   :  { %3319 = vsyncadd [#allocation4], 4294967168 }
 0xc60   :  { %2835 = vsyncpa [#allocation3], 1 }
 0xc61   :  { %2836 = vsyncpa [#allocation6], 1 }
 0xc62   :  { %2837 = vsyncpa [#allocation4], 1 }

</bundles_post_ra>
